<compile_context>
chip_gen: v7x
topology: tpu7x:2x2x1
jax: 0.10.0
libtpu: 0.0.40
codegen_flags: <defaults>
</compile_context>

<pallas_src>
import functools

import jax
import jax.numpy as jnp
from jax.experimental import pallas as pl
from jax.experimental.pallas import tpu as pltpu

# ----------------------------- model config --------------------------------
NUM_LAYERS = 3          # -> 2 GCN layers
NUM_MLP_LAYERS = 2
SOURCE_DIM = 16
TARGET_DIM = 16
HIDDEN_DIM = 8
OUTPUT_DIM = 4
PI_DIM = 16
NUM_FILTRATIONS = 5     # len(sublevel_filtration_methods) -> CNN in-channels
CNN_K, CNN_S = 3, 2
CNN_OUT = (PI_DIM - CNN_K) // CNN_S + 1   # cnn_output_dim(PI_dim) = 7

H = HIDDEN_DIM
L = NUM_LAYERS - 1

LANE = 128     # TPU lane width
TM = 128       # MXU-height row tile


# ------------------------------- small utils --------------------------------
def _ceil_to(x, m):
    return (x + m - 1) // m * m


def _pad2(a, rows, cols):
    """Zero-pad a 2-D array up to (rows, cols); no-op if already that shape."""
    if a.shape == (rows, cols):
        return a
    out = jnp.zeros((rows, cols), a.dtype)
    return out.at[: a.shape[0], : a.shape[1]].set(a)


# --------------------------- generic fused GEMM ------------------------------
def _linear_kernel(x_ref, w_ref, b_ref, o_ref, *, relu):
    acc = jnp.dot(x_ref[...], w_ref[...], preferred_element_type=jnp.float32)
    acc = acc + b_ref[...]
    if relu:
        acc = jnp.maximum(acc, 0.0)
    o_ref[...] = acc


def pallas_linear(x, w, b=None, *, relu=False):
    """y = [relu](x @ w + b); x:(M,K) w:(K,N) b:(N,), float32 accumulate."""
    x = x.astype(jnp.float32)
    w = w.astype(jnp.float32)
    M, K = x.shape
    Kw, N = w.shape
    assert K == Kw, (K, Kw)

    Mp = _ceil_to(max(M, 1), TM)
    Np = _ceil_to(max(N, 1), LANE)          # lane-dense output columns
    xp = _pad2(x, Mp, K)
    wp = _pad2(w, K, Np)
    if b is None:
        bp = jnp.zeros((1, Np), jnp.float32)
    else:
        bp = _pad2(b.astype(jnp.float32).reshape(1, N), 1, Np)

    out = pl.pallas_call(
        functools.partial(_linear_kernel, relu=relu),
        out_shape=jax.ShapeDtypeStruct((Mp, Np), jnp.float32),
        grid=(Mp // TM,),
        in_specs=[
            pl.BlockSpec((TM, K), lambda i: (i, 0)),
            pl.BlockSpec((K, Np), lambda i: (0, 0)),
            pl.BlockSpec((1, Np), lambda i: (0, 0)),
        ],
        out_specs=pl.BlockSpec((TM, Np), lambda i: (i, 0)),
        compiler_params=pltpu.CompilerParams(
            dimension_semantics=("parallel",)),
        cost_estimate=pl.CostEstimate(
            flops=2 * Mp * K * Np,
            transcendentals=0,
            bytes_accessed=4 * (Mp * K + K * Np + Mp * Np)),
    )(xp, wp, bp)
    return out[:M, :N]


# --------------------- fused GCNConv + 2-layer MLP kernel --------------------
def _gcn_layer_kernel(a_ref, h_ref, wg_ref, bg_ref,
                      w1_ref, b1_ref, w2_ref, b2_ref, o_ref):
    # GCNConv: A_norm @ (h @ Wg) + bg
    xw = jnp.dot(h_ref[...], wg_ref[...], preferred_element_type=jnp.float32)
    agg = jnp.dot(a_ref[...], xw, preferred_element_type=jnp.float32) + bg_ref[...]
    # MLP: Linear + ReLU, Linear (batch-norm omitted, eval semantics)
    m = jnp.dot(agg, w1_ref[...], preferred_element_type=jnp.float32) + b1_ref[...]
    m = jnp.maximum(m, 0.0)
    o_ref[...] = jnp.dot(m, w2_ref[...], preferred_element_type=jnp.float32) + b2_ref[...]


def gcn_layer(a_norm, h, wg, bg, w1, b1, w2, b2):
    """Fused GCN layer.  a_norm:(Np,Np), h:(Np,Din) -> (Np, Dout).
    Np must be a multiple of TM; padded rows/cols of a_norm and h are zero."""
    Np, Din = h.shape
    Dout = w2.shape[1]
    grid_m = Np // TM
    return pl.pallas_call(
        _gcn_layer_kernel,
        out_shape=jax.ShapeDtypeStruct((Np, Dout), jnp.float32),
        grid=(grid_m,),
        in_specs=[
            pl.BlockSpec((TM, Np), lambda i: (i, 0)),     # adjacency row tile
            pl.BlockSpec((Np, Din), lambda i: (0, 0)),    # full node features
            pl.BlockSpec((Din, H), lambda i: (0, 0)),
            pl.BlockSpec((1, H), lambda i: (0, 0)),
            pl.BlockSpec((H, H), lambda i: (0, 0)),
            pl.BlockSpec((1, H), lambda i: (0, 0)),
            pl.BlockSpec((H, Dout), lambda i: (0, 0)),
            pl.BlockSpec((1, Dout), lambda i: (0, 0)),
        ],
        out_specs=pl.BlockSpec((TM, Dout), lambda i: (i, 0)),
        compiler_params=pltpu.CompilerParams(
            dimension_semantics=("parallel",)),
        cost_estimate=pl.CostEstimate(
            flops=2 * (grid_m * Np * Din * H + Np * Np * H
                       + Np * H * H + Np * H * Dout),
            transcendentals=0,
            bytes_accessed=4 * (Np * Np + Np * Din + Np * Dout)),
    )(a_norm, h, wg, bg.reshape(1, H),
      w1, b1.reshape(1, H), w2, b2.reshape(1, Dout))


# ------------------ fused segment-mean pooling + TCL GEMM --------------------
def _pool_tcl_kernel(p_ref, h_ref, k_ref, o_ref):
    pooled = jnp.dot(p_ref[...], h_ref[...], preferred_element_type=jnp.float32)
    o_ref[...] = jnp.dot(pooled, k_ref[...], preferred_element_type=jnp.float32)


def pool_tcl(pool_mat, h_flat, k_mat):
    """(pool_mat @ h_flat) @ k_mat fused in one kernel (pool is the per-graph
    averaging matrix; the TCL is linear so mean-then-TCL == TCL-then-mean)."""
    Bq, Np = pool_mat.shape
    D = h_flat.shape[1]
    Nc = k_mat.shape[1]
    Bp = _ceil_to(Bq, 8)
    pool_p = _pad2(pool_mat, Bp, Np)
    out = pl.pallas_call(
        _pool_tcl_kernel,
        out_shape=jax.ShapeDtypeStruct((Bp, Nc), jnp.float32),
        grid=(1,),
        in_specs=[
            pl.BlockSpec((Bp, Np), lambda i: (0, 0)),
            pl.BlockSpec((Np, D), lambda i: (0, 0)),
            pl.BlockSpec((D, Nc), lambda i: (0, 0)),
        ],
        out_specs=pl.BlockSpec((Bp, Nc), lambda i: (0, 0)),
        compiler_params=pltpu.CompilerParams(
            dimension_semantics=("arbitrary",)),
    )(pool_p, h_flat, k_mat)
    return out[:Bq]


# ---------------- fused attention (+bias, ReLU) + MLP_output head ------------
def _attend_head_kernel(z_ref, ba_ref, s_ref, w1_ref, b1_ref,
                        w2_ref, b2_ref, o_ref):
    att = jnp.maximum(z_ref[...] + ba_ref[...], 0.0)                     # (B, H*H)
    pooled = jnp.dot(att, s_ref[...], preferred_element_type=jnp.float32)  # sum-pool
    hdn = jnp.dot(pooled, w1_ref[...], preferred_element_type=jnp.float32) + b1_ref[...]
    hdn = jnp.maximum(hdn, 0.0)
    o_ref[...] = jnp.dot(hdn, w2_ref[...], preferred_element_type=jnp.float32) + b2_ref[...]


def attend_head(z, b_att, s_mat, w1, b1, w2, b2):
    """relu(z + b_att) -> axis-sum pool (via 0/1 matrix) -> Linear+ReLU -> Linear."""
    Bq, D = z.shape
    Hh = w1.shape[0]
    O = w2.shape[1]
    Bp = _ceil_to(Bq, 8)
    zp = _pad2(z.astype(jnp.float32), Bp, D)
    ba = jnp.reshape(b_att, (1, 1)).astype(jnp.float32)
    out = pl.pallas_call(
        _attend_head_kernel,
        out_shape=jax.ShapeDtypeStruct((Bp, O), jnp.float32),
        grid=(1,),
        in_specs=[
            pl.BlockSpec((Bp, D), lambda i: (0, 0)),
            pl.BlockSpec((1, 1), lambda i: (0, 0)),
            pl.BlockSpec((D, Hh), lambda i: (0, 0)),
            pl.BlockSpec((Hh, Hh), lambda i: (0, 0)),
            pl.BlockSpec((1, Hh), lambda i: (0, 0)),
            pl.BlockSpec((Hh, O), lambda i: (0, 0)),
            pl.BlockSpec((1, O), lambda i: (0, 0)),
        ],
        out_specs=pl.BlockSpec((Bp, O), lambda i: (0, 0)),
        compiler_params=pltpu.CompilerParams(
            dimension_semantics=("arbitrary",)),
    )(zp, ba, s_mat, w1, b1.reshape(1, Hh), w2, b2.reshape(1, O))
    return out[:Bq]


# ------------------------------- parameters ---------------------------------
def init_params(key):
    keys = iter(jax.random.split(key, 64))

    def w(shape, scale=0.1):
        return jax.random.normal(next(keys), shape, jnp.float32) * scale

    def mlp_layers(in_dim, hid, out_dim, n_layers):
        dims = [in_dim] + [hid] * (n_layers - 1) + [out_dim]
        return [(w((dims[i], dims[i + 1])), w((dims[i + 1],)))
                for i in range(n_layers)]

    params = {
        "source_branch": {"w": w((SOURCE_DIM, H)), "b": w((H,))},
        "target_branch": {"w": w((TARGET_DIM, H)), "b": w((H,))},
        "GCNs": [{"w": w((H, H)), "b": w((H,))}] +
                [{"w": w((H * H, H)), "b": w((H,))} for _ in range(L - 1)],
        "mlps": [mlp_layers(H, H, H * H, NUM_MLP_LAYERS) for _ in range(L)],
        "GCN_tensor_layer": {"w1": w((H, L)), "w2": w((H, H)), "w3": w((H, H))},
        "cnn": {"w": w((H, NUM_FILTRATIONS, CNN_K, CNN_K)), "b": w((H,))},
        "PI_tensor_layer": {"w1": w((H, H)), "w2": w((H, CNN_OUT)),
                            "w3": w((H, CNN_OUT))},
        "single_attend": {"w": w((H, 1)), "b": w((1,))},
        "dual_attend": {"w": w((2 * H, 1)), "b": w((1,))},
        "output_tensor_layer": {"w1": w((2 * H, 2 * H)), "w2": w((H, H)),
                                "w3": w((H, H))},
        "output": {"w1": w((H, H)), "b1": w((H,)),
                   "w2": w((H, OUTPUT_DIM)), "b2": w((OUTPUT_DIM,))},
        # score_node_layer unused (node_pooling=False)
    }
    return params


def prepare_params(p):
    """One-time weight transforms: Kronecker-matricized TCLs (they are linear),
    attention weights folded into them, 0/1 sum-pool matrices, im2col weight."""
    H2 = H * H
    wsa = p["single_attend"]["w"][:, 0]              # (H,)
    bsa = p["single_attend"]["b"].reshape(())
    wda = p["dual_attend"]["w"][:, 0]                # (2H,)
    bda = p["dual_attend"]["b"].reshape(())

    # GCN tensor layer (input modes (L, H, H)) + folded single_attend.
    gt = p["GCN_tensor_layer"]                       # w1:(H,L) w2:(H,H) w3:(H,H)
    k_gcn = jnp.einsum("al,bj,ck->ljkabc", gt["w1"], gt["w2"], gt["w3"]
                       ).reshape(L * H2, H * H2)                       # (128, 512)
    v3_g = wsa @ gt["w3"]                                              # (H,)
    k_gcn_att = jnp.einsum("al,bj,k->ljkab", gt["w1"], gt["w2"], v3_g
                           ).reshape(L * H2, H2)                       # (128, 64)
    k_gcn_cat = jnp.concatenate(
        [k_gcn, _pad2(k_gcn_att, L * H2, LANE)], axis=1)               # (128, 640)

    # PI tensor layer (input modes (H, 7, 7)) + folded single_attend.
    pt = p["PI_tensor_layer"]
    pi_in = H * CNN_OUT * CNN_OUT
    k_pi = jnp.einsum("ai,bj,ck->ijkabc", pt["w1"], pt["w2"], pt["w3"]
                      ).reshape(pi_in, H * H2)                         # (392, 512)
    v3_p = wsa @ pt["w3"]                                              # (7,)
    k_pi_att = jnp.einsum("ai,bj,k->ijkab", pt["w1"], pt["w2"], v3_p
                          ).reshape(pi_in, H2)                         # (392, 64)
    k_pi_cat = jnp.concatenate(
        [k_pi, _pad2(k_pi_att, pi_in, LANE)], axis=1)                  # (392, 640)

    # Output tensor layer with dual_attend folded in (transpose(1,3) handled
    # by the column layout + the dual sum-pool matrix below).
    ot = p["output_tensor_layer"]
    v1_o = wda @ ot["w1"]                                              # (2H,)
    k_out = jnp.einsum("i,bj,ck->ijkbc", v1_o, ot["w2"], ot["w3"]
                       ).reshape(2 * H * H2, H2)                       # (1024, 64)

    # 0/1 matrices implementing MLP_output's sum over axis=1.
    idx = jnp.arange(H2)
    s_single = (idx[:, None] % H == jnp.arange(H)[None, :]).astype(jnp.float32)
    s_dual = (idx[:, None] // H == jnp.arange(H)[None, :]).astype(jnp.float32)

    cnn_w_mat = p["cnn"]["w"].reshape(H, -1).T       # (C*9, H) im2col weight

    prep = dict(p)
    prep.update(dict(k_gcn_cat=k_gcn_cat, k_pi_cat=k_pi_cat, k_out=k_out,
                     s_single=s_single, s_dual=s_dual,
                     b_single=bsa, b_dual=bda, cnn_w_mat=cnn_w_mat))
    return prep


# --------------------------------- forward ----------------------------------
def tengcn_forward(prep, graph_xs, graph_edges, batch_PI, domain=0):
    H2 = H * H
    B = len(graph_xs)
    sizes = [int(x.shape[0]) for x in graph_xs]
    n_total = sum(sizes)

    # ---- compute_batch_feat (single batched Linear+ReLU over all nodes) ----
    branch = prep["source_branch"] if domain == 0 else prep["target_branch"]
    x_cat = jnp.concatenate(list(graph_xs), axis=0).astype(jnp.float32)
    # TODO(synk): node_pooling branch (score_node_layer + topk + filter_adj) omitted.
    edge_list, off = [], 0
    for ei, n in zip(graph_edges, sizes):
        edge_list.append(ei + off)
        off += n
    edge_index = jnp.concatenate(edge_list, axis=1)

    h0 = pallas_linear(x_cat, branch["w"], branch["b"], relu=True)      # (N, H)

    # dense block-diagonal normalized adjacency: D^-1/2 (A+I) D^-1/2
    A = jnp.zeros((n_total, n_total), jnp.float32)
    A = A.at[edge_index[1], edge_index[0]].set(1.0)
    A = A + jnp.eye(n_total, dtype=jnp.float32)
    dinv = 1.0 / jnp.sqrt(jnp.sum(A, axis=1))
    A_norm = A * dinv[:, None] * dinv[None, :]

    # pad node dimension once to the 128-row MXU tile
    n_pad = _ceil_to(n_total, TM)
    A_pad = _pad2(A_norm, n_pad, n_pad)
    h = _pad2(h0, n_pad, H)

    # ---- GCN stack: one fused (GCNConv + MLP) kernel per layer ----
    hidden_layers = []
    for layer in range(L):
        g = prep["GCNs"][layer]
        (m1w, m1b), (m2w, m2b) = prep["mlps"][layer]
        h = gcn_layer(A_pad, h, g["w"], g["b"], m1w, m1b, m2w, m2b)     # (n_pad, 64)
        hidden_layers.append(h)
    hidden_flat = jnp.concatenate(hidden_layers, axis=1)                # (n_pad, L*H*H)

    # ---- per-graph mean + GCN tensor layer (+ folded single_attend) ----
    seg = jnp.concatenate([jnp.full((n,), gi, jnp.int32)
                           for gi, n in enumerate(sizes)])
    pool = (jnp.arange(B)[:, None] == seg[None, :]).astype(jnp.float32)
    pool = pool / jnp.asarray(sizes, jnp.float32)[:, None]
    pool = _pad2(pool, B, n_pad)                                        # (B, n_pad)
    gcn_cat = pool_tcl(pool, hidden_flat, prep["k_gcn_cat"])            # (B, 640)
    gcn_hidden_flat = gcn_cat[:, :H * H2]                               # (B, 512)
    z_gcn = gcn_cat[:, H * H2:H * H2 + H2]                              # (B, 64)

    # ---- persistence-image branch: Conv2d(k=3,s=2)+ReLU via im2col GEMM ----
    Bpi, C, PP, _ = batch_PI.shape
    OH = (PP - CNN_K) // CNN_S + 1
    cols = []
    for ky in range(CNN_K):
        for kx in range(CNN_K):
            cols.append(batch_PI[:, :, ky:ky + CNN_S * (OH - 1) + 1:CNN_S,
                                       kx:kx + CNN_S * (OH - 1) + 1:CNN_S])
    col = jnp.stack(cols, axis=2)                                       # (B,C,9,OH,OW)
    col = col.transpose(0, 3, 4, 1, 2).reshape(Bpi * OH * OH,
                                               C * CNN_K * CNN_K)
    pi_emb = pallas_linear(col, prep["cnn_w_mat"], prep["cnn"]["b"], relu=True)
    pi_emb = pi_emb.reshape(Bpi, OH, OH, H).transpose(0, 3, 1, 2)       # NCHW
    pi_flat = pi_emb.reshape(Bpi, H * OH * OH)                          # (B, 392)

    pi_cat = pallas_linear(pi_flat, prep["k_pi_cat"])                   # (B, 640)
    pi_hidden_flat = pi_cat[:, :H * H2]                                 # (B, 512)
    z_pi = pi_cat[:, H * H2:H * H2 + H2]                                # (B, 64)

    # ---- output tensor layer (dual_attend already folded into k_out) ----
    bgt_flat = jnp.concatenate([gcn_hidden_flat, pi_hidden_flat], axis=1)  # (B, 1024)
    z_dual = pallas_linear(bgt_flat, prep["k_out"])                        # (B, 64)

    # ---- attention (+bias, ReLU) + MLP_output heads, fused per head ----
    o = prep["output"]
    score_gcn = attend_head(z_gcn, prep["b_single"], prep["s_single"],
                            o["w1"], o["b1"], o["w2"], o["b2"])
    score_top = attend_head(z_pi, prep["b_single"], prep["s_single"],
                            o["w1"], o["b1"], o["w2"], o["b2"])
    score = attend_head(z_dual, prep["b_dual"], prep["s_dual"],
                        o["w1"], o["b1"], o["w2"], o["b2"])
    return score, score_gcn, score_top


# ----------------------------------- main ------------------------------------
def _ring_edges(n):
    src = jnp.arange(n, dtype=jnp.int32)
    dst = (src + 1) % n
    return jnp.concatenate([jnp.stack([src, dst]), jnp.stack([dst, src])], axis=1)


if __name__ == "__main__":
    key = jax.random.PRNGKey(0)
    kp, kx1, kx2, kpi = jax.random.split(key, 4)
    params = init_params(kp)
    prep = prepare_params(params)

    n1, n2 = 10, 12
    x1 = jax.random.normal(kx1, (n1, SOURCE_DIM), jnp.float32)
    x2 = jax.random.normal(kx2, (n2, SOURCE_DIM), jnp.float32)
    e1, e2 = _ring_edges(n1), _ring_edges(n2)
    batch_PI = jax.random.uniform(
        kpi, (2, NUM_FILTRATIONS, PI_DIM, PI_DIM), jnp.float32)

    fwd = jax.jit(tengcn_forward, static_argnames=("domain",))
    score, score_gcn, score_top = fwd(prep, (x1, x2), (e1, e2),
                                      batch_PI, domain=0)
    score, score_gcn, score_top = jax.block_until_ready(
        (score, score_gcn, score_top))

    assert score.shape == (2, OUTPUT_DIM)
    assert score_gcn.shape == (2, OUTPUT_DIM)
    assert score_top.shape == (2, OUTPUT_DIM)
    assert all(bool(jnp.all(jnp.isfinite(s)))
               for s in (score, score_gcn, score_top))
    print("KERNEL_OK")
</pallas_src>

<mosaic_0001>
module attributes {stable_mosaic.version = 11 : i64} {
  func.func @_linear_kernel(%arg0: i32, %arg1: memref<128x16xf32, #tpu.memory_space<vmem>>, %arg2: memref<16x128xf32, #tpu.memory_space<vmem>>, %arg3: memref<1x128xf32, #tpu.memory_space<vmem>>, %arg4: memref<128x128xf32, #tpu.memory_space<vmem>>) attributes {dimension_semantics = [#tpu.dimension_semantics<parallel>], iteration_bounds = array<i64: 1>, scalar_prefetch = 0 : i64, scratch_operands = 0 : i64, tpu.core_type = #tpu.core_type<tc>, window_params = [{transform_indices = @transform_0, window_bounds = array<i64: 128, 16>}, {pipeline_mode = #tpu.pipeline_mode<synchronous>, transform_indices = @transform_1, window_bounds = array<i64: 16, 128>}, {pipeline_mode = #tpu.pipeline_mode<synchronous>, transform_indices = @transform_2, window_bounds = array<i64: 1, 128>}, {transform_indices = @transform_3, window_bounds = array<i64: 128, 128>}]} {
    %c0 = arith.constant 0 : index
    %c0_0 = arith.constant 0 : index
    %0 = vector.load %arg1[%c0, %c0_0] : memref<128x16xf32, #tpu.memory_space<vmem>>, vector<128x16xf32>
    %c0_1 = arith.constant 0 : index
    %c0_2 = arith.constant 0 : index
    %1 = vector.load %arg2[%c0_1, %c0_2] : memref<16x128xf32, #tpu.memory_space<vmem>>, vector<16x128xf32>
    %cst = arith.constant dense<0.000000e+00> : vector<128x128xf32>
    %2 = tpu.matmul %0, %1, %cst {dimension_numbers = #tpu.dot_dimension_numbers<[1], [0], [0], [1], [0, 0, 1, 1], [], []>} : vector<128x16xf32>, vector<16x128xf32>, vector<128x128xf32> -> vector<128x128xf32>
    %c0_3 = arith.constant 0 : index
    %c0_4 = arith.constant 0 : index
    %3 = vector.load %arg3[%c0_3, %c0_4] : memref<1x128xf32, #tpu.memory_space<vmem>>, vector<1x128xf32>
    %4 = vector.broadcast %3 : vector<1x128xf32> to vector<128x128xf32>
    %5 = arith.addf %2, %4 : vector<128x128xf32>
    %cst_5 = arith.constant 0.000000e+00 : f32
    %6 = vector.broadcast %cst_5 : f32 to vector<128x128xf32>
    %7 = arith.maximumf %5, %6 : vector<128x128xf32>
    %c0_6 = arith.constant 0 : index
    %c0_7 = arith.constant 0 : index
    %8 = vector.load %arg4[%c0_6, %c0_7] : memref<128x128xf32, #tpu.memory_space<vmem>>, vector<128x128xf32>
    tpu.vector_store %arg4[%c0_6, %c0_7], %7 {strides = array<i32>} : memref<128x128xf32, #tpu.memory_space<vmem>>, vector<128x128xf32>,
    return
  }
  func.func @transform_0(%arg0: i32) -> (i32, i32) {
    %c0_i32 = arith.constant 0 : i32
    %c0_i32_0 = arith.constant 0 : i32
    return %arg0, %c0_i32 : i32, i32
  }
  func.func @transform_1(%arg0: i32) -> (i32, i32) {
    %c0_i32 = arith.constant 0 : i32
    %c0_i32_0 = arith.constant 0 : i32
    %c0_i32_1 = arith.constant 0 : i32
    return %c0_i32, %c0_i32_0 : i32, i32
  }
  func.func @transform_2(%arg0: i32) -> (i32, i32) {
    %c0_i32 = arith.constant 0 : i32
    %c0_i32_0 = arith.constant 0 : i32
    %c0_i32_1 = arith.constant 0 : i32
    return %c0_i32, %c0_i32_0 : i32, i32
  }
  func.func @transform_3(%arg0: i32) -> (i32, i32) {
    %c0_i32 = arith.constant 0 : i32
    %c0_i32_0 = arith.constant 0 : i32
    return %arg0, %c0_i32 : i32, i32
  }
}

module attributes {stable_mosaic.version = 11 : i64} {
  func.func @_gcn_layer_kernel(%arg0: i32, %arg1: memref<128x128xf32, #tpu.memory_space<vmem>>, %arg2: memref<128x8xf32, #tpu.memory_space<vmem>>, %arg3: memref<8x8xf32, #tpu.memory_space<vmem>>, %arg4: memref<1x8xf32, #tpu.memory_space<vmem>>, %arg5: memref<8x8xf32, #tpu.memory_space<vmem>>, %arg6: memref<1x8xf32, #tpu.memory_space<vmem>>, %arg7: memref<8x64xf32, #tpu.memory_space<vmem>>, %arg8: memref<1x64xf32, #tpu.memory_space<vmem>>, %arg9: memref<128x64xf32, #tpu.memory_space<vmem>>) attributes {dimension_semantics = [#tpu.dimension_semantics<parallel>], iteration_bounds = array<i64: 1>, scalar_prefetch = 0 : i64, scratch_operands = 0 : i64, tpu.core_type = #tpu.core_type<tc>, window_params = [{transform_indices = @transform_0, window_bounds = array<i64: 128, 128>}, {pipeline_mode = #tpu.pipeline_mode<synchronous>, transform_indices = @transform_1, window_bounds = array<i64: 128, 8>}, {pipeline_mode = #tpu.pipeline_mode<synchronous>, transform_indices = @transform_2, window_bounds = array<i64: 8, 8>}, {pipeline_mode = #tpu.pipeline_mode<synchronous>, transform_indices = @transform_3, window_bounds = array<i64: 1, 8>}, {pipeline_mode = #tpu.pipeline_mode<synchronous>, transform_indices = @transform_4, window_bounds = array<i64: 8, 8>}, {pipeline_mode = #tpu.pipeline_mode<synchronous>, transform_indices = @transform_5, window_bounds = array<i64: 1, 8>}, {pipeline_mode = #tpu.pipeline_mode<synchronous>, transform_indices = @transform_6, window_bounds = array<i64: 8, 64>}, {pipeline_mode = #tpu.pipeline_mode<synchronous>, transform_indices = @transform_7, window_bounds = array<i64: 1, 64>}, {transform_indices = @transform_8, window_bounds = array<i64: 128, 64>}]} {
    %c0 = arith.constant 0 : index
    %c0_0 = arith.constant 0 : index
    %0 = vector.load %arg2[%c0, %c0_0] : memref<128x8xf32, #tpu.memory_space<vmem>>, vector<128x8xf32>
    %c0_1 = arith.constant 0 : index
    %c0_2 = arith.constant 0 : index
    %1 = vector.load %arg3[%c0_1, %c0_2] : memref<8x8xf32, #tpu.memory_space<vmem>>, vector<8x8xf32>
    %cst = arith.constant dense<0.000000e+00> : vector<128x8xf32>
    %2 = tpu.matmul %0, %1, %cst {dimension_numbers = #tpu.dot_dimension_numbers<[1], [0], [0], [1], [0, 0, 1, 1], [], []>} : vector<128x8xf32>, vector<8x8xf32>, vector<128x8xf32> -> vector<128x8xf32>
    %c0_3 = arith.constant 0 : index
    %c0_4 = arith.constant 0 : index
    %3 = vector.load %arg1[%c0_3, %c0_4] : memref<128x128xf32, #tpu.memory_space<vmem>>, vector<128x128xf32>
    %cst_5 = arith.constant dense<0.000000e+00> : vector<128x8xf32>
    %4 = tpu.matmul %3, %2, %cst_5 {dimension_numbers = #tpu.dot_dimension_numbers<[1], [0], [0], [1], [0, 0, 1, 1], [], []>} : vector<128x128xf32>, vector<128x8xf32>, vector<128x8xf32> -> vector<128x8xf32>
    %c0_6 = arith.constant 0 : index
    %c0_7 = arith.constant 0 : index
    %5 = vector.load %arg4[%c0_6, %c0_7] : memref<1x8xf32, #tpu.memory_space<vmem>>, vector<1x8xf32>
    %6 = vector.broadcast %5 : vector<1x8xf32> to vector<128x8xf32>
    %7 = arith.addf %4, %6 : vector<128x8xf32>
    %c0_8 = arith.constant 0 : index
    %c0_9 = arith.constant 0 : index
    %8 = vector.load %arg5[%c0_8, %c0_9] : memref<8x8xf32, #tpu.memory_space<vmem>>, vector<8x8xf32>
    %cst_10 = arith.constant dense<0.000000e+00> : vector<128x8xf32>
    %9 = tpu.matmul %7, %8, %cst_10 {dimension_numbers = #tpu.dot_dimension_numbers<[1], [0], [0], [1], [0, 0, 1, 1], [], []>} : vector<128x8xf32>, vector<8x8xf32>, vector<128x8xf32> -> vector<128x8xf32>
    %c0_11 = arith.constant 0 : index
    %c0_12 = arith.constant 0 : index
    %10 = vector.load %arg6[%c0_11, %c0_12] : memref<1x8xf32, #tpu.memory_space<vmem>>, vector<1x8xf32>
    %11 = vector.broadcast %10 : vector<1x8xf32> to vector<128x8xf32>
    %12 = arith.addf %9, %11 : vector<128x8xf32>
    %cst_13 = arith.constant 0.000000e+00 : f32
    %13 = vector.broadcast %cst_13 : f32 to vector<128x8xf32>
    %14 = arith.maximumf %12, %13 : vector<128x8xf32>
    %c0_14 = arith.constant 0 : index
    %c0_15 = arith.constant 0 : index
    %15 = vector.load %arg7[%c0_14, %c0_15] : memref<8x64xf32, #tpu.memory_space<vmem>>, vector<8x64xf32>
    %cst_16 = arith.constant dense<0.000000e+00> : vector<128x64xf32>
    %16 = tpu.matmul %14, %15, %cst_16 {dimension_numbers = #tpu.dot_dimension_numbers<[1], [0], [0], [1], [0, 0, 1, 1], [], []>} : vector<128x8xf32>, vector<8x64xf32>, vector<128x64xf32> -> vector<128x64xf32>
    %c0_17 = arith.constant 0 : index
    %c0_18 = arith.constant 0 : index
    %17 = vector.load %arg8[%c0_17, %c0_18] : memref<1x64xf32, #tpu.memory_space<vmem>>, vector<1x64xf32>
    %18 = vector.broadcast %17 : vector<1x64xf32> to vector<128x64xf32>
    %19 = arith.addf %16, %18 : vector<128x64xf32>
    %c0_19 = arith.constant 0 : index
    %c0_20 = arith.constant 0 : index
    %20 = vector.load %arg9[%c0_19, %c0_20] : memref<128x64xf32, #tpu.memory_space<vmem>>, vector<128x64xf32>
    tpu.vector_store %arg9[%c0_19, %c0_20], %19 {strides = array<i32>} : memref<128x64xf32, #tpu.memory_space<vmem>>, vector<128x64xf32>,
    return
  }
  func.func @transform_0(%arg0: i32) -> (i32, i32) {
    %c0_i32 = arith.constant 0 : i32
    %c0_i32_0 = arith.constant 0 : i32
    return %arg0, %c0_i32 : i32, i32
  }
  func.func @transform_1(%arg0: i32) -> (i32, i32) {
    %c0_i32 = arith.constant 0 : i32
    %c0_i32_0 = arith.constant 0 : i32
    %c0_i32_1 = arith.constant 0 : i32
    return %c0_i32, %c0_i32_0 : i32, i32
  }
  func.func @transform_2(%arg0: i32) -> (i32, i32) {
    %c0_i32 = arith.constant 0 : i32
    %c0_i32_0 = arith.constant 0 : i32
    %c0_i32_1 = arith.constant 0 : i32
    return %c0_i32, %c0_i32_0 : i32, i32
  }
  func.func @transform_3(%arg0: i32) -> (i32, i32) {
    %c0_i32 = arith.constant 0 : i32
    %c0_i32_0 = arith.constant 0 : i32
    %c0_i32_1 = arith.constant 0 : i32
    return %c0_i32, %c0_i32_0 : i32, i32
  }
  func.func @transform_4(%arg0: i32) -> (i32, i32) {
    %c0_i32 = arith.constant 0 : i32
    %c0_i32_0 = arith.constant 0 : i32
    %c0_i32_1 = arith.constant 0 : i32
    return %c0_i32, %c0_i32_0 : i32, i32
  }
  func.func @transform_5(%arg0: i32) -> (i32, i32) {
    %c0_i32 = arith.constant 0 : i32
    %c0_i32_0 = arith.constant 0 : i32
    %c0_i32_1 = arith.constant 0 : i32
    return %c0_i32, %c0_i32_0 : i32, i32
  }
  func.func @transform_6(%arg0: i32) -> (i32, i32) {
    %c0_i32 = arith.constant 0 : i32
    %c0_i32_0 = arith.constant 0 : i32
    %c0_i32_1 = arith.constant 0 : i32
    return %c0_i32, %c0_i32_0 : i32, i32
  }
  func.func @transform_7(%arg0: i32) -> (i32, i32) {
    %c0_i32 = arith.constant 0 : i32
    %c0_i32_0 = arith.constant 0 : i32
    %c0_i32_1 = arith.constant 0 : i32
    return %c0_i32, %c0_i32_0 : i32, i32
  }
  func.func @transform_8(%arg0: i32) -> (i32, i32) {
    %c0_i32 = arith.constant 0 : i32
    %c0_i32_0 = arith.constant 0 : i32
    return %arg0, %c0_i32 : i32, i32
  }
}

module attributes {stable_mosaic.version = 11 : i64} {
  func.func @_pool_tcl_kernel(%arg0: i32, %arg1: memref<8x128xf32, #tpu.memory_space<vmem>>, %arg2: memref<128x128xf32, #tpu.memory_space<vmem>>, %arg3: memref<128x640xf32, #tpu.memory_space<vmem>>, %arg4: memref<8x640xf32, #tpu.memory_space<vmem>>) attributes {dimension_semantics = [#tpu.dimension_semantics<arbitrary>], iteration_bounds = array<i64: 1>, scalar_prefetch = 0 : i64, scratch_operands = 0 : i64, tpu.core_type = #tpu.core_type<tc>, window_params = [{pipeline_mode = #tpu.pipeline_mode<synchronous>, transform_indices = @transform_0, window_bounds = array<i64: 8, 128>}, {pipeline_mode = #tpu.pipeline_mode<synchronous>, transform_indices = @transform_1, window_bounds = array<i64: 128, 128>}, {pipeline_mode = #tpu.pipeline_mode<synchronous>, transform_indices = @transform_2, window_bounds = array<i64: 128, 640>}, {pipeline_mode = #tpu.pipeline_mode<synchronous>, transform_indices = @transform_3, window_bounds = array<i64: 8, 640>}]} {
    %c0 = arith.constant 0 : index
    %c0_0 = arith.constant 0 : index
    %0 = vector.load %arg1[%c0, %c0_0] : memref<8x128xf32, #tpu.memory_space<vmem>>, vector<8x128xf32>
    %c0_1 = arith.constant 0 : index
    %c0_2 = arith.constant 0 : index
    %1 = vector.load %arg2[%c0_1, %c0_2] : memref<128x128xf32, #tpu.memory_space<vmem>>, vector<128x128xf32>
    %cst = arith.constant dense<0.000000e+00> : vector<8x128xf32>
    %2 = tpu.matmul %0, %1, %cst {dimension_numbers = #tpu.dot_dimension_numbers<[1], [0], [0], [1], [0, 0, 1, 1], [], []>} : vector<8x128xf32>, vector<128x128xf32>, vector<8x128xf32> -> vector<8x128xf32>
    %c0_3 = arith.constant 0 : index
    %c0_4 = arith.constant 0 : index
    %3 = vector.load %arg3[%c0_3, %c0_4] : memref<128x640xf32, #tpu.memory_space<vmem>>, vector<128x640xf32>
    %cst_5 = arith.constant dense<0.000000e+00> : vector<8x640xf32>
    %4 = tpu.matmul %2, %3, %cst_5 {dimension_numbers = #tpu.dot_dimension_numbers<[1], [0], [0], [1], [0, 0, 1, 1], [], []>} : vector<8x128xf32>, vector<128x640xf32>, vector<8x640xf32> -> vector<8x640xf32>
    %c0_6 = arith.constant 0 : index
    %c0_7 = arith.constant 0 : index
    %5 = vector.load %arg4[%c0_6, %c0_7] : memref<8x640xf32, #tpu.memory_space<vmem>>, vector<8x640xf32>
    tpu.vector_store %arg4[%c0_6, %c0_7], %4 {strides = array<i32>} : memref<8x640xf32, #tpu.memory_space<vmem>>, vector<8x640xf32>,
    return
  }
  func.func @transform_0(%arg0: i32) -> (i32, i32) {
    %c0_i32 = arith.constant 0 : i32
    %c0_i32_0 = arith.constant 0 : i32
    %c0_i32_1 = arith.constant 0 : i32
    return %c0_i32, %c0_i32_0 : i32, i32
  }
  func.func @transform_1(%arg0: i32) -> (i32, i32) {
    %c0_i32 = arith.constant 0 : i32
    %c0_i32_0 = arith.constant 0 : i32
    %c0_i32_1 = arith.constant 0 : i32
    return %c0_i32, %c0_i32_0 : i32, i32
  }
  func.func @transform_2(%arg0: i32) -> (i32, i32) {
    %c0_i32 = arith.constant 0 : i32
    %c0_i32_0 = arith.constant 0 : i32
    %c0_i32_1 = arith.constant 0 : i32
    return %c0_i32, %c0_i32_0 : i32, i32
  }
  func.func @transform_3(%arg0: i32) -> (i32, i32) {
    %c0_i32 = arith.constant 0 : i32
    %c0_i32_0 = arith.constant 0 : i32
    %c0_i32_1 = arith.constant 0 : i32
    return %c0_i32, %c0_i32_0 : i32, i32
  }
}

module attributes {stable_mosaic.version = 11 : i64} {
  func.func @_gcn_layer_kernel(%arg0: i32, %arg1: memref<128x128xf32, #tpu.memory_space<vmem>>, %arg2: memref<128x64xf32, #tpu.memory_space<vmem>>, %arg3: memref<64x8xf32, #tpu.memory_space<vmem>>, %arg4: memref<1x8xf32, #tpu.memory_space<vmem>>, %arg5: memref<8x8xf32, #tpu.memory_space<vmem>>, %arg6: memref<1x8xf32, #tpu.memory_space<vmem>>, %arg7: memref<8x64xf32, #tpu.memory_space<vmem>>, %arg8: memref<1x64xf32, #tpu.memory_space<vmem>>, %arg9: memref<128x64xf32, #tpu.memory_space<vmem>>) attributes {dimension_semantics = [#tpu.dimension_semantics<parallel>], iteration_bounds = array<i64: 1>, scalar_prefetch = 0 : i64, scratch_operands = 0 : i64, tpu.core_type = #tpu.core_type<tc>, window_params = [{transform_indices = @transform_0, window_bounds = array<i64: 128, 128>}, {pipeline_mode = #tpu.pipeline_mode<synchronous>, transform_indices = @transform_1, window_bounds = array<i64: 128, 64>}, {pipeline_mode = #tpu.pipeline_mode<synchronous>, transform_indices = @transform_2, window_bounds = array<i64: 64, 8>}, {pipeline_mode = #tpu.pipeline_mode<synchronous>, transform_indices = @transform_3, window_bounds = array<i64: 1, 8>}, {pipeline_mode = #tpu.pipeline_mode<synchronous>, transform_indices = @transform_4, window_bounds = array<i64: 8, 8>}, {pipeline_mode = #tpu.pipeline_mode<synchronous>, transform_indices = @transform_5, window_bounds = array<i64: 1, 8>}, {pipeline_mode = #tpu.pipeline_mode<synchronous>, transform_indices = @transform_6, window_bounds = array<i64: 8, 64>}, {pipeline_mode = #tpu.pipeline_mode<synchronous>, transform_indices = @transform_7, window_bounds = array<i64: 1, 64>}, {transform_indices = @transform_8, window_bounds = array<i64: 128, 64>}]} {
    %c0 = arith.constant 0 : index
    %c0_0 = arith.constant 0 : index
    %0 = vector.load %arg2[%c0, %c0_0] : memref<128x64xf32, #tpu.memory_space<vmem>>, vector<128x64xf32>
    %c0_1 = arith.constant 0 : index
    %c0_2 = arith.constant 0 : index
    %1 = vector.load %arg3[%c0_1, %c0_2] : memref<64x8xf32, #tpu.memory_space<vmem>>, vector<64x8xf32>
    %cst = arith.constant dense<0.000000e+00> : vector<128x8xf32>
    %2 = tpu.matmul %0, %1, %cst {dimension_numbers = #tpu.dot_dimension_numbers<[1], [0], [0], [1], [0, 0, 1, 1], [], []>} : vector<128x64xf32>, vector<64x8xf32>, vector<128x8xf32> -> vector<128x8xf32>
    %c0_3 = arith.constant 0 : index
    %c0_4 = arith.constant 0 : index
    %3 = vector.load %arg1[%c0_3, %c0_4] : memref<128x128xf32, #tpu.memory_space<vmem>>, vector<128x128xf32>
    %cst_5 = arith.constant dense<0.000000e+00> : vector<128x8xf32>
    %4 = tpu.matmul %3, %2, %cst_5 {dimension_numbers = #tpu.dot_dimension_numbers<[1], [0], [0], [1], [0, 0, 1, 1], [], []>} : vector<128x128xf32>, vector<128x8xf32>, vector<128x8xf32> -> vector<128x8xf32>
    %c0_6 = arith.constant 0 : index
    %c0_7 = arith.constant 0 : index
    %5 = vector.load %arg4[%c0_6, %c0_7] : memref<1x8xf32, #tpu.memory_space<vmem>>, vector<1x8xf32>
    %6 = vector.broadcast %5 : vector<1x8xf32> to vector<128x8xf32>
    %7 = arith.addf %4, %6 : vector<128x8xf32>
    %c0_8 = arith.constant 0 : index
    %c0_9 = arith.constant 0 : index
    %8 = vector.load %arg5[%c0_8, %c0_9] : memref<8x8xf32, #tpu.memory_space<vmem>>, vector<8x8xf32>
    %cst_10 = arith.constant dense<0.000000e+00> : vector<128x8xf32>
    %9 = tpu.matmul %7, %8, %cst_10 {dimension_numbers = #tpu.dot_dimension_numbers<[1], [0], [0], [1], [0, 0, 1, 1], [], []>} : vector<128x8xf32>, vector<8x8xf32>, vector<128x8xf32> -> vector<128x8xf32>
    %c0_11 = arith.constant 0 : index
    %c0_12 = arith.constant 0 : index
    %10 = vector.load %arg6[%c0_11, %c0_12] : memref<1x8xf32, #tpu.memory_space<vmem>>, vector<1x8xf32>
    %11 = vector.broadcast %10 : vector<1x8xf32> to vector<128x8xf32>
    %12 = arith.addf %9, %11 : vector<128x8xf32>
    %cst_13 = arith.constant 0.000000e+00 : f32
    %13 = vector.broadcast %cst_13 : f32 to vector<128x8xf32>
    %14 = arith.maximumf %12, %13 : vector<128x8xf32>
    %c0_14 = arith.constant 0 : index
    %c0_15 = arith.constant 0 : index
    %15 = vector.load %arg7[%c0_14, %c0_15] : memref<8x64xf32, #tpu.memory_space<vmem>>, vector<8x64xf32>
    %cst_16 = arith.constant dense<0.000000e+00> : vector<128x64xf32>
    %16 = tpu.matmul %14, %15, %cst_16 {dimension_numbers = #tpu.dot_dimension_numbers<[1], [0], [0], [1], [0, 0, 1, 1], [], []>} : vector<128x8xf32>, vector<8x64xf32>, vector<128x64xf32> -> vector<128x64xf32>
    %c0_17 = arith.constant 0 : index
    %c0_18 = arith.constant 0 : index
    %17 = vector.load %arg8[%c0_17, %c0_18] : memref<1x64xf32, #tpu.memory_space<vmem>>, vector<1x64xf32>
    %18 = vector.broadcast %17 : vector<1x64xf32> to vector<128x64xf32>
    %19 = arith.addf %16, %18 : vector<128x64xf32>
    %c0_19 = arith.constant 0 : index
    %c0_20 = arith.constant 0 : index
    %20 = vector.load %arg9[%c0_19, %c0_20] : memref<128x64xf32, #tpu.memory_space<vmem>>, vector<128x64xf32>
    tpu.vector_store %arg9[%c0_19, %c0_20], %19 {strides = array<i32>} : memref<128x64xf32, #tpu.memory_space<vmem>>, vector<128x64xf32>,
    return
  }
  func.func @transform_0(%arg0: i32) -> (i32, i32) {
    %c0_i32 = arith.constant 0 : i32
    %c0_i32_0 = arith.constant 0 : i32
    return %arg0, %c0_i32 : i32, i32
  }
  func.func @transform_1(%arg0: i32) -> (i32, i32) {
    %c0_i32 = arith.constant 0 : i32
    %c0_i32_0 = arith.constant 0 : i32
    %c0_i32_1 = arith.constant 0 : i32
    return %c0_i32, %c0_i32_0 : i32, i32
  }
  func.func @transform_2(%arg0: i32) -> (i32, i32) {
    %c0_i32 = arith.constant 0 : i32
    %c0_i32_0 = arith.constant 0 : i32
    %c0_i32_1 = arith.constant 0 : i32
    return %c0_i32, %c0_i32_0 : i32, i32
  }
  func.func @transform_3(%arg0: i32) -> (i32, i32) {
    %c0_i32 = arith.constant 0 : i32
    %c0_i32_0 = arith.constant 0 : i32
    %c0_i32_1 = arith.constant 0 : i32
    return %c0_i32, %c0_i32_0 : i32, i32
  }
  func.func @transform_4(%arg0: i32) -> (i32, i32) {
    %c0_i32 = arith.constant 0 : i32
    %c0_i32_0 = arith.constant 0 : i32
    %c0_i32_1 = arith.constant 0 : i32
    return %c0_i32, %c0_i32_0 : i32, i32
  }
  func.func @transform_5(%arg0: i32) -> (i32, i32) {
    %c0_i32 = arith.constant 0 : i32
    %c0_i32_0 = arith.constant 0 : i32
    %c0_i32_1 = arith.constant 0 : i32
    return %c0_i32, %c0_i32_0 : i32, i32
  }
  func.func @transform_6(%arg0: i32) -> (i32, i32) {
    %c0_i32 = arith.constant 0 : i32
    %c0_i32_0 = arith.constant 0 : i32
    %c0_i32_1 = arith.constant 0 : i32
    return %c0_i32, %c0_i32_0 : i32, i32
  }
  func.func @transform_7(%arg0: i32) -> (i32, i32) {
    %c0_i32 = arith.constant 0 : i32
    %c0_i32_0 = arith.constant 0 : i32
    %c0_i32_1 = arith.constant 0 : i32
    return %c0_i32, %c0_i32_0 : i32, i32
  }
  func.func @transform_8(%arg0: i32) -> (i32, i32) {
    %c0_i32 = arith.constant 0 : i32
    %c0_i32_0 = arith.constant 0 : i32
    return %arg0, %c0_i32 : i32, i32
  }
}

module attributes {stable_mosaic.version = 11 : i64} {
  func.func @_attend_head_kernel(%arg0: i32, %arg1: memref<8x64xf32, #tpu.memory_space<vmem>>, %arg2: memref<1x1xf32, #tpu.memory_space<vmem>>, %arg3: memref<64x8xf32, #tpu.memory_space<vmem>>, %arg4: memref<8x8xf32, #tpu.memory_space<vmem>>, %arg5: memref<1x8xf32, #tpu.memory_space<vmem>>, %arg6: memref<8x4xf32, #tpu.memory_space<vmem>>, %arg7: memref<1x4xf32, #tpu.memory_space<vmem>>, %arg8: memref<8x4xf32, #tpu.memory_space<vmem>>) attributes {dimension_semantics = [#tpu.dimension_semantics<arbitrary>], iteration_bounds = array<i64: 1>, scalar_prefetch = 0 : i64, scratch_operands = 0 : i64, tpu.core_type = #tpu.core_type<tc>, window_params = [{pipeline_mode = #tpu.pipeline_mode<synchronous>, transform_indices = @transform_0, window_bounds = array<i64: 8, 64>}, {pipeline_mode = #tpu.pipeline_mode<synchronous>, transform_indices = @transform_1, window_bounds = array<i64: 1, 1>}, {pipeline_mode = #tpu.pipeline_mode<synchronous>, transform_indices = @transform_2, window_bounds = array<i64: 64, 8>}, {pipeline_mode = #tpu.pipeline_mode<synchronous>, transform_indices = @transform_3, window_bounds = array<i64: 8, 8>}, {pipeline_mode = #tpu.pipeline_mode<synchronous>, transform_indices = @transform_4, window_bounds = array<i64: 1, 8>}, {pipeline_mode = #tpu.pipeline_mode<synchronous>, transform_indices = @transform_5, window_bounds = array<i64: 8, 4>}, {pipeline_mode = #tpu.pipeline_mode<synchronous>, transform_indices = @transform_6, window_bounds = array<i64: 1, 4>}, {pipeline_mode = #tpu.pipeline_mode<synchronous>, transform_indices = @transform_7, window_bounds = array<i64: 8, 4>}]} {
    %c0 = arith.constant 0 : index
    %c0_0 = arith.constant 0 : index
    %0 = vector.load %arg1[%c0, %c0_0] : memref<8x64xf32, #tpu.memory_space<vmem>>, vector<8x64xf32>
    %c0_1 = arith.constant 0 : index
    %c0_2 = arith.constant 0 : index
    %1 = vector.load %arg2[%c0_1, %c0_2] : memref<1x1xf32, #tpu.memory_space<vmem>>, vector<1x1xf32>
    %2 = vector.broadcast %1 : vector<1x1xf32> to vector<8x64xf32>
    %3 = arith.addf %0, %2 : vector<8x64xf32>
    %cst = arith.constant 0.000000e+00 : f32
    %4 = vector.broadcast %cst : f32 to vector<8x64xf32>
    %5 = arith.maximumf %3, %4 : vector<8x64xf32>
    %c0_3 = arith.constant 0 : index
    %c0_4 = arith.constant 0 : index
    %6 = vector.load %arg3[%c0_3, %c0_4] : memref<64x8xf32, #tpu.memory_space<vmem>>, vector<64x8xf32>
    %cst_5 = arith.constant dense<0.000000e+00> : vector<8x8xf32>
    %7 = tpu.matmul %5, %6, %cst_5 {dimension_numbers = #tpu.dot_dimension_numbers<[1], [0], [0], [1], [0, 0, 1, 1], [], []>} : vector<8x64xf32>, vector<64x8xf32>, vector<8x8xf32> -> vector<8x8xf32>
    %c0_6 = arith.constant 0 : index
    %c0_7 = arith.constant 0 : index
    %8 = vector.load %arg4[%c0_6, %c0_7] : memref<8x8xf32, #tpu.memory_space<vmem>>, vector<8x8xf32>
    %cst_8 = arith.constant dense<0.000000e+00> : vector<8x8xf32>
    %9 = tpu.matmul %7, %8, %cst_8 {dimension_numbers = #tpu.dot_dimension_numbers<[1], [0], [0], [1], [0, 0, 1, 1], [], []>} : vector<8x8xf32>, vector<8x8xf32>, vector<8x8xf32> -> vector<8x8xf32>
    %c0_9 = arith.constant 0 : index
    %c0_10 = arith.constant 0 : index
    %10 = vector.load %arg5[%c0_9, %c0_10] : memref<1x8xf32, #tpu.memory_space<vmem>>, vector<1x8xf32>
    %11 = vector.broadcast %10 : vector<1x8xf32> to vector<8x8xf32>
    %12 = arith.addf %9, %11 : vector<8x8xf32>
    %cst_11 = arith.constant 0.000000e+00 : f32
    %13 = vector.broadcast %cst_11 : f32 to vector<8x8xf32>
    %14 = arith.maximumf %12, %13 : vector<8x8xf32>
    %c0_12 = arith.constant 0 : index
    %c0_13 = arith.constant 0 : index
    %15 = vector.load %arg6[%c0_12, %c0_13] : memref<8x4xf32, #tpu.memory_space<vmem>>, vector<8x4xf32>
    %cst_14 = arith.constant dense<0.000000e+00> : vector<8x4xf32>
    %16 = tpu.matmul %14, %15, %cst_14 {dimension_numbers = #tpu.dot_dimension_numbers<[1], [0], [0], [1], [0, 0, 1, 1], [], []>} : vector<8x8xf32>, vector<8x4xf32>, vector<8x4xf32> -> vector<8x4xf32>
    %c0_15 = arith.constant 0 : index
    %c0_16 = arith.constant 0 : index
    %17 = vector.load %arg7[%c0_15, %c0_16] : memref<1x4xf32, #tpu.memory_space<vmem>>, vector<1x4xf32>
    %18 = vector.broadcast %17 : vector<1x4xf32> to vector<8x4xf32>
    %19 = arith.addf %16, %18 : vector<8x4xf32>
    %c0_17 = arith.constant 0 : index
    %c0_18 = arith.constant 0 : index
    %20 = vector.load %arg8[%c0_17, %c0_18] : memref<8x4xf32, #tpu.memory_space<vmem>>, vector<8x4xf32>
    tpu.vector_store %arg8[%c0_17, %c0_18], %19 {strides = array<i32>} : memref<8x4xf32, #tpu.memory_space<vmem>>, vector<8x4xf32>,
    return
  }
  func.func @transform_0(%arg0: i32) -> (i32, i32) {
    %c0_i32 = arith.constant 0 : i32
    %c0_i32_0 = arith.constant 0 : i32
    %c0_i32_1 = arith.constant 0 : i32
    return %c0_i32, %c0_i32_0 : i32, i32
  }
  func.func @transform_1(%arg0: i32) -> (i32, i32) {
    %c0_i32 = arith.constant 0 : i32
    %c0_i32_0 = arith.constant 0 : i32
    %c0_i32_1 = arith.constant 0 : i32
    return %c0_i32, %c0_i32_0 : i32, i32
  }
  func.func @transform_2(%arg0: i32) -> (i32, i32) {
    %c0_i32 = arith.constant 0 : i32
    %c0_i32_0 = arith.constant 0 : i32
    %c0_i32_1 = arith.constant 0 : i32
    return %c0_i32, %c0_i32_0 : i32, i32
  }
  func.func @transform_3(%arg0: i32) -> (i32, i32) {
    %c0_i32 = arith.constant 0 : i32
    %c0_i32_0 = arith.constant 0 : i32
    %c0_i32_1 = arith.constant 0 : i32
    return %c0_i32, %c0_i32_0 : i32, i32
  }
  func.func @transform_4(%arg0: i32) -> (i32, i32) {
    %c0_i32 = arith.constant 0 : i32
    %c0_i32_0 = arith.constant 0 : i32
    %c0_i32_1 = arith.constant 0 : i32
    return %c0_i32, %c0_i32_0 : i32, i32
  }
  func.func @transform_5(%arg0: i32) -> (i32, i32) {
    %c0_i32 = arith.constant 0 : i32
    %c0_i32_0 = arith.constant 0 : i32
    %c0_i32_1 = arith.constant 0 : i32
    return %c0_i32, %c0_i32_0 : i32, i32
  }
  func.func @transform_6(%arg0: i32) -> (i32, i32) {
    %c0_i32 = arith.constant 0 : i32
    %c0_i32_0 = arith.constant 0 : i32
    %c0_i32_1 = arith.constant 0 : i32
    return %c0_i32, %c0_i32_0 : i32, i32
  }
  func.func @transform_7(%arg0: i32) -> (i32, i32) {
    %c0_i32 = arith.constant 0 : i32
    %c0_i32_0 = arith.constant 0 : i32
    %c0_i32_1 = arith.constant 0 : i32
    return %c0_i32, %c0_i32_0 : i32, i32
  }
}

module attributes {stable_mosaic.version = 11 : i64} {
  func.func @_linear_kernel(%arg0: i32, %arg1: memref<128x45xf32, #tpu.memory_space<vmem>>, %arg2: memref<45x128xf32, #tpu.memory_space<vmem>>, %arg3: memref<1x128xf32, #tpu.memory_space<vmem>>, %arg4: memref<128x128xf32, #tpu.memory_space<vmem>>) attributes {dimension_semantics = [#tpu.dimension_semantics<parallel>], iteration_bounds = array<i64: 1>, scalar_prefetch = 0 : i64, scratch_operands = 0 : i64, tpu.core_type = #tpu.core_type<tc>, window_params = [{transform_indices = @transform_0, window_bounds = array<i64: 128, 45>}, {pipeline_mode = #tpu.pipeline_mode<synchronous>, transform_indices = @transform_1, window_bounds = array<i64: 45, 128>}, {pipeline_mode = #tpu.pipeline_mode<synchronous>, transform_indices = @transform_2, window_bounds = array<i64: 1, 128>}, {transform_indices = @transform_3, window_bounds = array<i64: 128, 128>}]} {
    %c0 = arith.constant 0 : index
    %c0_0 = arith.constant 0 : index
    %0 = vector.load %arg1[%c0, %c0_0] : memref<128x45xf32, #tpu.memory_space<vmem>>, vector<128x45xf32>
    %c0_1 = arith.constant 0 : index
    %c0_2 = arith.constant 0 : index
    %1 = vector.load %arg2[%c0_1, %c0_2] : memref<45x128xf32, #tpu.memory_space<vmem>>, vector<45x128xf32>
    %cst = arith.constant dense<0.000000e+00> : vector<128x128xf32>
    %2 = tpu.matmul %0, %1, %cst {dimension_numbers = #tpu.dot_dimension_numbers<[1], [0], [0], [1], [0, 0, 1, 1], [], []>} : vector<128x45xf32>, vector<45x128xf32>, vector<128x128xf32> -> vector<128x128xf32>
    %c0_3 = arith.constant 0 : index
    %c0_4 = arith.constant 0 : index
    %3 = vector.load %arg3[%c0_3, %c0_4] : memref<1x128xf32, #tpu.memory_space<vmem>>, vector<1x128xf32>
    %4 = vector.broadcast %3 : vector<1x128xf32> to vector<128x128xf32>
    %5 = arith.addf %2, %4 : vector<128x128xf32>
    %cst_5 = arith.constant 0.000000e+00 : f32
    %6 = vector.broadcast %cst_5 : f32 to vector<128x128xf32>
    %7 = arith.maximumf %5, %6 : vector<128x128xf32>
    %c0_6 = arith.constant 0 : index
    %c0_7 = arith.constant 0 : index
    %8 = vector.load %arg4[%c0_6, %c0_7] : memref<128x128xf32, #tpu.memory_space<vmem>>, vector<128x128xf32>
    tpu.vector_store %arg4[%c0_6, %c0_7], %7 {strides = array<i32>} : memref<128x128xf32, #tpu.memory_space<vmem>>, vector<128x128xf32>,
    return
  }
  func.func @transform_0(%arg0: i32) -> (i32, i32) {
    %c0_i32 = arith.constant 0 : i32
    %c0_i32_0 = arith.constant 0 : i32
    return %arg0, %c0_i32 : i32, i32
  }
  func.func @transform_1(%arg0: i32) -> (i32, i32) {
    %c0_i32 = arith.constant 0 : i32
    %c0_i32_0 = arith.constant 0 : i32
    %c0_i32_1 = arith.constant 0 : i32
    return %c0_i32, %c0_i32_0 : i32, i32
  }
  func.func @transform_2(%arg0: i32) -> (i32, i32) {
    %c0_i32 = arith.constant 0 : i32
    %c0_i32_0 = arith.constant 0 : i32
    %c0_i32_1 = arith.constant 0 : i32
    return %c0_i32, %c0_i32_0 : i32, i32
  }
  func.func @transform_3(%arg0: i32) -> (i32, i32) {
    %c0_i32 = arith.constant 0 : i32
    %c0_i32_0 = arith.constant 0 : i32
    return %arg0, %c0_i32 : i32, i32
  }
}

module attributes {stable_mosaic.version = 11 : i64} {
  func.func @_linear_kernel(%arg0: i32, %arg1: memref<128x392xf32, #tpu.memory_space<vmem>>, %arg2: memref<392x640xf32, #tpu.memory_space<vmem>>, %arg3: memref<1x640xf32, #tpu.memory_space<vmem>>, %arg4: memref<128x640xf32, #tpu.memory_space<vmem>>) attributes {dimension_semantics = [#tpu.dimension_semantics<parallel>], iteration_bounds = array<i64: 1>, scalar_prefetch = 0 : i64, scratch_operands = 0 : i64, tpu.core_type = #tpu.core_type<tc>, window_params = [{transform_indices = @transform_0, window_bounds = array<i64: 128, 392>}, {pipeline_mode = #tpu.pipeline_mode<synchronous>, transform_indices = @transform_1, window_bounds = array<i64: 392, 640>}, {pipeline_mode = #tpu.pipeline_mode<synchronous>, transform_indices = @transform_2, window_bounds = array<i64: 1, 640>}, {transform_indices = @transform_3, window_bounds = array<i64: 128, 640>}]} {
    %c0 = arith.constant 0 : index
    %c0_0 = arith.constant 0 : index
    %0 = vector.load %arg1[%c0, %c0_0] : memref<128x392xf32, #tpu.memory_space<vmem>>, vector<128x392xf32>
    %c0_1 = arith.constant 0 : index
    %c0_2 = arith.constant 0 : index
    %1 = vector.load %arg2[%c0_1, %c0_2] : memref<392x640xf32, #tpu.memory_space<vmem>>, vector<392x640xf32>
    %cst = arith.constant dense<0.000000e+00> : vector<128x640xf32>
    %2 = tpu.matmul %0, %1, %cst {dimension_numbers = #tpu.dot_dimension_numbers<[1], [0], [0], [1], [0, 0, 1, 1], [], []>} : vector<128x392xf32>, vector<392x640xf32>, vector<128x640xf32> -> vector<128x640xf32>
    %c0_3 = arith.constant 0 : index
    %c0_4 = arith.constant 0 : index
    %3 = vector.load %arg3[%c0_3, %c0_4] : memref<1x640xf32, #tpu.memory_space<vmem>>, vector<1x640xf32>
    %4 = vector.broadcast %3 : vector<1x640xf32> to vector<128x640xf32>
    %5 = arith.addf %2, %4 : vector<128x640xf32>
    %c0_5 = arith.constant 0 : index
    %c0_6 = arith.constant 0 : index
    %6 = vector.load %arg4[%c0_5, %c0_6] : memref<128x640xf32, #tpu.memory_space<vmem>>, vector<128x640xf32>
    tpu.vector_store %arg4[%c0_5, %c0_6], %5 {strides = array<i32>} : memref<128x640xf32, #tpu.memory_space<vmem>>, vector<128x640xf32>,
    return
  }
  func.func @transform_0(%arg0: i32) -> (i32, i32) {
    %c0_i32 = arith.constant 0 : i32
    %c0_i32_0 = arith.constant 0 : i32
    return %arg0, %c0_i32 : i32, i32
  }
  func.func @transform_1(%arg0: i32) -> (i32, i32) {
    %c0_i32 = arith.constant 0 : i32
    %c0_i32_0 = arith.constant 0 : i32
    %c0_i32_1 = arith.constant 0 : i32
    return %c0_i32, %c0_i32_0 : i32, i32
  }
  func.func @transform_2(%arg0: i32) -> (i32, i32) {
    %c0_i32 = arith.constant 0 : i32
    %c0_i32_0 = arith.constant 0 : i32
    %c0_i32_1 = arith.constant 0 : i32
    return %c0_i32, %c0_i32_0 : i32, i32
  }
  func.func @transform_3(%arg0: i32) -> (i32, i32) {
    %c0_i32 = arith.constant 0 : i32
    %c0_i32_0 = arith.constant 0 : i32
    return %arg0, %c0_i32 : i32, i32
  }
}

module attributes {stable_mosaic.version = 11 : i64} {
  func.func @_linear_kernel(%arg0: i32, %arg1: memref<128x1024xf32, #tpu.memory_space<vmem>>, %arg2: memref<1024x128xf32, #tpu.memory_space<vmem>>, %arg3: memref<1x128xf32, #tpu.memory_space<vmem>>, %arg4: memref<128x128xf32, #tpu.memory_space<vmem>>) attributes {dimension_semantics = [#tpu.dimension_semantics<parallel>], iteration_bounds = array<i64: 1>, scalar_prefetch = 0 : i64, scratch_operands = 0 : i64, tpu.core_type = #tpu.core_type<tc>, window_params = [{transform_indices = @transform_0, window_bounds = array<i64: 128, 1024>}, {pipeline_mode = #tpu.pipeline_mode<synchronous>, transform_indices = @transform_1, window_bounds = array<i64: 1024, 128>}, {pipeline_mode = #tpu.pipeline_mode<synchronous>, transform_indices = @transform_2, window_bounds = array<i64: 1, 128>}, {transform_indices = @transform_3, window_bounds = array<i64: 128, 128>}]} {
    %c0 = arith.constant 0 : index
    %c0_0 = arith.constant 0 : index
    %0 = vector.load %arg1[%c0, %c0_0] : memref<128x1024xf32, #tpu.memory_space<vmem>>, vector<128x1024xf32>
    %c0_1 = arith.constant 0 : index
    %c0_2 = arith.constant 0 : index
    %1 = vector.load %arg2[%c0_1, %c0_2] : memref<1024x128xf32, #tpu.memory_space<vmem>>, vector<1024x128xf32>
    %cst = arith.constant dense<0.000000e+00> : vector<128x128xf32>
    %2 = tpu.matmul %0, %1, %cst {dimension_numbers = #tpu.dot_dimension_numbers<[1], [0], [0], [1], [0, 0, 1, 1], [], []>} : vector<128x1024xf32>, vector<1024x128xf32>, vector<128x128xf32> -> vector<128x128xf32>
    %c0_3 = arith.constant 0 : index
    %c0_4 = arith.constant 0 : index
    %3 = vector.load %arg3[%c0_3, %c0_4] : memref<1x128xf32, #tpu.memory_space<vmem>>, vector<1x128xf32>
    %4 = vector.broadcast %3 : vector<1x128xf32> to vector<128x128xf32>
    %5 = arith.addf %2, %4 : vector<128x128xf32>
    %c0_5 = arith.constant 0 : index
    %c0_6 = arith.constant 0 : index
    %6 = vector.load %arg4[%c0_5, %c0_6] : memref<128x128xf32, #tpu.memory_space<vmem>>, vector<128x128xf32>
    tpu.vector_store %arg4[%c0_5, %c0_6], %5 {strides = array<i32>} : memref<128x128xf32, #tpu.memory_space<vmem>>, vector<128x128xf32>,
    return
  }
  func.func @transform_0(%arg0: i32) -> (i32, i32) {
    %c0_i32 = arith.constant 0 : i32
    %c0_i32_0 = arith.constant 0 : i32
    return %arg0, %c0_i32 : i32, i32
  }
  func.func @transform_1(%arg0: i32) -> (i32, i32) {
    %c0_i32 = arith.constant 0 : i32
    %c0_i32_0 = arith.constant 0 : i32
    %c0_i32_1 = arith.constant 0 : i32
    return %c0_i32, %c0_i32_0 : i32, i32
  }
  func.func @transform_2(%arg0: i32) -> (i32, i32) {
    %c0_i32 = arith.constant 0 : i32
    %c0_i32_0 = arith.constant 0 : i32
    %c0_i32_1 = arith.constant 0 : i32
    return %c0_i32, %c0_i32_0 : i32, i32
  }
  func.func @transform_3(%arg0: i32) -> (i32, i32) {
    %c0_i32 = arith.constant 0 : i32
    %c0_i32_0 = arith.constant 0 : i32
    return %arg0, %c0_i32 : i32, i32
  }
}

</mosaic_0001>

<bundles_post_ra>
// kernel: tengcn_forward.10
= control target key start
LH: loop header
LB: loop body
LE: loop exit
PB: predicated region body
PF: predicated region fallthrough
CT: control target
= control target key end

     0   :  { %vm39_vm0 = vcmask 130048   ;;  %s479_s1 = inlined_call_operand.vmem [shape: f32[16,128], index: 1, kind: input, shape index: {}]   ;;  %s480_s0 = inlined_call_operand.vmem [shape: f32[128,16], index: 0, kind: input, shape index: {}]   ;;  %s481_s2 = inlined_call_operand.vmem [shape: f32[1,128], index: 2, kind: input, shape index: {}]   ;;  %s482_s3 = inlined_call_operand.vmem [shape: f32[128,128], index: 3, kind: output, shape index: {}]  }
   0x1   :  { %v30_v0 = vld [vmem:[%s479_s1] sm:$0xff]  ;;  %v31_v1 = vld [vmem:[%s479_s1 + $0x8] sm:$0xff]  ;;  %v16_v7 = vld [vmem:[%s480_s0 + $0x10] sm:$0xff] }
   0x2   :  { %v14_v2 = vld [vmem:[%s480_s0] sm:$0xff]  ;;  %v332_v3 = vpack.c.bf16 %v31_v1, %v30_v0  ;;  %v15_v5 = vld [vmem:[%s480_s0 + $0x8] sm:$0xff]  ;;  %v24_v8 = vld [vmem:[%s480_s0 + $0x50] sm:$0xff] }
   0x3   :  { %308 = vmatprep.mubr.msk.f32.mxu0 %vm39_vm0, %v14_v2  ;;  %v22_v4 = vld [vmem:[%s480_s0 + $0x40] sm:$0xff]  ;;  %v23_v6 = vld [vmem:[%s480_s0 + $0x48] sm:$0xff]  ;;  %v17_v9 = vld [vmem:[%s480_s0 + $0x18] sm:$0xff] }
   0x4   :  { %320 = vmatprep.mubr.msk.f32.mxu1 %vm39_vm0, %v22_v4  ;;  %333 = vmatprep.subr.bf16.mxu0 %v332_v3  ;;  %v25_v10 = vld [vmem:[%s480_s0 + $0x58] sm:$0xff]  ;;  %v18_v11 = vld [vmem:[%s480_s0 + $0x20] sm:$0xff]  ;;  %v19_v13 = vld [vmem:[%s480_s0 + $0x28] sm:$0xff] }
   0x5   :  { %336 = vmatprep.subr.bf16.mxu1 %v332_v3  ;;  %335 = vmatpush3.bf16.msra.mxu0 %v332_v3  ;;  %v26_v12 = vld [vmem:[%s480_s0 + $0x60] sm:$0xff]  ;;  %v27_v14 = vld [vmem:[%s480_s0 + $0x68] sm:$0xff]  ;;  %v20_v15 = vld [vmem:[%s480_s0 + $0x30] sm:$0xff] }
   0x6   :  { %337 = vmatpush3.bf16.msra.mxu1 %v332_v3  ;;  %v28_v16 = vld [vmem:[%s480_s0 + $0x70] sm:$0xff]  ;;  %v21_v17 = vld [vmem:[%s480_s0 + $0x38] sm:$0xff]  ;;  %v269_v19 = vld [vmem:[%s481_s2] ss:$0 sm:$0xff] }
   0x7   :  { %v29_v18 = vld [vmem:[%s480_s0 + $0x78] sm:$0xff] }
   0x8   :  { %309 = vmatmul.mubr.msk.f32.vlgmr.msra.gmra.mrb[0].mxu0 %vm39_vm0, %v15_v5 }
   0x9   :  { %321 = vmatmul.mubr.msk.f32.vlgmr.msra.gmra.mrb[0].mxu1 %vm39_vm0, %v23_v6  ;;  %311 = vmatprep.mubr.msk.f32.mxu0 %vm39_vm0, %v16_v7 }
   0xa   :  { %323 = vmatprep.mubr.msk.f32.mxu1 %vm39_vm0, %v24_v8 }
   0xc   :  { %312 = vmatmul.mubr.msk.f32.gmra.mrb[2].mxu0 %vm39_vm0, %v17_v9 }
   0xd   :  { %324 = vmatmul.mubr.msk.f32.gmra.mrb[2].mxu1 %vm39_vm0, %v25_v10  ;;  %314 = vmatprep.mubr.msk.f32.mxu0 %vm39_vm0, %v18_v11 }
   0xe   :  { %326 = vmatprep.mubr.msk.f32.mxu1 %vm39_vm0, %v26_v12 }
  0x10   :  { %315 = vmatmul.mubr.msk.f32.gmra.mrb[4].mxu0 %vm39_vm0, %v19_v13 }
  0x11   :  { %327 = vmatmul.mubr.msk.f32.gmra.mrb[4].mxu1 %vm39_vm0, %v27_v14  ;;  %317 = vmatprep.mubr.msk.f32.mxu0 %vm39_vm0, %v20_v15 }
  0x12   :  { %329 = vmatprep.mubr.msk.f32.mxu1 %vm39_vm0, %v28_v16 }
  0x14   :  { %318 = vmatmul.mubr.msk.f32.gmra.mrb[6].mxu0 %vm39_vm0, %v21_v17 }
  0x15   :  { %330 = vmatmul.mubr.msk.f32.gmra.mrb[6].mxu1 %vm39_vm0, %v29_v18 }
  0xdb   :  { %v310_v20 = vpop.f32.mrb[0].mxu0 }
  0xdc   :  { %v322_v21 = vpop.f32.mrb[0].mxu1  ;;  %v160_v22 = vadd.f32 %v310_v20, %v269_v19  ;;  %v154_v24 = vpop.f32.mrb[1].mxu0 }
  0xdd   :  { %v200_v23 = vadd.f32 %v322_v21, %v269_v19  ;;  %v194_v25 = vpop.f32.mrb[1].mxu1  ;;  %v155_v26 = vadd.f32 %v269_v19, %v154_v24 }
  0xde   :  { %v195_v27 = vadd.f32 %v269_v19, %v194_v25  ;;  %v234_v28 = vmax.f32 %v160_v22, 0.0 }
  0xdf   :  { %v242_v29 = vmax.f32 %v200_v23, 0.0  ;;  %v233_v30 = vmax.f32 %v155_v26, 0.0  ;;  %v313_v32 = vpop.f32.mrb[2].mxu0 }
  0xe0   :  { %v241_v31 = vmax.f32 %v195_v27, 0.0  ;;  %v325_v33 = vpop.f32.mrb[2].mxu1  ;;  %250 = vst [vmem:[%s482_s3 + $0x8] sm:$0xff] %v234_v28  ;;  %v170_v34 = vadd.f32 %v313_v32, %v269_v19  ;;  %v164_v36 = vpop.f32.mrb[3].mxu0 }
  0xe1   :  { %258 = vst [vmem:[%s482_s3 + $0x48] sm:$0xff] %v242_v29  ;;  %v210_v35 = vadd.f32 %v325_v33, %v269_v19  ;;  %v204_v37 = vpop.f32.mrb[3].mxu1  ;;  %249 = vst [vmem:[%s482_s3] sm:$0xff] %v233_v30  ;;  %v165_v38 = vadd.f32 %v269_v19, %v164_v36 }
  0xe2   :  { %257 = vst [vmem:[%s482_s3 + $0x40] sm:$0xff] %v241_v31  ;;  %v205_v39 = vadd.f32 %v269_v19, %v204_v37  ;;  %v236_v40 = vmax.f32 %v170_v34, 0.0 }
  0xe3   :  { %v244_v41 = vmax.f32 %v210_v35, 0.0  ;;  %v235_v42 = vmax.f32 %v165_v38, 0.0  ;;  %v316_v44 = vpop.f32.mrb[4].mxu0 }
  0xe4   :  { %v243_v43 = vmax.f32 %v205_v39, 0.0  ;;  %v328_v45 = vpop.f32.mrb[4].mxu1  ;;  %252 = vst [vmem:[%s482_s3 + $0x18] sm:$0xff] %v236_v40  ;;  %v180_v46 = vadd.f32 %v316_v44, %v269_v19  ;;  %v174_v48 = vpop.f32.mrb[5].mxu0 }
  0xe5   :  { %260 = vst [vmem:[%s482_s3 + $0x58] sm:$0xff] %v244_v41  ;;  %v220_v47 = vadd.f32 %v328_v45, %v269_v19  ;;  %v214_v49 = vpop.f32.mrb[5].mxu1  ;;  %251 = vst [vmem:[%s482_s3 + $0x10] sm:$0xff] %v235_v42  ;;  %v175_v50 = vadd.f32 %v269_v19, %v174_v48 }
  0xe6   :  { %259 = vst [vmem:[%s482_s3 + $0x50] sm:$0xff] %v243_v43  ;;  %v215_v51 = vadd.f32 %v269_v19, %v214_v49  ;;  %v238_v52 = vmax.f32 %v180_v46, 0.0 }
  0xe7   :  { %v246_v53 = vmax.f32 %v220_v47, 0.0  ;;  %v237_v54 = vmax.f32 %v175_v50, 0.0  ;;  %v319_v56 = vpop.f32.mrb[6].mxu0 }
  0xe8   :  { %v245_v55 = vmax.f32 %v215_v51, 0.0  ;;  %v331_v57 = vpop.f32.mrb[6].mxu1  ;;  %254 = vst [vmem:[%s482_s3 + $0x28] sm:$0xff] %v238_v52  ;;  %v190_v58 = vadd.f32 %v319_v56, %v269_v19  ;;  %v184_v60 = vpop.f32.mrb[7].mxu0 }
  0xe9   :  { %262 = vst [vmem:[%s482_s3 + $0x68] sm:$0xff] %v246_v53  ;;  %v230_v59 = vadd.f32 %v331_v57, %v269_v19  ;;  %v224_v61 = vpop.f32.mrb[7].mxu1  ;;  %253 = vst [vmem:[%s482_s3 + $0x20] sm:$0xff] %v237_v54  ;;  %v185_v62 = vadd.f32 %v269_v19, %v184_v60 }
  0xea   :  { %261 = vst [vmem:[%s482_s3 + $0x60] sm:$0xff] %v245_v55  ;;  %v225_v63 = vadd.f32 %v269_v19, %v224_v61  ;;  %v240_v0 = vmax.f32 %v190_v58, 0.0 }
  0xeb   :  { %v248_v1 = vmax.f32 %v230_v59, 0.0  ;;  %v239_v2 = vmax.f32 %v185_v62, 0.0 }
  0xec   :  { %v247_v3 = vmax.f32 %v225_v63, 0.0  ;;  %256 = vst [vmem:[%s482_s3 + $0x38] sm:$0xff] %v240_v0 }
  0xed   :  { %264 = vst [vmem:[%s482_s3 + $0x78] sm:$0xff] %v248_v1  ;;  %255 = vst [vmem:[%s482_s3 + $0x30] sm:$0xff] %v239_v2 }
  0xee   :  { %263 = vst [vmem:[%s482_s3 + $0x70] sm:$0xff] %v247_v3 }

// kernel: tengcn_forward.13
= control target key start
LH: loop header
LB: loop body
LE: loop exit
PB: predicated region body
PF: predicated region fallthrough
CT: control target
= control target key end

     0   :  { %v621_v0 = vmov 0.0|0.0   ;;  %vm622_vm0 = vmmov 0   ;;  %v623_v4 = vmov 0.0   ;;  %s972_s1 = inlined_call_operand.vmem [shape: f32[128,128], index: 1, kind: input, shape index: {}]   ;;  %s973_s2 = inlined_call_operand.vmem [shape: f32[128,640], index: 2, kind: input, shape index: {}]   ;;  %s974_s0 = inlined_call_operand.vmem [shape: f32[8,128], index: 0, kind: input, shape index: {}]   ;;  %s975_s3 = inlined_call_operand.vmem [shape: f32[8,640], index: 3, kind: output, shape index: {}]  }
   0x1   :  { %506 = vmatprep.subr.bf16.mxu0 %v621_v0  ;;  %v15_v1 = vld [vmem:[%s972_s1] sm:$0xff]  ;;  %v16_v2 = vld [vmem:[%s972_s1 + $0x8] sm:$0xff]  ;;  %v17_v3 = vld [vmem:[%s972_s1 + $0x10] sm:$0xff]  ;;  %468 = vmatprep.mubr.msk.f32.mxu0 %vm622_vm0, %v623_v4 }
   0x2   :  { %v507_v5 = vpack.c.bf16 %v16_v2, %v15_v1  ;;  %v18_v6 = vld [vmem:[%s972_s1 + $0x18] sm:$0xff]  ;;  %245 = vmatprep.mubr.f32.mxu1 %v623_v4  ;;  %v19_v8 = vld [vmem:[%s972_s1 + $0x20] sm:$0xff]  ;;  %v20_v9 = vld [vmem:[%s972_s1 + $0x28] sm:$0xff] }
   0x3   :  { %v510_v7 = vpack.c.bf16 %v18_v6, %v17_v3  ;;  %v102_v10 = vld [vmem:[%s973_s2 + $0x8] sm:$0xff]  ;;  %v107_v11 = vld [vmem:[%s973_s2 + $0x30] sm:$0xff]  ;;  %v101_v12 = vld [vmem:[%s973_s2] sm:$0xff]  ;;  %v513_v14 = vpack.c.bf16 %v20_v9, %v19_v8 }
   0x4   :  { %508 = vmatpush3.bf16.msra.mxu0 %v507_v5  ;;  %v106_v13 = vld [vmem:[%s973_s2 + $0x28] sm:$0xff]  ;;  %v21_v15 = vld [vmem:[%s972_s1 + $0x30] sm:$0xff]  ;;  %v530_v16 = vpack.c.bf16 %v107_v11, %v102_v10  ;;  %v22_v18 = vld [vmem:[%s972_s1 + $0x38] sm:$0xff] }
   0x5   :  { %509 = vmatprep.subr.bf16.mxu0 %v621_v0  ;;  %v532_v17 = vpack.c.bf16 %v106_v13, %v101_v12  ;;  %v112_v19 = vld [vmem:[%s973_s2 + $0x58] sm:$0xff]  ;;  %v117_v20 = vld [vmem:[%s973_s2 + $0x80] sm:$0xff]  ;;  %v111_v22 = vld [vmem:[%s973_s2 + $0x50] sm:$0xff]  ;;  %v516_v25 = vpack.c.bf16 %v22_v18, %v21_v15 }
   0x6   :  { %531 = vmatprep.subr.bf16.mxu1 %v530_v16  ;;  %v534_v21 = vpack.c.bf16 %v117_v20, %v112_v19  ;;  %v116_v23 = vld [vmem:[%s973_s2 + $0x78] sm:$0xff]  ;;  %v122_v26 = vld [vmem:[%s973_s2 + $0xa8] sm:$0xff]  ;;  %v127_v27 = vld [vmem:[%s973_s2 + $0xd0] sm:$0xff] }
   0x7   :  { %533 = vmatpush1.bf16.msra.mxu1 %v532_v17  ;;  %v536_v24 = vpack.c.bf16 %v116_v23, %v111_v22  ;;  %v121_v28 = vld [vmem:[%s973_s2 + $0xa0] sm:$0xff]  ;;  %v24_v30 = vld [vmem:[%s972_s1 + $0x48] sm:$0xff]  ;;  %v538_v31 = vpack.c.bf16 %v127_v27, %v122_v26  ;;  %v132_v33 = vld [vmem:[%s973_s2 + $0xf8] sm:$0xff] }
   0x8   :  { %511 = vmatpush3.bf16.msra.mxu0 %v510_v7  ;;  %535 = vmatprep.subr.bf16.mxu1 %v534_v21  ;;  %v23_v29 = vld [vmem:[%s972_s1 + $0x40] sm:$0xff]  ;;  %v126_v32 = vld [vmem:[%s973_s2 + $0xc8] sm:$0xff]  ;;  %v25_v37 = vld [vmem:[%s972_s1 + $0x50] sm:$0xff] }
   0x9   :  { %512 = vmatprep.subr.bf16.mxu0 %v621_v0  ;;  %v540_v34 = vpack.c.bf16 %v126_v32, %v121_v28  ;;  %v137_v35 = vld [vmem:[%s973_s2 + $0x120] sm:$0xff]  ;;  %v519_v36 = vpack.c.bf16 %v24_v30, %v23_v29  ;;  %v131_v39 = vld [vmem:[%s973_s2 + $0xf0] sm:$0xff]  ;;  %v136_v40 = vld [vmem:[%s973_s2 + $0x118] sm:$0xff] }
   0xa   :  { %v542_v38 = vpack.c.bf16 %v137_v35, %v132_v33  ;;  %v26_v41 = vld [vmem:[%s972_s1 + $0x58] sm:$0xff]  ;;  %v142_v42 = vld [vmem:[%s973_s2 + $0x148] sm:$0xff]  ;;  %v147_v43 = vld [vmem:[%s973_s2 + $0x170] sm:$0xff]  ;;  %v544_v44 = vpack.c.bf16 %v136_v40, %v131_v39 }
   0xb   :  { %537 = vmatpush1.bf16.msra.mxu1 %v536_v24  ;;  %v522_v45 = vpack.c.bf16 %v26_v41, %v25_v37  ;;  %v27_v46 = vld [vmem:[%s972_s1 + $0x60] sm:$0xff]  ;;  %v546_v47 = vpack.c.bf16 %v147_v43, %v142_v42  ;;  %v146_v49 = vld [vmem:[%s973_s2 + $0x168] sm:$0xff]  ;;  %v152_v51 = vld [vmem:[%s973_s2 + $0x198] sm:$0xff] }
   0xc   :  { %514 = vmatpush3.bf16.msra.mxu0 %v513_v14  ;;  %539 = vmatprep.subr.bf16.mxu1 %v538_v31  ;;  %v141_v48 = vld [vmem:[%s973_s2 + $0x140] sm:$0xff]  ;;  %v28_v50 = vld [vmem:[%s972_s1 + $0x68] sm:$0xff]  ;;  %v29_v55 = vld [vmem:[%s972_s1 + $0x70] sm:$0xff] }
   0xd   :  { %515 = vmatprep.subr.bf16.mxu0 %v621_v0  ;;  %v157_v52 = vld [vmem:[%s973_s2 + $0x1c0] sm:$0xff]  ;;  %v548_v53 = vpack.c.bf16 %v146_v49, %v141_v48  ;;  %v525_v54 = vpack.c.bf16 %v28_v50, %v27_v46  ;;  %v151_v57 = vld [vmem:[%s973_s2 + $0x190] sm:$0xff]  ;;  %v156_v58 = vld [vmem:[%s973_s2 + $0x1b8] sm:$0xff] }
   0xe   :  { %v550_v56 = vpack.c.bf16 %v157_v52, %v152_v51  ;;  %v30_v59 = vld [vmem:[%s972_s1 + $0x78] sm:$0xff]  ;;  %v162_v60 = vld [vmem:[%s973_s2 + $0x1e8] sm:$0xff]  ;;  %v167_v61 = vld [vmem:[%s973_s2 + $0x210] sm:$0xff]  ;;  %v552_v1 = vpack.c.bf16 %v156_v58, %v151_v57 }
   0xf   :  { %541 = vmatpush1.bf16.msra.mxu1 %v540_v34  ;;  %v104_v62 = vld [vmem:[%s973_s2 + $0x18] sm:$0xff]  ;;  %v109_v63 = vld [vmem:[%s973_s2 + $0x40] sm:$0xff]  ;;  %v528_v2 = vpack.c.bf16 %v30_v59, %v29_v55  ;;  %v103_v3 = vld [vmem:[%s973_s2 + $0x10] sm:$0xff]  ;;  %v554_v5 = vpack.c.bf16 %v167_v61, %v162_v60 }
  0x10   :  { %517 = vmatpush3.bf16.msra.mxu0 %v516_v25  ;;  %543 = vmatprep.subr.bf16.mxu1 %v542_v38  ;;  %v161_v6 = vld [vmem:[%s973_s2 + $0x1e0] sm:$0xff]  ;;  %v166_v7 = vld [vmem:[%s973_s2 + $0x208] sm:$0xff]  ;;  %v562_v8 = vpack.c.bf16 %v109_v63, %v104_v62  ;;  %v108_v9 = vld [vmem:[%s973_s2 + $0x38] sm:$0xff] }
  0x11   :  { %518 = vmatprep.subr.bf16.mxu0 %v621_v0  ;;  %v172_v10 = vld [vmem:[%s973_s2 + $0x238] sm:$0xff]  ;;  %v177_v11 = vld [vmem:[%s973_s2 + $0x260] sm:$0xff]  ;;  %v114_v12 = vld [vmem:[%s973_s2 + $0x68] sm:$0xff]  ;;  %v556_v14 = vpack.c.bf16 %v166_v7, %v161_v6  ;;  %v564_v16 = vpack.c.bf16 %v108_v9, %v103_v3 }
  0x12   :  { %v119_v13 = vld [vmem:[%s973_s2 + $0x90] sm:$0xff]  ;;  %v14_v15 = vld [vmem:[%s974_s0] sm:$0xff]  ;;  %v558_v17 = vpack.c.bf16 %v177_v11, %v172_v10  ;;  %v176_v19 = vld [vmem:[%s973_s2 + $0x258] sm:$0xff] }
  0x13   :  { %545 = vmatpush1.bf16.msra.mxu1 %v544_v44  ;;  %v171_v18 = vld [vmem:[%s973_s2 + $0x230] sm:$0xff]  ;;  %v566_v20 = vpack.c.bf16 %v119_v13, %v114_v12  ;;  %v113_v21 = vld [vmem:[%s973_s2 + $0x60] sm:$0xff]  ;;  %v118_v22 = vld [vmem:[%s973_s2 + $0x88] sm:$0xff] }
  0x14   :  { %520 = vmatpush3.bf16.msra.mxu0 %v519_v36  ;;  %547 = vmatprep.subr.bf16.mxu1 %v546_v47  ;;  %v124_v23 = vld [vmem:[%s973_s2 + $0xb8] sm:$0xff]  ;;  %v129_v24 = vld [vmem:[%s973_s2 + $0xe0] sm:$0xff]  ;;  %v560_v25 = vpack.c.bf16 %v176_v19, %v171_v18  ;;  %v568_v26 = vpack.c.bf16 %v118_v22, %v113_v21  ;;  %v123_v28 = vld [vmem:[%s973_s2 + $0xb0] sm:$0xff] }
  0x15   :  { %521 = vmatprep.subr.bf16.mxu0 %v621_v0  ;;  %v570_v27 = vpack.c.bf16 %v129_v24, %v124_v23  ;;  %v128_v29 = vld [vmem:[%s973_s2 + $0xd8] sm:$0xff]  ;;  %v134_v30 = vld [vmem:[%s973_s2 + $0x108] sm:$0xff]  ;;  %v139_v31 = vld [vmem:[%s973_s2 + $0x130] sm:$0xff] }
  0x16   :  { %v572_v32 = vpack.c.bf16 %v128_v29, %v123_v28  ;;  %v574_v33 = vpack.c.bf16 %v139_v31, %v134_v30  ;;  %v133_v34 = vld [vmem:[%s973_s2 + $0x100] sm:$0xff]  ;;  %v138_v35 = vld [vmem:[%s973_s2 + $0x128] sm:$0xff]  ;;  %v144_v36 = vld [vmem:[%s973_s2 + $0x158] sm:$0xff] }
  0x17   :  { %549 = vmatpush1.bf16.msra.mxu1 %v548_v53  ;;  %v149_v37 = vld [vmem:[%s973_s2 + $0x180] sm:$0xff]  ;;  %v576_v38 = vpack.c.bf16 %v138_v35, %v133_v34  ;;  %v143_v40 = vld [vmem:[%s973_s2 + $0x150] sm:$0xff]  ;;  %v148_v41 = vld [vmem:[%s973_s2 + $0x178] sm:$0xff] }
  0x18   :  { %523 = vmatpush3.bf16.msra.mxu0 %v522_v45  ;;  %551 = vmatprep.subr.bf16.mxu1 %v550_v56  ;;  %v578_v39 = vpack.c.bf16 %v149_v37, %v144_v36  ;;  %v154_v42 = vld [vmem:[%s973_s2 + $0x1a8] sm:$0xff]  ;;  %v159_v43 = vld [vmem:[%s973_s2 + $0x1d0] sm:$0xff]  ;;  %v580_v44 = vpack.c.bf16 %v148_v41, %v143_v40  ;;  %v153_v46 = vld [vmem:[%s973_s2 + $0x1a0] sm:$0xff] }
  0x19   :  { %524 = vmatprep.subr.bf16.mxu0 %v621_v0  ;;  %v582_v45 = vpack.c.bf16 %v159_v43, %v154_v42  ;;  %v158_v47 = vld [vmem:[%s973_s2 + $0x1c8] sm:$0xff]  ;;  %v164_v48 = vld [vmem:[%s973_s2 + $0x1f8] sm:$0xff]  ;;  %v169_v49 = vld [vmem:[%s973_s2 + $0x220] sm:$0xff] }
  0x1a   :  { %v584_v50 = vpack.c.bf16 %v158_v47, %v153_v46  ;;  %v586_v51 = vpack.c.bf16 %v169_v49, %v164_v48  ;;  %v163_v52 = vld [vmem:[%s973_s2 + $0x1f0] sm:$0xff]  ;;  %v168_v53 = vld [vmem:[%s973_s2 + $0x218] sm:$0xff]  ;;  %v173_v58 = vld [vmem:[%s973_s2 + $0x240] sm:$0xff] }
  0x1b   :  { %553 = vmatpush1.bf16.msra.mxu1 %v552_v1  ;;  %v179_v55 = vld [vmem:[%s973_s2 + $0x270] sm:$0xff]  ;;  %v588_v56 = vpack.c.bf16 %v168_v53, %v163_v52  ;;  %v178_v59 = vld [vmem:[%s973_s2 + $0x268] sm:$0xff]  ;;  %v105_v61 = vld [vmem:[%s973_s2 + $0x20] sm:$0xff] }
  0x1c   :  { %526 = vmatpush3.bf16.msra.mxu0 %v525_v54  ;;  %555 = vmatprep.subr.bf16.mxu1 %v554_v5  ;;  %v174_v54 = vld [vmem:[%s973_s2 + $0x248] sm:$0xff]  ;;  %v592_v60 = vpack.c.bf16 %v178_v59, %v173_v58  ;;  %v115_v1 = vld [vmem:[%s973_s2 + $0x70] sm:$0xff]  ;;  %v125_v7 = vld [vmem:[%s973_s2 + $0xc0] sm:$0xff] }
  0x1d   :  { %527 = vmatprep.subr.bf16.mxu0 %v621_v0  ;;  %v590_v57 = vpack.c.bf16 %v179_v55, %v174_v54  ;;  %v110_v62 = vld [vmem:[%s973_s2 + $0x48] sm:$0xff]  ;;  %v135_v10 = vld [vmem:[%s973_s2 + $0x110] sm:$0xff]  ;;  %v145_v12 = vld [vmem:[%s973_s2 + $0x160] sm:$0xff] }
  0x1e   :  { %v595_v63 = vpack.c.bf16 %v110_v62, %v105_v61  ;;  %v150_v13 = vld [vmem:[%s973_s2 + $0x188] sm:$0xff]  ;;  %v165_v18 = vld [vmem:[%s973_s2 + $0x200] sm:$0xff]  ;;  %v175_v21 = vld [vmem:[%s973_s2 + $0x250] sm:$0xff] }
  0x1f   :  { %557 = vmatpush1.bf16.msra.mxu1 %v556_v14  ;;  %v607_v14 = vpack.c.bf16 %v150_v13, %v145_v12  ;;  %v170_v19 = vld [vmem:[%s973_s2 + $0x228] sm:$0xff]  ;;  %v180_v22 = vld [vmem:[%s973_s2 + $0x278] sm:$0xff] }
  0x20   :  { %529 = vmatpush3.bf16.msra.mxu0 %v528_v2  ;;  %559 = vmatprep.subr.bf16.mxu1 %v558_v17  ;;  %v120_v2 = vld [vmem:[%s973_s2 + $0x98] sm:$0xff]  ;;  %v616_v23 = vpack.c.bf16 %v180_v22, %v175_v21 }
  0x21   :  { %563 = vmatprep.subr.bf16.mxu0 %v562_v8  ;;  %v598_v6 = vpack.c.bf16 %v120_v2, %v115_v1  ;;  %v130_v8 = vld [vmem:[%s973_s2 + $0xe8] sm:$0xff] }
  0x22   :  { %v601_v9 = vpack.c.bf16 %v130_v8, %v125_v7 }
  0x23   :  { %469 = vmatmul.mubr.f32.vlgmr.msra.gmra.mrb[0].mxu0 %v14_v15  ;;  %561 = vmatpush1.bf16.msra.mxu1 %v560_v25  ;;  %v155_v15 = vld [vmem:[%s973_s2 + $0x1b0] sm:$0xff] }
  0x24   :  { %565 = vmatpush1.bf16.msra.mxu0 %v564_v16  ;;  %316 = vmatprep.mubr.f32.mxu0 %v623_v4  ;;  %v160_v16 = vld [vmem:[%s973_s2 + $0x1d8] sm:$0xff] }
  0x25   :  { %567 = vmatprep.subr.bf16.mxu0 %v566_v20  ;;  %594 = vmatprep.subr.bf16.mxu1 %v621_v0  ;;  %v610_v17 = vpack.c.bf16 %v160_v16, %v155_v15  ;;  %v613_v20 = vpack.c.bf16 %v170_v19, %v165_v18 }
  0x28   :  { %569 = vmatpush1.bf16.msra.mxu0 %v568_v26 }
  0x29   :  { %571 = vmatprep.subr.bf16.mxu0 %v570_v27 }
  0x2c   :  { %573 = vmatpush1.bf16.msra.mxu0 %v572_v32 }
  0x2d   :  { %575 = vmatprep.subr.bf16.mxu0 %v574_v33 }
  0x30   :  { %577 = vmatpush1.bf16.msra.mxu0 %v576_v38 }
  0x31   :  { %579 = vmatprep.subr.bf16.mxu0 %v578_v39 }
  0x34   :  { %581 = vmatpush1.bf16.msra.mxu0 %v580_v44 }
  0x35   :  { %583 = vmatprep.subr.bf16.mxu0 %v582_v45 }
  0x38   :  { %585 = vmatpush1.bf16.msra.mxu0 %v584_v50 }
  0x39   :  { %587 = vmatprep.subr.bf16.mxu0 %v586_v51 }
  0x3c   :  { %589 = vmatpush1.bf16.msra.mxu0 %v588_v56 }
  0x3d   :  { %591 = vmatprep.subr.bf16.mxu0 %v590_v57 }
  0x40   :  { %593 = vmatpush1.bf16.msra.mxu0 %v592_v60 }
  0xf6   :  { %v97_v3 = vpop.f32.mrb[0].mxu0 }
  0xf7   :  { %v470_v5 = vpop.f32.mrb[1].mxu0  ;;  %246 = vmatmul.mubr.f32.vlgmr.msra.gmra.mrb[0].mxu1 %v97_v3  ;;  %317 = vmatmul.mubr.f32.vlgmr.msra.gmra.mrb[2].mxu0 %v97_v3 }
  0xf8   :  { %596 = vmatpush3.bf16.msra.mxu1 %v595_v63  ;;  %503 = vmatprep.mubr.msk.f32.mxu1 %vm622_vm0, %v623_v4  ;;  %v140_v4 = vld [vmem:[%s973_s2 + $0x138] sm:$0xff] }
  0xf9   :  { %597 = vmatprep.subr.bf16.mxu1 %v621_v0  ;;  %v604_v11 = vpack.c.bf16 %v140_v4, %v135_v10 }
  0xfc   :  { %599 = vmatpush3.bf16.msra.mxu1 %v598_v6 }
  0xfd   :  { %600 = vmatprep.subr.bf16.mxu1 %v621_v0 }
 0x100   :  { %602 = vmatpush3.bf16.msra.mxu1 %v601_v9 }
 0x101   :  { %603 = vmatprep.subr.bf16.mxu1 %v621_v0 }
 0x104   :  { %605 = vmatpush3.bf16.msra.mxu1 %v604_v11 }
 0x105   :  { %606 = vmatprep.subr.bf16.mxu1 %v621_v0 }
 0x108   :  { %608 = vmatpush3.bf16.msra.mxu1 %v607_v14 }
 0x109   :  { %609 = vmatprep.subr.bf16.mxu1 %v621_v0 }
 0x10c   :  { %611 = vmatpush3.bf16.msra.mxu1 %v610_v17 }
 0x10d   :  { %612 = vmatprep.subr.bf16.mxu1 %v621_v0 }
 0x110   :  { %614 = vmatpush3.bf16.msra.mxu1 %v613_v20 }
 0x111   :  { %615 = vmatprep.subr.bf16.mxu1 %v621_v0 }
 0x114   :  { %617 = vmatpush3.bf16.msra.mxu1 %v616_v23 }
 0x117   :  { %504 = vmatmul.mubr.f32.vlgmr.msra.gmra.mrb[2].mxu1 %v97_v3 }
 0x1ca   :  { %v247_v24 = vpop.f32.mrb[0].mxu1  ;;  %v318_v25 = vpop.f32.mrb[2].mxu0 }
 0x1cb   :  { %393 = vst [vmem:[%s975_s3] sm:$0xff] %v247_v24  ;;  %395 = vst [vmem:[%s975_s3 + $0x10] sm:$0xff] %v318_v25  ;;  %v249_v26 = vpop.f32.mrb[1].mxu1  ;;  %v320_v27 = vpop.f32.mrb[3].mxu0 }
 0x1cc   :  { %394 = vst [vmem:[%s975_s3 + $0x8] sm:$0xff] %v249_v26  ;;  %396 = vst [vmem:[%s975_s3 + $0x18] sm:$0xff] %v320_v27 }
 0x1ea   :  { %v389_v0 = vpop.f32.mrb[2].mxu1 }
 0x1eb   :  { %397 = vst [vmem:[%s975_s3 + $0x20] sm:$0xff] %v389_v0  ;;  %v505_v28 = vpop.f32.mrb[3].mxu1 }

// kernel: tengcn_forward.11
= control target key start
LH: loop header
LB: loop body
LE: loop exit
PB: predicated region body
PF: predicated region fallthrough
CT: control target
= control target key end

     0   :  { %vm46_vm0 = vcmask 64512   ;;  %vm826_vm1 = vcmask 523264   ;;  %s1434_s2 = inlined_call_operand.vmem [shape: f32[8,8], index: 2, kind: input, shape index: {}]   ;;  %s1435_s1 = inlined_call_operand.vmem [shape: f32[128,8], index: 1, kind: input, shape index: {}]   ;;  %s1436_s0 = inlined_call_operand.vmem [shape: f32[128,128], index: 0, kind: input, shape index: {}]   ;;  %s1437_s4 = inlined_call_operand.vmem [shape: f32[8,8], index: 4, kind: input, shape index: {}]   ;;  %s1438_s6 = inlined_call_operand.vmem [shape: f32[8,64], index: 6, kind: input, shape index: {}]   ;;  %s1439_s3 = inlined_call_operand.vmem [shape: f32[1,8], index: 3, kind: input, shape index: {}]   ;;  %s1440_s5 = inlined_call_operand.vmem [shape: f32[1,8], index: 5, kind: input, shape index: {}]   ;;  %s1441_s7 = inlined_call_operand.vmem [shape: f32[1,64], index: 7, kind: input, shape index: {}]   ;;  %s1442_s8 = inlined_call_operand.vmem [shape: f32[128,64], index: 8, kind: output, shape index: {}]  }
   0x1   :  { %v45_v0 = vld [vmem:[%s1434_s2] sm:$0xff]  ;;  %v30_v2 = vld [vmem:[%s1435_s1 + $0x8] sm:$0xff]  ;;  %v31_v3 = vld [vmem:[%s1435_s1 + $0x10] sm:$0xff] }
   0x2   :  { %v29_v1 = vld [vmem:[%s1435_s1] sm:$0xff]  ;;  %981 = vmatprep.subr.mxu0 %v45_v0  ;;  %v32_v4 = vld [vmem:[%s1435_s1 + $0x18] sm:$0xff]  ;;  %v34_v6 = vld [vmem:[%s1435_s1 + $0x28] sm:$0xff] }
   0x3   :  { %983 = vmatprep.mubr.msk.f32.mxu0 %vm46_vm0, %v29_v1  ;;  %982 = vmatpush3.msra.mxu0 %v45_v0  ;;  %v33_v5 = vld [vmem:[%s1435_s1 + $0x20] sm:$0xff]  ;;  %v35_v7 = vld [vmem:[%s1435_s1 + $0x30] sm:$0xff]  ;;  %v36_v8 = vld [vmem:[%s1435_s1 + $0x38] sm:$0xff] }
   0x4   :  { %984 = vmatmul.mubr.msk.f32.vlgmr.msra.gmra.mrb[0].mxu0 %vm46_vm0, %v30_v2  ;;  %v37_v9 = vld [vmem:[%s1435_s1 + $0x40] sm:$0xff]  ;;  %v38_v10 = vld [vmem:[%s1435_s1 + $0x48] sm:$0xff]  ;;  %v39_v11 = vld [vmem:[%s1435_s1 + $0x50] sm:$0xff] }
   0x5   :  { %986 = vmatprep.mubr.msk.f32.mxu0 %vm46_vm0, %v31_v3  ;;  %v40_v12 = vld [vmem:[%s1435_s1 + $0x58] sm:$0xff]  ;;  %v41_v13 = vld [vmem:[%s1435_s1 + $0x60] sm:$0xff]  ;;  %v42_v14 = vld [vmem:[%s1435_s1 + $0x68] sm:$0xff] }
   0x6   :  { %v43_v15 = vld [vmem:[%s1435_s1 + $0x70] sm:$0xff]  ;;  %v44_v16 = vld [vmem:[%s1435_s1 + $0x78] sm:$0xff]  ;;  %v240_v17 = vld [vmem:[%s1436_s0] sm:$0xff] }
   0x7   :  { %v246_v18 = vld [vmem:[%s1436_s0 + $0x30] sm:$0xff]  ;;  %v408_v43 = vld [vmem:[%s1437_s4] sm:$0xff]  ;;  %v241_v44 = vld [vmem:[%s1436_s0 + $0x8] sm:$0xff] }
   0x8   :  { %987 = vmatmul.mubr.msk.f32.gmra.mrb[2].mxu0 %vm46_vm0, %v32_v4  ;;  %1048 = vmatprep.mubr.f32.mxu1 %v246_v18  ;;  %v247_v45 = vld [vmem:[%s1436_s0 + $0x38] sm:$0xff]  ;;  %v242_v46 = vld [vmem:[%s1436_s0 + $0x10] sm:$0xff]  ;;  %v248_v47 = vld [vmem:[%s1436_s0 + $0x40] sm:$0xff] }
   0x9   :  { %989 = vmatprep.mubr.msk.f32.mxu0 %vm46_vm0, %v33_v5  ;;  %v243_v48 = vld [vmem:[%s1436_s0 + $0x18] sm:$0xff]  ;;  %v249_v49 = vld [vmem:[%s1436_s0 + $0x48] sm:$0xff]  ;;  %v244_v50 = vld [vmem:[%s1436_s0 + $0x20] sm:$0xff] }
   0xa   :  { %v250_v51 = vld [vmem:[%s1436_s0 + $0x50] sm:$0xff]  ;;  %v245_v52 = vld [vmem:[%s1436_s0 + $0x28] sm:$0xff]  ;;  %v251_v53 = vld [vmem:[%s1436_s0 + $0x58] sm:$0xff] }
   0xb   :  { %v252_v54 = vld [vmem:[%s1436_s0 + $0x60] sm:$0xff]  ;;  %v253_v55 = vld [vmem:[%s1436_s0 + $0x68] sm:$0xff]  ;;  %v254_v56 = vld [vmem:[%s1436_s0 + $0x70] sm:$0xff] }
   0xc   :  { %990 = vmatmul.mubr.msk.f32.gmra.mrb[4].mxu0 %vm46_vm0, %v34_v6  ;;  %v255_v57 = vld [vmem:[%s1436_s0 + $0x78] sm:$0xff]  ;;  %v625_v58 = vld [vmem:[%s1438_s6] sm:$0xff] }
   0xd   :  { %992 = vmatprep.mubr.msk.f32.mxu0 %vm46_vm0, %v35_v7  ;;  %v863_v59 = vld [vmem:[%s1439_s3] ss:$0 sm:$0xff] }
  0x10   :  { %993 = vmatmul.mubr.msk.f32.gmra.mrb[6].mxu0 %vm46_vm0, %v36_v8 }
  0x11   :  { %995 = vmatprep.mubr.msk.f32.mxu0 %vm46_vm0, %v37_v9 }
  0x14   :  { %996 = vmatmul.mubr.msk.f32.gmra.mrb[8].mxu0 %vm46_vm0, %v38_v10 }
  0x15   :  { %998 = vmatprep.mubr.msk.f32.mxu0 %vm46_vm0, %v39_v11 }
  0x18   :  { %999 = vmatmul.mubr.msk.f32.gmra.mrb[10].mxu0 %vm46_vm0, %v40_v12 }
  0x19   :  { %1001 = vmatprep.mubr.msk.f32.mxu0 %vm46_vm0, %v41_v13 }
  0x1c   :  { %1002 = vmatmul.mubr.msk.f32.gmra.mrb[12].mxu0 %vm46_vm0, %v42_v14 }
  0x1d   :  { %1004 = vmatprep.mubr.msk.f32.mxu0 %vm46_vm0, %v43_v15 }
  0x20   :  { %1005 = vmatmul.mubr.msk.f32.gmra.mrb[14].mxu0 %vm46_vm0, %v44_v16 }
  0x21   :  { %1039 = vmatprep.mubr.f32.mxu0 %v240_v17 }
  0xd7   :  { %v985_v19 = vpop.f32.mrb[0].mxu0 }
  0xd8   :  { %v161_v20 = vpop.f32.mrb[1].mxu0 }
  0xd9   :  { %v1115_v21 = vpack.c.bf16 %v985_v19, %v161_v20 }
  0xdb   :  { %v988_v22 = vpop.f32.mrb[2].mxu0  ;;  %1116 = vmatprep.subr.bf16.mxu0 %v1115_v21  ;;  %1147 = vmatprep.subr.bf16.mxu1 %v1115_v21 }
  0xdc   :  { %v171_v23 = vpop.f32.mrb[3].mxu0  ;;  %1118 = vmatpush3.bf16.msra.mxu0 %v1115_v21  ;;  %1155 = vmatpush3.bf16.msra.mxu1 %v1115_v21 }
  0xdd   :  { %v1119_v24 = vpack.c.bf16 %v988_v22, %v171_v23 }
  0xdf   :  { %v991_v25 = vpop.f32.mrb[4].mxu0  ;;  %1120 = vmatprep.subr.bf16.mxu0 %v1119_v24  ;;  %1148 = vmatprep.subr.bf16.mxu1 %v1119_v24 }
  0xe0   :  { %v181_v26 = vpop.f32.mrb[5].mxu0  ;;  %1122 = vmatpush3.bf16.msra.mxu0 %v1119_v24  ;;  %1156 = vmatpush3.bf16.msra.mxu1 %v1119_v24 }
  0xe1   :  { %v1123_v27 = vpack.c.bf16 %v991_v25, %v181_v26 }
  0xe3   :  { %v994_v28 = vpop.f32.mrb[6].mxu0  ;;  %1124 = vmatprep.subr.bf16.mxu0 %v1123_v27  ;;  %1149 = vmatprep.subr.bf16.mxu1 %v1123_v27 }
  0xe4   :  { %v191_v29 = vpop.f32.mrb[7].mxu0  ;;  %1126 = vmatpush3.bf16.msra.mxu0 %v1123_v27  ;;  %1157 = vmatpush3.bf16.msra.mxu1 %v1123_v27 }
  0xe5   :  { %v1127_v30 = vpack.c.bf16 %v994_v28, %v191_v29  ;;  %v864_v28 = vld [vmem:[%s1440_s5] ss:$0 sm:$0xff] }
  0xe7   :  { %v997_v31 = vpop.f32.mrb[8].mxu0  ;;  %1128 = vmatprep.subr.bf16.mxu0 %v1127_v30  ;;  %1150 = vmatprep.subr.bf16.mxu1 %v1127_v30 }
  0xe8   :  { %v201_v32 = vpop.f32.mrb[9].mxu0  ;;  %1130 = vmatpush3.bf16.msra.mxu0 %v1127_v30  ;;  %1158 = vmatpush3.bf16.msra.mxu1 %v1127_v30 }
  0xe9   :  { %v1131_v33 = vpack.c.bf16 %v997_v31, %v201_v32 }
  0xeb   :  { %v1000_v34 = vpop.f32.mrb[10].mxu0  ;;  %1132 = vmatprep.subr.bf16.mxu0 %v1131_v33  ;;  %1151 = vmatprep.subr.bf16.mxu1 %v1131_v33 }
  0xec   :  { %v211_v35 = vpop.f32.mrb[11].mxu0  ;;  %1134 = vmatpush3.bf16.msra.mxu0 %v1131_v33  ;;  %1159 = vmatpush3.bf16.msra.mxu1 %v1131_v33 }
  0xed   :  { %v1135_v36 = vpack.c.bf16 %v1000_v34, %v211_v35 }
  0xef   :  { %v1003_v37 = vpop.f32.mrb[12].mxu0  ;;  %1136 = vmatprep.subr.bf16.mxu0 %v1135_v36  ;;  %1152 = vmatprep.subr.bf16.mxu1 %v1135_v36 }
  0xf0   :  { %v221_v38 = vpop.f32.mrb[13].mxu0  ;;  %1138 = vmatpush3.bf16.msra.mxu0 %v1135_v36  ;;  %1160 = vmatpush3.bf16.msra.mxu1 %v1135_v36 }
  0xf1   :  { %v1139_v39 = vpack.c.bf16 %v1003_v37, %v221_v38 }
  0xf3   :  { %v1006_v40 = vpop.f32.mrb[14].mxu0  ;;  %1140 = vmatprep.subr.bf16.mxu0 %v1139_v39  ;;  %1153 = vmatprep.subr.bf16.mxu1 %v1139_v39 }
  0xf4   :  { %v231_v41 = vpop.f32.mrb[15].mxu0  ;;  %1142 = vmatpush3.bf16.msra.mxu0 %v1139_v39  ;;  %1161 = vmatpush3.bf16.msra.mxu1 %v1139_v39 }
  0xf5   :  { %v1143_v42 = vpack.c.bf16 %v1006_v40, %v231_v41 }
  0xf7   :  { %1144 = vmatprep.subr.bf16.mxu0 %v1143_v42  ;;  %1154 = vmatprep.subr.bf16.mxu1 %v1143_v42 }
  0xf8   :  { %1146 = vmatpush3.bf16.msra.mxu0 %v1143_v42  ;;  %1162 = vmatpush3.bf16.msra.mxu1 %v1143_v42 }
  0xf9   :  { %1063 = vmatprep.subr.mxu0 %v408_v43  ;;  %1089 = vmatprep.subr.mxu1 %v625_v58 }
  0xfb   :  { %1040 = vmatmul.mubr.f32.vlgmr.msra.gmra.mrb[16].mxu0 %v241_v44  ;;  %1049 = vmatmul.mubr.f32.vlgmr.msra.gmra.mrb[0].mxu1 %v247_v45 }
  0xfc   :  { %1042 = vmatprep.mubr.f32.mxu0 %v242_v46  ;;  %1051 = vmatprep.mubr.f32.mxu1 %v248_v47 }
  0xfd   :  { %1064 = vmatpush3.msra.mxu0 %v408_v43  ;;  %1090 = vmatpush3.msra.mxu1 %v625_v58 }
  0xff   :  { %1043 = vmatmul.mubr.f32.gmra.mrb[18].mxu0 %v243_v48  ;;  %1052 = vmatmul.mubr.f32.gmra.mrb[2].mxu1 %v249_v49 }
 0x100   :  { %1045 = vmatprep.mubr.f32.mxu0 %v244_v50  ;;  %1054 = vmatprep.mubr.f32.mxu1 %v250_v51 }
 0x103   :  { %1046 = vmatmul.mubr.f32.gmra.mrb[20].mxu0 %v245_v52  ;;  %1055 = vmatmul.mubr.f32.gmra.mrb[4].mxu1 %v251_v53 }
 0x104   :  { %1057 = vmatprep.mubr.f32.mxu1 %v252_v54 }
 0x107   :  { %1058 = vmatmul.mubr.f32.gmra.mrb[6].mxu1 %v253_v55 }
 0x108   :  { %1060 = vmatprep.mubr.f32.mxu1 %v254_v56 }
 0x10b   :  { %1061 = vmatmul.mubr.f32.gmra.mrb[8].mxu1 %v255_v57 }
 0x1ce   :  { %v1041_v60 = vpop.f32.mrb[16].mxu0  ;;  %v1050_v61 = vpop.f32.mrb[0].mxu1 }
 0x1cf   :  { %v329_v62 = vpop.f32.mrb[17].mxu0  ;;  %v359_v63 = vpop.f32.mrb[1].mxu1  ;;  %v335_v1 = vadd.f32 %v1041_v60, %v863_v59  ;;  %v365_v18 = vadd.f32 %v1050_v61, %v863_v59 }
 0x1d0   :  { %v330_v0 = vadd.f32 %v863_v59, %v329_v62  ;;  %v360_v13 = vadd.f32 %v863_v59, %v359_v63 }
 0x1d2   :  { %v1044_v2 = vpop.f32.mrb[18].mxu0  ;;  %1065 = vmatprep.mubr.msk.f32.mxu0 %vm46_vm0, %v330_v0  ;;  %v1053_v3 = vpop.f32.mrb[2].mxu1 }
 0x1d3   :  { %v339_v4 = vpop.f32.mrb[19].mxu0  ;;  %1066 = vmatmul.mubr.msk.f32.vlgmr.msra.gmra.mrb[22].mxu0 %vm46_vm0, %v335_v1  ;;  %v369_v5 = vpop.f32.mrb[3].mxu1  ;;  %v345_v7 = vadd.f32 %v1044_v2, %v863_v59  ;;  %v375_v22 = vadd.f32 %v1053_v3, %v863_v59 }
 0x1d4   :  { %v340_v6 = vadd.f32 %v863_v59, %v339_v4  ;;  %v370_v17 = vadd.f32 %v863_v59, %v369_v5 }
 0x1d6   :  { %v1047_v8 = vpop.f32.mrb[20].mxu0  ;;  %1068 = vmatprep.mubr.msk.f32.mxu0 %vm46_vm0, %v340_v6  ;;  %v1056_v9 = vpop.f32.mrb[4].mxu1 }
 0x1d7   :  { %v349_v10 = vpop.f32.mrb[21].mxu0  ;;  %1069 = vmatmul.mubr.msk.f32.gmra.mrb[24].mxu0 %vm46_vm0, %v345_v7  ;;  %v379_v11 = vpop.f32.mrb[5].mxu1  ;;  %v355_v14 = vadd.f32 %v1047_v8, %v863_v59  ;;  %v385_v24 = vadd.f32 %v1056_v9, %v863_v59 }
 0x1d8   :  { %v350_v12 = vadd.f32 %v863_v59, %v349_v10  ;;  %v380_v21 = vadd.f32 %v863_v59, %v379_v11 }
 0x1da   :  { %1071 = vmatprep.mubr.msk.f32.mxu0 %vm46_vm0, %v350_v12  ;;  %v1059_v15 = vpop.f32.mrb[6].mxu1 }
 0x1db   :  { %1072 = vmatmul.mubr.msk.f32.gmra.mrb[26].mxu0 %vm46_vm0, %v355_v14  ;;  %v389_v16 = vpop.f32.mrb[7].mxu1  ;;  %v395_v26 = vadd.f32 %v1059_v15, %v863_v59 }
 0x1dc   :  { %1074 = vmatprep.mubr.msk.f32.mxu0 %vm46_vm0, %v360_v13  ;;  %v390_v23 = vadd.f32 %v863_v59, %v389_v16  ;;  %v881_v13 = vld [vmem:[%s1441_s7] ss:$0 sm:$0xff] }
 0x1de   :  { %v1062_v19 = vpop.f32.mrb[8].mxu1 }
 0x1df   :  { %1075 = vmatmul.mubr.msk.f32.gmra.mrb[28].mxu0 %vm46_vm0, %v365_v18  ;;  %v399_v20 = vpop.f32.mrb[9].mxu1  ;;  %v405_v27 = vadd.f32 %v1062_v19, %v863_v59 }
 0x1e0   :  { %1077 = vmatprep.mubr.msk.f32.mxu0 %vm46_vm0, %v370_v17  ;;  %v400_v25 = vadd.f32 %v863_v59, %v399_v20 }
 0x1e3   :  { %1078 = vmatmul.mubr.msk.f32.gmra.mrb[30].mxu0 %vm46_vm0, %v375_v22 }
 0x1e4   :  { %1080 = vmatprep.mubr.msk.f32.mxu0 %vm46_vm0, %v380_v21 }
 0x1e7   :  { %1081 = vmatmul.mubr.msk.f32.gmra.mrb[32].mxu0 %vm46_vm0, %v385_v24 }
 0x1e8   :  { %1083 = vmatprep.mubr.msk.f32.mxu0 %vm46_vm0, %v390_v23 }
 0x1eb   :  { %1084 = vmatmul.mubr.msk.f32.gmra.mrb[34].mxu0 %vm46_vm0, %v395_v26 }
 0x1ec   :  { %1086 = vmatprep.mubr.msk.f32.mxu0 %vm46_vm0, %v400_v25 }
 0x1ef   :  { %1087 = vmatmul.mubr.msk.f32.gmra.mrb[36].mxu0 %vm46_vm0, %v405_v27 }
 0x2a6   :  { %v1067_v29 = vpop.f32.mrb[22].mxu0 }
 0x2a7   :  { %v536_v30 = vadd.f32 %v1067_v29, %v864_v28  ;;  %v530_v31 = vpop.f32.mrb[23].mxu0 }
 0x2a8   :  { %v531_v32 = vadd.f32 %v864_v28, %v530_v31 }
 0x2a9   :  { %v610_v35 = vmax.f32 %v536_v30, 0.0 }
 0x2aa   :  { %v609_v33 = vmax.f32 %v531_v32, 0.0  ;;  %v1070_v34 = vpop.f32.mrb[24].mxu0 }
 0x2ab   :  { %v546_v36 = vadd.f32 %v1070_v34, %v864_v28  ;;  %v540_v37 = vpop.f32.mrb[25].mxu0 }
 0x2ac   :  { %v541_v38 = vadd.f32 %v864_v28, %v540_v37  ;;  %1091 = vmatprep.mubr.msk.f32.mxu1 %vm46_vm0, %v609_v33 }
 0x2ad   :  { %1092 = vmatmul.mubr.msk.f32.vlgmr.msra.gmra.mrb[10].mxu1 %vm46_vm0, %v610_v35  ;;  %v612_v41 = vmax.f32 %v546_v36, 0.0 }
 0x2ae   :  { %v611_v39 = vmax.f32 %v541_v38, 0.0  ;;  %v1073_v40 = vpop.f32.mrb[26].mxu0 }
 0x2af   :  { %v556_v42 = vadd.f32 %v1073_v40, %v864_v28  ;;  %v550_v43 = vpop.f32.mrb[27].mxu0 }
 0x2b0   :  { %v551_v44 = vadd.f32 %v864_v28, %v550_v43  ;;  %1094 = vmatprep.mubr.msk.f32.mxu1 %vm46_vm0, %v611_v39 }
 0x2b1   :  { %1095 = vmatmul.mubr.msk.f32.gmra.mrb[12].mxu1 %vm46_vm0, %v612_v41  ;;  %v614_v47 = vmax.f32 %v556_v42, 0.0 }
 0x2b2   :  { %v613_v45 = vmax.f32 %v551_v44, 0.0  ;;  %v1076_v46 = vpop.f32.mrb[28].mxu0 }
 0x2b3   :  { %v566_v48 = vadd.f32 %v1076_v46, %v864_v28  ;;  %v560_v49 = vpop.f32.mrb[29].mxu0 }
 0x2b4   :  { %v561_v50 = vadd.f32 %v864_v28, %v560_v49  ;;  %1097 = vmatprep.mubr.msk.f32.mxu1 %vm46_vm0, %v613_v45 }
 0x2b5   :  { %1098 = vmatmul.mubr.msk.f32.gmra.mrb[14].mxu1 %vm46_vm0, %v614_v47  ;;  %v616_v53 = vmax.f32 %v566_v48, 0.0 }
 0x2b6   :  { %v615_v51 = vmax.f32 %v561_v50, 0.0  ;;  %v1079_v52 = vpop.f32.mrb[30].mxu0 }
 0x2b7   :  { %v576_v54 = vadd.f32 %v1079_v52, %v864_v28  ;;  %v570_v55 = vpop.f32.mrb[31].mxu0 }
 0x2b8   :  { %v571_v56 = vadd.f32 %v864_v28, %v570_v55  ;;  %1100 = vmatprep.mubr.msk.f32.mxu1 %vm46_vm0, %v615_v51 }
 0x2b9   :  { %1101 = vmatmul.mubr.msk.f32.gmra.mrb[16].mxu1 %vm46_vm0, %v616_v53  ;;  %v618_v59 = vmax.f32 %v576_v54, 0.0 }
 0x2ba   :  { %v617_v57 = vmax.f32 %v571_v56, 0.0  ;;  %v1082_v58 = vpop.f32.mrb[32].mxu0 }
 0x2bb   :  { %v586_v60 = vadd.f32 %v1082_v58, %v864_v28  ;;  %v580_v61 = vpop.f32.mrb[33].mxu0 }
 0x2bc   :  { %v581_v62 = vadd.f32 %v864_v28, %v580_v61  ;;  %1103 = vmatprep.mubr.msk.f32.mxu1 %vm46_vm0, %v617_v57 }
 0x2bd   :  { %1104 = vmatmul.mubr.msk.f32.gmra.mrb[18].mxu1 %vm46_vm0, %v618_v59  ;;  %v620_v1 = vmax.f32 %v586_v60, 0.0 }
 0x2be   :  { %v619_v63 = vmax.f32 %v581_v62, 0.0  ;;  %v1085_v0 = vpop.f32.mrb[34].mxu0 }
 0x2bf   :  { %v596_v2 = vadd.f32 %v1085_v0, %v864_v28  ;;  %v590_v3 = vpop.f32.mrb[35].mxu0 }
 0x2c0   :  { %v591_v4 = vadd.f32 %v864_v28, %v590_v3  ;;  %1106 = vmatprep.mubr.msk.f32.mxu1 %vm46_vm0, %v619_v63 }
 0x2c1   :  { %1107 = vmatmul.mubr.msk.f32.gmra.mrb[20].mxu1 %vm46_vm0, %v620_v1  ;;  %v622_v7 = vmax.f32 %v596_v2, 0.0 }
 0x2c2   :  { %v621_v5 = vmax.f32 %v591_v4, 0.0  ;;  %v1088_v6 = vpop.f32.mrb[36].mxu0 }
 0x2c3   :  { %v606_v8 = vadd.f32 %v1088_v6, %v864_v28  ;;  %v600_v9 = vpop.f32.mrb[37].mxu0 }
 0x2c4   :  { %v601_v10 = vadd.f32 %v864_v28, %v600_v9  ;;  %1109 = vmatprep.mubr.msk.f32.mxu1 %vm46_vm0, %v621_v5 }
 0x2c5   :  { %1110 = vmatmul.mubr.msk.f32.gmra.mrb[22].mxu1 %vm46_vm0, %v622_v7  ;;  %v624_v12 = vmax.f32 %v606_v8, 0.0 }
 0x2c6   :  { %v623_v11 = vmax.f32 %v601_v10, 0.0 }
 0x2c8   :  { %1112 = vmatprep.mubr.msk.f32.mxu1 %vm46_vm0, %v623_v11 }
 0x2c9   :  { %1113 = vmatmul.mubr.msk.f32.gmra.mrb[24].mxu1 %vm46_vm0, %v624_v12 }
 0x380   :  { %v1093_v14 = vpop.f32.mrb[10].mxu1 }
 0x381   :  { %v753_v15 = vadd.f32 %v1093_v14, %v881_v13  ;;  %v747_v16 = vpop.f32.mrb[11].mxu1 }
 0x382   :  { %v748_v17 = vadd.f32 %v881_v13, %v747_v16 }
 0x383   :  { %828 = vst.msk [vmem:[%s1442_s8 + $0x8] sm:$0xff] %vm826_vm1, %v753_v15 }
 0x384   :  { %827 = vst.msk [vmem:[%s1442_s8] sm:$0xff] %vm826_vm1, %v748_v17  ;;  %v1096_v18 = vpop.f32.mrb[12].mxu1 }
 0x385   :  { %v763_v19 = vadd.f32 %v1096_v18, %v881_v13  ;;  %v757_v20 = vpop.f32.mrb[13].mxu1 }
 0x386   :  { %v758_v21 = vadd.f32 %v881_v13, %v757_v20 }
 0x387   :  { %830 = vst.msk [vmem:[%s1442_s8 + $0x18] sm:$0xff] %vm826_vm1, %v763_v19 }
 0x388   :  { %829 = vst.msk [vmem:[%s1442_s8 + $0x10] sm:$0xff] %vm826_vm1, %v758_v21  ;;  %v1099_v22 = vpop.f32.mrb[14].mxu1 }
 0x389   :  { %v773_v23 = vadd.f32 %v1099_v22, %v881_v13  ;;  %v767_v24 = vpop.f32.mrb[15].mxu1 }
 0x38a   :  { %v768_v25 = vadd.f32 %v881_v13, %v767_v24 }
 0x38b   :  { %832 = vst.msk [vmem:[%s1442_s8 + $0x28] sm:$0xff] %vm826_vm1, %v773_v23 }
 0x38c   :  { %831 = vst.msk [vmem:[%s1442_s8 + $0x20] sm:$0xff] %vm826_vm1, %v768_v25  ;;  %v1102_v26 = vpop.f32.mrb[16].mxu1 }
 0x38d   :  { %v783_v27 = vadd.f32 %v1102_v26, %v881_v13  ;;  %v777_v28 = vpop.f32.mrb[17].mxu1 }
 0x38e   :  { %v778_v29 = vadd.f32 %v881_v13, %v777_v28 }
 0x38f   :  { %834 = vst.msk [vmem:[%s1442_s8 + $0x38] sm:$0xff] %vm826_vm1, %v783_v27 }
 0x390   :  { %833 = vst.msk [vmem:[%s1442_s8 + $0x30] sm:$0xff] %vm826_vm1, %v778_v29  ;;  %v1105_v30 = vpop.f32.mrb[18].mxu1 }
 0x391   :  { %v793_v31 = vadd.f32 %v1105_v30, %v881_v13  ;;  %v787_v32 = vpop.f32.mrb[19].mxu1 }
 0x392   :  { %v788_v33 = vadd.f32 %v881_v13, %v787_v32 }
 0x393   :  { %836 = vst.msk [vmem:[%s1442_s8 + $0x48] sm:$0xff] %vm826_vm1, %v793_v31 }
 0x394   :  { %835 = vst.msk [vmem:[%s1442_s8 + $0x40] sm:$0xff] %vm826_vm1, %v788_v33  ;;  %v1108_v34 = vpop.f32.mrb[20].mxu1 }
 0x395   :  { %v803_v35 = vadd.f32 %v1108_v34, %v881_v13  ;;  %v797_v36 = vpop.f32.mrb[21].mxu1 }
 0x396   :  { %v798_v37 = vadd.f32 %v881_v13, %v797_v36 }
 0x397   :  { %838 = vst.msk [vmem:[%s1442_s8 + $0x58] sm:$0xff] %vm826_vm1, %v803_v35 }
 0x398   :  { %837 = vst.msk [vmem:[%s1442_s8 + $0x50] sm:$0xff] %vm826_vm1, %v798_v37  ;;  %v1111_v38 = vpop.f32.mrb[22].mxu1 }
 0x399   :  { %v813_v39 = vadd.f32 %v1111_v38, %v881_v13  ;;  %v807_v40 = vpop.f32.mrb[23].mxu1 }
 0x39a   :  { %v808_v41 = vadd.f32 %v881_v13, %v807_v40 }
 0x39b   :  { %840 = vst.msk [vmem:[%s1442_s8 + $0x68] sm:$0xff] %vm826_vm1, %v813_v39 }
 0x39c   :  { %839 = vst.msk [vmem:[%s1442_s8 + $0x60] sm:$0xff] %vm826_vm1, %v808_v41  ;;  %v1114_v42 = vpop.f32.mrb[24].mxu1 }
 0x39d   :  { %v823_v43 = vadd.f32 %v1114_v42, %v881_v13  ;;  %v817_v44 = vpop.f32.mrb[25].mxu1 }
 0x39e   :  { %v818_v45 = vadd.f32 %v881_v13, %v817_v44 }
 0x39f   :  { %842 = vst.msk [vmem:[%s1442_s8 + $0x78] sm:$0xff] %vm826_vm1, %v823_v43 }
 0x3a0   :  { %841 = vst.msk [vmem:[%s1442_s8 + $0x70] sm:$0xff] %vm826_vm1, %v818_v45 }

// kernel: tengcn_forward.12
= control target key start
LH: loop header
LB: loop body
LE: loop exit
PB: predicated region body
PF: predicated region fallthrough
CT: control target
= control target key end

     0   :  { %vm53_vm0 = vcmask 523264   ;;  %vm423_vm1 = vcmask 64512   ;;  %s1499_s2 = inlined_call_operand.vmem [shape: f32[64,8], index: 2, kind: input, shape index: {}]   ;;  %s1500_s1 = inlined_call_operand.vmem [shape: f32[128,64], index: 1, kind: input, shape index: {}]   ;;  %s1501_s0 = inlined_call_operand.vmem [shape: f32[128,128], index: 0, kind: input, shape index: {}]   ;;  %s1502_s4 = inlined_call_operand.vmem [shape: f32[8,8], index: 4, kind: input, shape index: {}]   ;;  %s1503_s6 = inlined_call_operand.vmem [shape: f32[8,64], index: 6, kind: input, shape index: {}]   ;;  %s1504_s3 = inlined_call_operand.vmem [shape: f32[1,8], index: 3, kind: input, shape index: {}]   ;;  %s1505_s5 = inlined_call_operand.vmem [shape: f32[1,8], index: 5, kind: input, shape index: {}]   ;;  %s1506_s7 = inlined_call_operand.vmem [shape: f32[1,64], index: 7, kind: input, shape index: {}]   ;;  %s1507_s8 = inlined_call_operand.vmem [shape: f32[128,64], index: 8, kind: output, shape index: {}]  }
   0x1   :  { %v45_v0 = vld [vmem:[%s1499_s2] sm:$0xff]  ;;  %v46_v1 = vld [vmem:[%s1499_s2 + $0x8] sm:$0xff]  ;;  %v47_v2 = vld [vmem:[%s1499_s2 + $0x10] sm:$0xff] }
   0x2   :  { %v1143_v3 = vpack.c.bf16 %v46_v1, %v45_v0  ;;  %v48_v4 = vld [vmem:[%s1499_s2 + $0x18] sm:$0xff]  ;;  %v49_v6 = vld [vmem:[%s1499_s2 + $0x20] sm:$0xff]  ;;  %v50_v7 = vld [vmem:[%s1499_s2 + $0x28] sm:$0xff] }
   0x3   :  { %v1147_v5 = vpack.c.bf16 %v48_v4, %v47_v2  ;;  %v29_v8 = vld [vmem:[%s1500_s1] sm:$0xff]  ;;  %v1151_v9 = vpack.c.bf16 %v50_v7, %v49_v6  ;;  %v51_v10 = vld [vmem:[%s1499_s2 + $0x30] sm:$0xff]  ;;  %v52_v11 = vld [vmem:[%s1499_s2 + $0x38] sm:$0xff] }
   0x4   :  { %1144 = vmatprep.subr.bf16.mxu0 %v1143_v3  ;;  %1011 = vmatprep.mubr.msk.f32.mxu0 %vm53_vm0, %v29_v8  ;;  %v1155_v12 = vpack.c.bf16 %v52_v11, %v51_v10  ;;  %v30_v13 = vld [vmem:[%s1500_s1 + $0x8] sm:$0xff]  ;;  %v31_v14 = vld [vmem:[%s1500_s1 + $0x10] sm:$0xff]  ;;  %v32_v15 = vld [vmem:[%s1500_s1 + $0x18] sm:$0xff] }
   0x5   :  { %1146 = vmatpush3.bf16.msra.mxu0 %v1143_v3  ;;  %v33_v16 = vld [vmem:[%s1500_s1 + $0x20] sm:$0xff]  ;;  %v34_v17 = vld [vmem:[%s1500_s1 + $0x28] sm:$0xff]  ;;  %v35_v18 = vld [vmem:[%s1500_s1 + $0x30] sm:$0xff] }
   0x6   :  { %1148 = vmatprep.subr.bf16.mxu0 %v1147_v5  ;;  %v36_v19 = vld [vmem:[%s1500_s1 + $0x38] sm:$0xff]  ;;  %v37_v20 = vld [vmem:[%s1500_s1 + $0x40] sm:$0xff]  ;;  %v38_v21 = vld [vmem:[%s1500_s1 + $0x48] sm:$0xff] }
   0x7   :  { %v39_v22 = vld [vmem:[%s1500_s1 + $0x50] sm:$0xff]  ;;  %v40_v23 = vld [vmem:[%s1500_s1 + $0x58] sm:$0xff]  ;;  %v41_v24 = vld [vmem:[%s1500_s1 + $0x60] sm:$0xff] }
   0x8   :  { %v42_v25 = vld [vmem:[%s1500_s1 + $0x68] sm:$0xff]  ;;  %v43_v26 = vld [vmem:[%s1500_s1 + $0x70] sm:$0xff]  ;;  %v44_v27 = vld [vmem:[%s1500_s1 + $0x78] sm:$0xff] }
   0x9   :  { %1150 = vmatpush3.bf16.msra.mxu0 %v1147_v5  ;;  %v247_v28 = vld [vmem:[%s1501_s0] sm:$0xff]  ;;  %v248_v55 = vld [vmem:[%s1501_s0 + $0x8] sm:$0xff]  ;;  %v249_v57 = vld [vmem:[%s1501_s0 + $0x10] sm:$0xff] }
   0xa   :  { %1152 = vmatprep.subr.bf16.mxu0 %v1151_v9  ;;  %v251_v29 = vld [vmem:[%s1501_s0 + $0x20] sm:$0xff]  ;;  %v252_v56 = vld [vmem:[%s1501_s0 + $0x28] sm:$0xff]  ;;  %v253_v58 = vld [vmem:[%s1501_s0 + $0x30] sm:$0xff] }
   0xb   :  { %1073 = vmatprep.mubr.f32.mxu1 %v251_v29  ;;  %v415_v54 = vld [vmem:[%s1502_s4] sm:$0xff]  ;;  %v250_v59 = vld [vmem:[%s1501_s0 + $0x18] sm:$0xff]  ;;  %v256_v62 = vld [vmem:[%s1501_s0 + $0x48] sm:$0xff] }
   0xc   :  { %v254_v60 = vld [vmem:[%s1501_s0 + $0x38] sm:$0xff]  ;;  %v255_v61 = vld [vmem:[%s1501_s0 + $0x40] sm:$0xff]  ;;  %v257_v63 = vld [vmem:[%s1501_s0 + $0x50] sm:$0xff] }
   0xd   :  { %1154 = vmatpush3.bf16.msra.mxu0 %v1151_v9  ;;  %v258_v0 = vld [vmem:[%s1501_s0 + $0x58] sm:$0xff]  ;;  %v259_v1 = vld [vmem:[%s1501_s0 + $0x60] sm:$0xff]  ;;  %v260_v2 = vld [vmem:[%s1501_s0 + $0x68] sm:$0xff] }
   0xe   :  { %1156 = vmatprep.subr.bf16.mxu0 %v1155_v12  ;;  %v261_v3 = vld [vmem:[%s1501_s0 + $0x70] sm:$0xff]  ;;  %v262_v4 = vld [vmem:[%s1501_s0 + $0x78] sm:$0xff]  ;;  %v633_v5 = vld [vmem:[%s1503_s6] sm:$0xff] }
   0xf   :  { %v870_v6 = vld [vmem:[%s1504_s3] ss:$0 sm:$0xff] }
  0x11   :  { %1158 = vmatpush3.bf16.msra.mxu0 %v1155_v12 }
  0x14   :  { %1012 = vmatmul.mubr.msk.f32.vlgmr.msra.gmra.mrb[0].mxu0 %vm53_vm0, %v30_v13 }
  0x15   :  { %1014 = vmatprep.mubr.msk.f32.mxu0 %vm53_vm0, %v31_v14 }
  0x18   :  { %1015 = vmatmul.mubr.msk.f32.gmra.mrb[2].mxu0 %vm53_vm0, %v32_v15 }
  0x19   :  { %1017 = vmatprep.mubr.msk.f32.mxu0 %vm53_vm0, %v33_v16 }
  0x1c   :  { %1018 = vmatmul.mubr.msk.f32.gmra.mrb[4].mxu0 %vm53_vm0, %v34_v17 }
  0x1d   :  { %1020 = vmatprep.mubr.msk.f32.mxu0 %vm53_vm0, %v35_v18 }
  0x20   :  { %1021 = vmatmul.mubr.msk.f32.gmra.mrb[6].mxu0 %vm53_vm0, %v36_v19 }
  0x21   :  { %1023 = vmatprep.mubr.msk.f32.mxu0 %vm53_vm0, %v37_v20 }
  0x24   :  { %1024 = vmatmul.mubr.msk.f32.gmra.mrb[8].mxu0 %vm53_vm0, %v38_v21 }
  0x25   :  { %1026 = vmatprep.mubr.msk.f32.mxu0 %vm53_vm0, %v39_v22 }
  0x28   :  { %1027 = vmatmul.mubr.msk.f32.gmra.mrb[10].mxu0 %vm53_vm0, %v40_v23 }
  0x29   :  { %1029 = vmatprep.mubr.msk.f32.mxu0 %vm53_vm0, %v41_v24 }
  0x2c   :  { %1030 = vmatmul.mubr.msk.f32.gmra.mrb[12].mxu0 %vm53_vm0, %v42_v25 }
  0x2d   :  { %1032 = vmatprep.mubr.msk.f32.mxu0 %vm53_vm0, %v43_v26 }
  0x30   :  { %1033 = vmatmul.mubr.msk.f32.gmra.mrb[14].mxu0 %vm53_vm0, %v44_v27 }
  0x31   :  { %1067 = vmatprep.mubr.f32.mxu0 %v247_v28 }
  0xe7   :  { %v1013_v30 = vpop.f32.mrb[0].mxu0 }
  0xe8   :  { %v168_v31 = vpop.f32.mrb[1].mxu0 }
  0xe9   :  { %v1159_v32 = vpack.c.bf16 %v1013_v30, %v168_v31 }
  0xeb   :  { %v1016_v33 = vpop.f32.mrb[2].mxu0  ;;  %1160 = vmatprep.subr.bf16.mxu0 %v1159_v32  ;;  %1191 = vmatprep.subr.bf16.mxu1 %v1159_v32 }
  0xec   :  { %v178_v34 = vpop.f32.mrb[3].mxu0  ;;  %1162 = vmatpush3.bf16.msra.mxu0 %v1159_v32  ;;  %1199 = vmatpush3.bf16.msra.mxu1 %v1159_v32 }
  0xed   :  { %v1163_v35 = vpack.c.bf16 %v1016_v33, %v178_v34 }
  0xef   :  { %v1019_v36 = vpop.f32.mrb[4].mxu0  ;;  %1164 = vmatprep.subr.bf16.mxu0 %v1163_v35  ;;  %1192 = vmatprep.subr.bf16.mxu1 %v1163_v35 }
  0xf0   :  { %v188_v37 = vpop.f32.mrb[5].mxu0  ;;  %1166 = vmatpush3.bf16.msra.mxu0 %v1163_v35  ;;  %1200 = vmatpush3.bf16.msra.mxu1 %v1163_v35 }
  0xf1   :  { %v1167_v38 = vpack.c.bf16 %v1019_v36, %v188_v37 }
  0xf3   :  { %v1022_v39 = vpop.f32.mrb[6].mxu0  ;;  %1168 = vmatprep.subr.bf16.mxu0 %v1167_v38  ;;  %1193 = vmatprep.subr.bf16.mxu1 %v1167_v38 }
  0xf4   :  { %v198_v40 = vpop.f32.mrb[7].mxu0  ;;  %1170 = vmatpush3.bf16.msra.mxu0 %v1167_v38  ;;  %1201 = vmatpush3.bf16.msra.mxu1 %v1167_v38 }
  0xf5   :  { %v1171_v41 = vpack.c.bf16 %v1022_v39, %v198_v40  ;;  %v871_v39 = vld [vmem:[%s1505_s5] ss:$0 sm:$0xff] }
  0xf7   :  { %v1025_v42 = vpop.f32.mrb[8].mxu0  ;;  %1172 = vmatprep.subr.bf16.mxu0 %v1171_v41  ;;  %1194 = vmatprep.subr.bf16.mxu1 %v1171_v41 }
  0xf8   :  { %v208_v43 = vpop.f32.mrb[9].mxu0  ;;  %1174 = vmatpush3.bf16.msra.mxu0 %v1171_v41  ;;  %1202 = vmatpush3.bf16.msra.mxu1 %v1171_v41 }
  0xf9   :  { %v1175_v44 = vpack.c.bf16 %v1025_v42, %v208_v43 }
  0xfb   :  { %v1028_v45 = vpop.f32.mrb[10].mxu0  ;;  %1176 = vmatprep.subr.bf16.mxu0 %v1175_v44  ;;  %1195 = vmatprep.subr.bf16.mxu1 %v1175_v44 }
  0xfc   :  { %v218_v46 = vpop.f32.mrb[11].mxu0  ;;  %1178 = vmatpush3.bf16.msra.mxu0 %v1175_v44  ;;  %1203 = vmatpush3.bf16.msra.mxu1 %v1175_v44 }
  0xfd   :  { %v1179_v47 = vpack.c.bf16 %v1028_v45, %v218_v46 }
  0xff   :  { %v1031_v48 = vpop.f32.mrb[12].mxu0  ;;  %1180 = vmatprep.subr.bf16.mxu0 %v1179_v47  ;;  %1196 = vmatprep.subr.bf16.mxu1 %v1179_v47 }
 0x100   :  { %v228_v49 = vpop.f32.mrb[13].mxu0  ;;  %1182 = vmatpush3.bf16.msra.mxu0 %v1179_v47  ;;  %1204 = vmatpush3.bf16.msra.mxu1 %v1179_v47 }
 0x101   :  { %v1183_v50 = vpack.c.bf16 %v1031_v48, %v228_v49 }
 0x103   :  { %v1034_v51 = vpop.f32.mrb[14].mxu0  ;;  %1184 = vmatprep.subr.bf16.mxu0 %v1183_v50  ;;  %1197 = vmatprep.subr.bf16.mxu1 %v1183_v50 }
 0x104   :  { %v238_v52 = vpop.f32.mrb[15].mxu0  ;;  %1186 = vmatpush3.bf16.msra.mxu0 %v1183_v50  ;;  %1205 = vmatpush3.bf16.msra.mxu1 %v1183_v50 }
 0x105   :  { %v1187_v53 = vpack.c.bf16 %v1034_v51, %v238_v52 }
 0x107   :  { %1188 = vmatprep.subr.bf16.mxu0 %v1187_v53  ;;  %1198 = vmatprep.subr.bf16.mxu1 %v1187_v53 }
 0x108   :  { %1190 = vmatpush3.bf16.msra.mxu0 %v1187_v53  ;;  %1206 = vmatpush3.bf16.msra.mxu1 %v1187_v53 }
 0x109   :  { %1091 = vmatprep.subr.mxu0 %v415_v54  ;;  %1117 = vmatprep.subr.mxu1 %v633_v5 }
 0x10b   :  { %1068 = vmatmul.mubr.f32.vlgmr.msra.gmra.mrb[16].mxu0 %v248_v55  ;;  %1074 = vmatmul.mubr.f32.vlgmr.msra.gmra.mrb[0].mxu1 %v252_v56 }
 0x10c   :  { %1070 = vmatprep.mubr.f32.mxu0 %v249_v57  ;;  %1076 = vmatprep.mubr.f32.mxu1 %v253_v58 }
 0x10d   :  { %1092 = vmatpush3.msra.mxu0 %v415_v54  ;;  %1118 = vmatpush3.msra.mxu1 %v633_v5 }
 0x10f   :  { %1071 = vmatmul.mubr.f32.gmra.mrb[18].mxu0 %v250_v59  ;;  %1077 = vmatmul.mubr.f32.gmra.mrb[2].mxu1 %v254_v60 }
 0x110   :  { %1079 = vmatprep.mubr.f32.mxu1 %v255_v61 }
 0x113   :  { %1080 = vmatmul.mubr.f32.gmra.mrb[4].mxu1 %v256_v62 }
 0x114   :  { %1082 = vmatprep.mubr.f32.mxu1 %v257_v63 }
 0x117   :  { %1083 = vmatmul.mubr.f32.gmra.mrb[6].mxu1 %v258_v0 }
 0x118   :  { %1085 = vmatprep.mubr.f32.mxu1 %v259_v1 }
 0x11b   :  { %1086 = vmatmul.mubr.f32.gmra.mrb[8].mxu1 %v260_v2 }
 0x11c   :  { %1088 = vmatprep.mubr.f32.mxu1 %v261_v3 }
 0x11f   :  { %1089 = vmatmul.mubr.f32.gmra.mrb[10].mxu1 %v262_v4 }
 0x1de   :  { %v1069_v7 = vpop.f32.mrb[16].mxu0  ;;  %v1075_v8 = vpop.f32.mrb[0].mxu1 }
 0x1df   :  { %v336_v9 = vpop.f32.mrb[17].mxu0  ;;  %v356_v10 = vpop.f32.mrb[1].mxu1  ;;  %v342_v12 = vadd.f32 %v1069_v7, %v870_v6  ;;  %v362_v23 = vadd.f32 %v1075_v8, %v870_v6 }
 0x1e0   :  { %v337_v11 = vadd.f32 %v870_v6, %v336_v9  ;;  %v357_v18 = vadd.f32 %v870_v6, %v356_v10 }
 0x1e2   :  { %v1072_v13 = vpop.f32.mrb[18].mxu0  ;;  %1093 = vmatprep.mubr.msk.f32.mxu0 %vm423_vm1, %v337_v11  ;;  %v1078_v14 = vpop.f32.mrb[2].mxu1 }
 0x1e3   :  { %v346_v15 = vpop.f32.mrb[19].mxu0  ;;  %1094 = vmatmul.mubr.msk.f32.vlgmr.msra.gmra.mrb[20].mxu0 %vm423_vm1, %v342_v12  ;;  %v366_v16 = vpop.f32.mrb[3].mxu1  ;;  %v352_v19 = vadd.f32 %v1072_v13, %v870_v6  ;;  %v372_v27 = vadd.f32 %v1078_v14, %v870_v6 }
 0x1e4   :  { %v347_v17 = vadd.f32 %v870_v6, %v346_v15  ;;  %v367_v22 = vadd.f32 %v870_v6, %v366_v16 }
 0x1e6   :  { %1096 = vmatprep.mubr.msk.f32.mxu0 %vm423_vm1, %v347_v17  ;;  %v1081_v20 = vpop.f32.mrb[4].mxu1 }
 0x1e7   :  { %1097 = vmatmul.mubr.msk.f32.gmra.mrb[22].mxu0 %vm423_vm1, %v352_v19  ;;  %v376_v21 = vpop.f32.mrb[5].mxu1  ;;  %v382_v31 = vadd.f32 %v1081_v20, %v870_v6 }
 0x1e8   :  { %1099 = vmatprep.mubr.msk.f32.mxu0 %vm423_vm1, %v357_v18  ;;  %v377_v26 = vadd.f32 %v870_v6, %v376_v21 }
 0x1ea   :  { %v1084_v24 = vpop.f32.mrb[6].mxu1 }
 0x1eb   :  { %1100 = vmatmul.mubr.msk.f32.gmra.mrb[24].mxu0 %vm423_vm1, %v362_v23  ;;  %v386_v25 = vpop.f32.mrb[7].mxu1  ;;  %v392_v35 = vadd.f32 %v1084_v24, %v870_v6  ;;  %v888_v24 = vld [vmem:[%s1506_s7] ss:$0 sm:$0xff] }
 0x1ec   :  { %1102 = vmatprep.mubr.msk.f32.mxu0 %vm423_vm1, %v367_v22  ;;  %v387_v30 = vadd.f32 %v870_v6, %v386_v25 }
 0x1ee   :  { %v1087_v28 = vpop.f32.mrb[8].mxu1 }
 0x1ef   :  { %1103 = vmatmul.mubr.msk.f32.gmra.mrb[26].mxu0 %vm423_vm1, %v372_v27  ;;  %v396_v29 = vpop.f32.mrb[9].mxu1  ;;  %v402_v37 = vadd.f32 %v1087_v28, %v870_v6 }
 0x1f0   :  { %1105 = vmatprep.mubr.msk.f32.mxu0 %vm423_vm1, %v377_v26  ;;  %v397_v34 = vadd.f32 %v870_v6, %v396_v29 }
 0x1f2   :  { %v1090_v32 = vpop.f32.mrb[10].mxu1 }
 0x1f3   :  { %1106 = vmatmul.mubr.msk.f32.gmra.mrb[28].mxu0 %vm423_vm1, %v382_v31  ;;  %v406_v33 = vpop.f32.mrb[11].mxu1  ;;  %v412_v38 = vadd.f32 %v1090_v32, %v870_v6 }
 0x1f4   :  { %1108 = vmatprep.mubr.msk.f32.mxu0 %vm423_vm1, %v387_v30  ;;  %v407_v36 = vadd.f32 %v870_v6, %v406_v33 }
 0x1f7   :  { %1109 = vmatmul.mubr.msk.f32.gmra.mrb[30].mxu0 %vm423_vm1, %v392_v35 }
 0x1f8   :  { %1111 = vmatprep.mubr.msk.f32.mxu0 %vm423_vm1, %v397_v34 }
 0x1fb   :  { %1112 = vmatmul.mubr.msk.f32.gmra.mrb[32].mxu0 %vm423_vm1, %v402_v37 }
 0x1fc   :  { %1114 = vmatprep.mubr.msk.f32.mxu0 %vm423_vm1, %v407_v36 }
 0x1ff   :  { %1115 = vmatmul.mubr.msk.f32.gmra.mrb[34].mxu0 %vm423_vm1, %v412_v38 }
 0x2b6   :  { %v1095_v40 = vpop.f32.mrb[20].mxu0 }
 0x2b7   :  { %v544_v41 = vadd.f32 %v1095_v40, %v871_v39  ;;  %v538_v42 = vpop.f32.mrb[21].mxu0 }
 0x2b8   :  { %v539_v43 = vadd.f32 %v871_v39, %v538_v42 }
 0x2b9   :  { %v618_v46 = vmax.f32 %v544_v41, 0.0 }
 0x2ba   :  { %v617_v44 = vmax.f32 %v539_v43, 0.0  ;;  %v1098_v45 = vpop.f32.mrb[22].mxu0 }
 0x2bb   :  { %v554_v47 = vadd.f32 %v1098_v45, %v871_v39  ;;  %v548_v48 = vpop.f32.mrb[23].mxu0 }
 0x2bc   :  { %v549_v49 = vadd.f32 %v871_v39, %v548_v48  ;;  %1119 = vmatprep.mubr.msk.f32.mxu1 %vm423_vm1, %v617_v44 }
 0x2bd   :  { %1120 = vmatmul.mubr.msk.f32.vlgmr.msra.gmra.mrb[12].mxu1 %vm423_vm1, %v618_v46  ;;  %v620_v52 = vmax.f32 %v554_v47, 0.0 }
 0x2be   :  { %v619_v50 = vmax.f32 %v549_v49, 0.0  ;;  %v1101_v51 = vpop.f32.mrb[24].mxu0 }
 0x2bf   :  { %v564_v53 = vadd.f32 %v1101_v51, %v871_v39  ;;  %v558_v54 = vpop.f32.mrb[25].mxu0 }
 0x2c0   :  { %v559_v55 = vadd.f32 %v871_v39, %v558_v54  ;;  %1122 = vmatprep.mubr.msk.f32.mxu1 %vm423_vm1, %v619_v50 }
 0x2c1   :  { %1123 = vmatmul.mubr.msk.f32.gmra.mrb[14].mxu1 %vm423_vm1, %v620_v52  ;;  %v622_v58 = vmax.f32 %v564_v53, 0.0 }
 0x2c2   :  { %v621_v56 = vmax.f32 %v559_v55, 0.0  ;;  %v1104_v57 = vpop.f32.mrb[26].mxu0 }
 0x2c3   :  { %v574_v59 = vadd.f32 %v1104_v57, %v871_v39  ;;  %v568_v60 = vpop.f32.mrb[27].mxu0 }
 0x2c4   :  { %v569_v61 = vadd.f32 %v871_v39, %v568_v60  ;;  %1125 = vmatprep.mubr.msk.f32.mxu1 %vm423_vm1, %v621_v56 }
 0x2c5   :  { %1126 = vmatmul.mubr.msk.f32.gmra.mrb[16].mxu1 %vm423_vm1, %v622_v58  ;;  %v624_v0 = vmax.f32 %v574_v59, 0.0 }
 0x2c6   :  { %v623_v62 = vmax.f32 %v569_v61, 0.0  ;;  %v1107_v63 = vpop.f32.mrb[28].mxu0 }
 0x2c7   :  { %v584_v1 = vadd.f32 %v1107_v63, %v871_v39  ;;  %v578_v2 = vpop.f32.mrb[29].mxu0 }
 0x2c8   :  { %v579_v3 = vadd.f32 %v871_v39, %v578_v2  ;;  %1128 = vmatprep.mubr.msk.f32.mxu1 %vm423_vm1, %v623_v62 }
 0x2c9   :  { %1129 = vmatmul.mubr.msk.f32.gmra.mrb[18].mxu1 %vm423_vm1, %v624_v0  ;;  %v626_v6 = vmax.f32 %v584_v1, 0.0 }
 0x2ca   :  { %v625_v4 = vmax.f32 %v579_v3, 0.0  ;;  %v1110_v5 = vpop.f32.mrb[30].mxu0 }
 0x2cb   :  { %v594_v7 = vadd.f32 %v1110_v5, %v871_v39  ;;  %v588_v8 = vpop.f32.mrb[31].mxu0 }
 0x2cc   :  { %v589_v9 = vadd.f32 %v871_v39, %v588_v8  ;;  %1131 = vmatprep.mubr.msk.f32.mxu1 %vm423_vm1, %v625_v4 }
 0x2cd   :  { %1132 = vmatmul.mubr.msk.f32.gmra.mrb[20].mxu1 %vm423_vm1, %v626_v6  ;;  %v628_v12 = vmax.f32 %v594_v7, 0.0 }
 0x2ce   :  { %v627_v10 = vmax.f32 %v589_v9, 0.0  ;;  %v1113_v11 = vpop.f32.mrb[32].mxu0 }
 0x2cf   :  { %v604_v13 = vadd.f32 %v1113_v11, %v871_v39  ;;  %v598_v14 = vpop.f32.mrb[33].mxu0 }
 0x2d0   :  { %v599_v15 = vadd.f32 %v871_v39, %v598_v14  ;;  %1134 = vmatprep.mubr.msk.f32.mxu1 %vm423_vm1, %v627_v10 }
 0x2d1   :  { %1135 = vmatmul.mubr.msk.f32.gmra.mrb[22].mxu1 %vm423_vm1, %v628_v12  ;;  %v630_v18 = vmax.f32 %v604_v13, 0.0 }
 0x2d2   :  { %v629_v16 = vmax.f32 %v599_v15, 0.0  ;;  %v1116_v17 = vpop.f32.mrb[34].mxu0 }
 0x2d3   :  { %v614_v19 = vadd.f32 %v1116_v17, %v871_v39  ;;  %v608_v20 = vpop.f32.mrb[35].mxu0 }
 0x2d4   :  { %v609_v21 = vadd.f32 %v871_v39, %v608_v20  ;;  %1137 = vmatprep.mubr.msk.f32.mxu1 %vm423_vm1, %v629_v16 }
 0x2d5   :  { %1138 = vmatmul.mubr.msk.f32.gmra.mrb[24].mxu1 %vm423_vm1, %v630_v18  ;;  %v632_v23 = vmax.f32 %v614_v19, 0.0 }
 0x2d6   :  { %v631_v22 = vmax.f32 %v609_v21, 0.0 }
 0x2d8   :  { %1140 = vmatprep.mubr.msk.f32.mxu1 %vm423_vm1, %v631_v22 }
 0x2d9   :  { %1141 = vmatmul.mubr.msk.f32.gmra.mrb[26].mxu1 %vm423_vm1, %v632_v23 }
 0x390   :  { %v1121_v25 = vpop.f32.mrb[12].mxu1 }
 0x391   :  { %v761_v26 = vadd.f32 %v1121_v25, %v888_v24  ;;  %v755_v27 = vpop.f32.mrb[13].mxu1 }
 0x392   :  { %v756_v28 = vadd.f32 %v888_v24, %v755_v27 }
 0x393   :  { %835 = vst.msk [vmem:[%s1507_s8 + $0x8] sm:$0xff] %vm53_vm0, %v761_v26 }
 0x394   :  { %834 = vst.msk [vmem:[%s1507_s8] sm:$0xff] %vm53_vm0, %v756_v28  ;;  %v1124_v29 = vpop.f32.mrb[14].mxu1 }
 0x395   :  { %v771_v30 = vadd.f32 %v1124_v29, %v888_v24  ;;  %v765_v31 = vpop.f32.mrb[15].mxu1 }
 0x396   :  { %v766_v32 = vadd.f32 %v888_v24, %v765_v31 }
 0x397   :  { %837 = vst.msk [vmem:[%s1507_s8 + $0x18] sm:$0xff] %vm53_vm0, %v771_v30 }
 0x398   :  { %836 = vst.msk [vmem:[%s1507_s8 + $0x10] sm:$0xff] %vm53_vm0, %v766_v32  ;;  %v1127_v33 = vpop.f32.mrb[16].mxu1 }
 0x399   :  { %v781_v34 = vadd.f32 %v1127_v33, %v888_v24  ;;  %v775_v35 = vpop.f32.mrb[17].mxu1 }
 0x39a   :  { %v776_v36 = vadd.f32 %v888_v24, %v775_v35 }
 0x39b   :  { %839 = vst.msk [vmem:[%s1507_s8 + $0x28] sm:$0xff] %vm53_vm0, %v781_v34 }
 0x39c   :  { %838 = vst.msk [vmem:[%s1507_s8 + $0x20] sm:$0xff] %vm53_vm0, %v776_v36  ;;  %v1130_v37 = vpop.f32.mrb[18].mxu1 }
 0x39d   :  { %v791_v38 = vadd.f32 %v1130_v37, %v888_v24  ;;  %v785_v39 = vpop.f32.mrb[19].mxu1 }
 0x39e   :  { %v786_v40 = vadd.f32 %v888_v24, %v785_v39 }
 0x39f   :  { %841 = vst.msk [vmem:[%s1507_s8 + $0x38] sm:$0xff] %vm53_vm0, %v791_v38 }
 0x3a0   :  { %840 = vst.msk [vmem:[%s1507_s8 + $0x30] sm:$0xff] %vm53_vm0, %v786_v40  ;;  %v1133_v41 = vpop.f32.mrb[20].mxu1 }
 0x3a1   :  { %v801_v42 = vadd.f32 %v1133_v41, %v888_v24  ;;  %v795_v43 = vpop.f32.mrb[21].mxu1 }
 0x3a2   :  { %v796_v44 = vadd.f32 %v888_v24, %v795_v43 }
 0x3a3   :  { %843 = vst.msk [vmem:[%s1507_s8 + $0x48] sm:$0xff] %vm53_vm0, %v801_v42 }
 0x3a4   :  { %842 = vst.msk [vmem:[%s1507_s8 + $0x40] sm:$0xff] %vm53_vm0, %v796_v44  ;;  %v1136_v45 = vpop.f32.mrb[22].mxu1 }
 0x3a5   :  { %v811_v46 = vadd.f32 %v1136_v45, %v888_v24  ;;  %v805_v47 = vpop.f32.mrb[23].mxu1 }
 0x3a6   :  { %v806_v48 = vadd.f32 %v888_v24, %v805_v47 }
 0x3a7   :  { %845 = vst.msk [vmem:[%s1507_s8 + $0x58] sm:$0xff] %vm53_vm0, %v811_v46 }
 0x3a8   :  { %844 = vst.msk [vmem:[%s1507_s8 + $0x50] sm:$0xff] %vm53_vm0, %v806_v48  ;;  %v1139_v49 = vpop.f32.mrb[24].mxu1 }
 0x3a9   :  { %v821_v50 = vadd.f32 %v1139_v49, %v888_v24  ;;  %v815_v51 = vpop.f32.mrb[25].mxu1 }
 0x3aa   :  { %v816_v52 = vadd.f32 %v888_v24, %v815_v51 }
 0x3ab   :  { %847 = vst.msk [vmem:[%s1507_s8 + $0x68] sm:$0xff] %vm53_vm0, %v821_v50 }
 0x3ac   :  { %846 = vst.msk [vmem:[%s1507_s8 + $0x60] sm:$0xff] %vm53_vm0, %v816_v52  ;;  %v1142_v53 = vpop.f32.mrb[26].mxu1 }
 0x3ad   :  { %v831_v54 = vadd.f32 %v1142_v53, %v888_v24  ;;  %v825_v55 = vpop.f32.mrb[27].mxu1 }
 0x3ae   :  { %v826_v56 = vadd.f32 %v888_v24, %v825_v55 }
 0x3af   :  { %849 = vst.msk [vmem:[%s1507_s8 + $0x78] sm:$0xff] %vm53_vm0, %v831_v54 }
 0x3b0   :  { %848 = vst.msk [vmem:[%s1507_s8 + $0x70] sm:$0xff] %vm53_vm0, %v826_v56 }

// kernel: tengcn_forward.17
= control target key start
LH: loop header
LB: loop body
LE: loop exit
PB: predicated region body
PF: predicated region fallthrough
CT: control target
= control target key end

     0   :  { %v358_v0 = vmov 0   ;;  %v359_v2 = vmov 0.0|0.0   ;;  %vm360_vm0 = vmmov 0   ;;  %v361_v16 = vmov 0.0   ;;  %s450_s1 = inlined_call_operand.<no memory space> [shape: f32[1,1], index: 1, kind: input, shape index: {}]   ;;  %s451_s2 = inlined_call_operand.vmem [shape: f32[64,8], index: 2, kind: input, shape index: {}]   ;;  %s452_s0 = inlined_call_operand.vmem [shape: f32[8,64], index: 0, kind: input, shape index: {}]   ;;  %s453_s3 = inlined_call_operand.vmem [shape: f32[8,8], index: 3, kind: input, shape index: {}]   ;;  %s454_s5 = inlined_call_operand.vmem [shape: f32[8,4], index: 5, kind: input, shape index: {}]   ;;  %s455_s4 = inlined_call_operand.vmem [shape: f32[1,8], index: 4, kind: input, shape index: {}]   ;;  %s456_s6 = inlined_call_operand.vmem [shape: f32[1,4], index: 6, kind: input, shape index: {}]   ;;  %s457_s7 = inlined_call_operand.vmem [shape: f32[8,4], index: 7, kind: output, shape index: {}]  }
   0x1   :  { %357 = vset.pattern.permute.xlu0 %v358_v0  ;;  %v12_v1 = vstv %s450_s1  ;;  %341 = vmatprep.subr.bf16.mxu0 %v359_v2  ;;  %v41_v3 = vld [vmem:[%s451_s2] sm:$0xff]  ;;  %v42_v4 = vld [vmem:[%s451_s2 + $0x8] sm:$0xff]  ;;  %v43_v5 = vld [vmem:[%s451_s2 + $0x10] sm:$0xff]  ;;  %vm49_vm1 = vcmask 523264   ;;  %vm131_vm2 = vcmask 64512   ;;  %vm287_vm3 = vcmask 31744  }
   0x2   :  { %13 = vst [vmem:[#allocation2] sm:$0x1] %v12_v1  ;;  %v342_v6 = vpack.c.bf16 %v42_v4, %v41_v3  ;;  %v44_v7 = vld [vmem:[%s451_s2 + $0x18] sm:$0xff]  ;;  %v45_v9 = vld [vmem:[%s451_s2 + $0x20] sm:$0xff]  ;;  %v46_v10 = vld [vmem:[%s451_s2 + $0x28] sm:$0xff]  ;;  %328 = vmatprep.mubr.msk.f32.mxu0 %vm360_vm0, %v361_v16  ;;  %331 = vmatprep.subr.mxu1 %v361_v16 }
   0x3   :  { %v345_v8 = vpack.c.bf16 %v44_v7, %v43_v5  ;;  %v348_v11 = vpack.c.bf16 %v46_v10, %v45_v9  ;;  %v47_v13 = vld [vmem:[%s451_s2 + $0x30] sm:$0xff]  ;;  %v48_v14 = vld [vmem:[%s451_s2 + $0x38] sm:$0xff]  ;;  %333 = vmatprep.mubr.msk.f32.mxu1 %vm360_vm0, %v361_v16  ;;  %v28_v17 = vld [vmem:[%s452_s0] sm:$0xff] }
   0x4   :  { %343 = vmatpush3.bf16.msra.mxu0 %v342_v6  ;;  %v351_v15 = vpack.c.bf16 %v48_v14, %v47_v13  ;;  %v123_v21 = vld [vmem:[%s453_s3] sm:$0xff] }
   0x5   :  { %344 = vmatprep.subr.bf16.mxu0 %v359_v2  ;;  %332 = vmatpush3.msra.mxu1 %v123_v21  ;;  %v206_v24 = vld [vmem:[%s454_s5] sm:$0xff] }
   0x6   :  { %336 = vmatprep.subr.mxu1 %v361_v16  ;;  %v295_v25 = vld [vmem:[%s455_s4] ss:$0 sm:$0xff] }
   0x7   :  { %v297_v30 = vld [vmem:[%s456_s6] ss:$0 sm:$0xff] }
   0x8   :  { %346 = vmatpush3.bf16.msra.mxu0 %v345_v8 }
   0x9   :  { %v293_v12 = vld [vmem:[#allocation2] ss:$0 sm:$0xff]  ;;  %347 = vmatprep.subr.bf16.mxu0 %v359_v2 }
   0xa   :  { %36 = vperm.xlu0 %357, %v293_v12  }
   0xc   :  { %349 = vmatpush3.bf16.msra.mxu0 %v348_v11 }
   0xd   :  { %350 = vmatprep.subr.bf16.mxu0 %v359_v2 }
  0x10   :  { %352 = vmatpush3.bf16.msra.mxu0 %v351_v15 }
  0x89   :  { %v37_v18 = vpop.permute.xlu0 %36 }
  0x8a   :  { %v39_v19 = vadd.f32 %v37_v18, %v28_v17 }
  0x8c   :  { %v40_v20 = vmax.f32 %v39_v19, 0.0 }
  0x8e   :  { %329 = vmatmul.mubr.msk.f32.vlgmr.msra.gmra.mrb[0].mxu0 %vm49_vm1, %v40_v20 }
 0x161   :  { %v119_v22 = vpop.f32.mrb[0].mxu0 }
 0x162   :  { %v330_v23 = vpop.f32.mrb[1].mxu0  ;;  %334 = vmatmul.mubr.msk.f32.vlgmr.msra.gmra.mrb[0].mxu1 %vm131_vm2, %v119_v22 }
 0x163   :  { %338 = vmatprep.mubr.msk.f32.mxu1 %vm360_vm0, %v361_v16  ;;  %337 = vmatpush3.msra.mxu1 %v206_v24 }
 0x235   :  { %v201_v26 = vpop.f32.mrb[0].mxu1 }
 0x236   :  { %v202_v27 = vadd.f32 %v295_v25, %v201_v26  ;;  %v335_v28 = vpop.f32.mrb[1].mxu1 }
 0x238   :  { %v205_v29 = vmax.f32 %v202_v27, 0.0 }
 0x23a   :  { %339 = vmatmul.mubr.msk.f32.vlgmr.msra.gmra.mrb[2].mxu1 %vm131_vm2, %v205_v29 }
 0x30d   :  { %v283_v31 = vpop.f32.mrb[2].mxu1 }
 0x30e   :  { %v284_v32 = vadd.f32 %v297_v30, %v283_v31  ;;  %v340_v33 = vpop.f32.mrb[3].mxu1 }
 0x310   :  { %288 = vst.msk [vmem:[%s457_s7] sm:$0xff] %vm287_vm3, %v284_v32 }

// kernel: tengcn_forward.14
= control target key start
LH: loop header
LB: loop body
LE: loop exit
PB: predicated region body
PF: predicated region fallthrough
CT: control target
= control target key end

     0   :  { %vm92_vm0 = vcmask 1044480   ;;  %vm43_vm1 = vcmask 367616   ;;  %vm374_vm2 = vmmov 1   ;;  %s528_s1 = inlined_call_operand.vmem [shape: f32[45,128], index: 1, kind: input, shape index: {}]   ;;  %s529_s0 = inlined_call_operand.vmem [shape: f32[128,45], index: 0, kind: input, shape index: {}]   ;;  %s530_s2 = inlined_call_operand.vmem [shape: f32[1,128], index: 2, kind: input, shape index: {}]   ;;  %s531_s3 = inlined_call_operand.vmem [shape: f32[128,128], index: 3, kind: output, shape index: {}]  }
   0x1   :  { %v30_v0 = vld [vmem:[%s528_s1] sm:$0xff]  ;;  %v31_v1 = vld [vmem:[%s528_s1 + $0x8] sm:$0xff]  ;;  %v32_v2 = vld [vmem:[%s528_s1 + $0x10] sm:$0xff] }
   0x2   :  { %v353_v3 = vpack.c.bf16 %v31_v1, %v30_v0  ;;  %v33_v4 = vld [vmem:[%s528_s1 + $0x18] sm:$0xff]  ;;  %v34_v6 = vld [vmem:[%s528_s1 + $0x20] sm:$0xff]  ;;  %v35_v7 = vld [vmem:[%s528_s1 + $0x28] sm:$0x1f] }
   0x3   :  { %v357_v5 = vpack.c.bf16 %v33_v4, %v32_v2  ;;  %v14_v8 = vld [vmem:[%s529_s0] sm:$0xff]  ;;  %v361_v10 = vpack.c.bf16 %v35_v7, %v34_v6  ;;  %vm362_vm3 = vmpackc.low %vm92_vm0, %vm374_vm2  ;;  %v15_v11 = vld [vmem:[%s529_s0 + $0x8] sm:$0xff] }
   0x4   :  { %354 = vmatprep.subr.bf16.mxu0 %v353_v3  ;;  %367 = vmatprep.subr.bf16.mxu1 %v353_v3  ;;  %v22_v9 = vld [vmem:[%s529_s0 + $0x40] sm:$0xff]  ;;  %v23_v12 = vld [vmem:[%s529_s0 + $0x48] sm:$0xff]  ;;  %v16_v13 = vld [vmem:[%s529_s0 + $0x10] sm:$0xff] }
   0x5   :  { %356 = vmatpush3.bf16.msra.mxu0 %v353_v3  ;;  %370 = vmatpush3.bf16.msra.mxu1 %v353_v3  ;;  %v24_v14 = vld [vmem:[%s529_s0 + $0x50] sm:$0xff]  ;;  %v17_v15 = vld [vmem:[%s529_s0 + $0x18] sm:$0xff]  ;;  %v18_v17 = vld [vmem:[%s529_s0 + $0x20] sm:$0xff] }
   0x6   :  { %358 = vmatprep.subr.bf16.mxu0 %v357_v5  ;;  %368 = vmatprep.subr.bf16.mxu1 %v357_v5  ;;  %v25_v16 = vld [vmem:[%s529_s0 + $0x58] sm:$0xff]  ;;  %v26_v18 = vld [vmem:[%s529_s0 + $0x60] sm:$0xff]  ;;  %v19_v19 = vld [vmem:[%s529_s0 + $0x28] sm:$0xff] }
   0x7   :  { %329 = vmatprep.mubr.msk.f32.mxu0 %vm43_vm1, %v14_v8  ;;  %341 = vmatprep.mubr.msk.f32.mxu1 %vm43_vm1, %v22_v9  ;;  %v27_v20 = vld [vmem:[%s529_s0 + $0x68] sm:$0xff]  ;;  %v20_v21 = vld [vmem:[%s529_s0 + $0x30] sm:$0xff]  ;;  %v21_v23 = vld [vmem:[%s529_s0 + $0x38] sm:$0xff] }
   0x8   :  { %v28_v22 = vld [vmem:[%s529_s0 + $0x70] sm:$0xff]  ;;  %v29_v24 = vld [vmem:[%s529_s0 + $0x78] sm:$0xff]  ;;  %v277_v25 = vld [vmem:[%s530_s2] ss:$0 sm:$0xff] }
   0x9   :  { %360 = vmatpush3.bf16.msra.mxu0 %v357_v5  ;;  %371 = vmatpush3.bf16.msra.mxu1 %v357_v5 }
   0xa   :  { %363 = vmatprep.subr.msk.bf16.mxu0 %vm362_vm3, %v361_v10  ;;  %369 = vmatprep.subr.msk.bf16.mxu1 %vm362_vm3, %v361_v10 }
   0xd   :  { %366 = vmatpush3.bf16.msk.msra.mxu0 %vm362_vm3, %v361_v10  ;;  %372 = vmatpush3.bf16.msk.msra.mxu1 %vm362_vm3, %v361_v10 }
  0x10   :  { %330 = vmatmul.mubr.msk.f32.vlgmr.msra.gmra.mrb[0].mxu0 %vm43_vm1, %v15_v11  ;;  %342 = vmatmul.mubr.msk.f32.vlgmr.msra.gmra.mrb[0].mxu1 %vm43_vm1, %v23_v12 }
  0x11   :  { %332 = vmatprep.mubr.msk.f32.mxu0 %vm43_vm1, %v16_v13  ;;  %344 = vmatprep.mubr.msk.f32.mxu1 %vm43_vm1, %v24_v14 }
  0x14   :  { %333 = vmatmul.mubr.msk.f32.gmra.mrb[2].mxu0 %vm43_vm1, %v17_v15  ;;  %345 = vmatmul.mubr.msk.f32.gmra.mrb[2].mxu1 %vm43_vm1, %v25_v16 }
  0x15   :  { %335 = vmatprep.mubr.msk.f32.mxu0 %vm43_vm1, %v18_v17  ;;  %347 = vmatprep.mubr.msk.f32.mxu1 %vm43_vm1, %v26_v18 }
  0x18   :  { %336 = vmatmul.mubr.msk.f32.gmra.mrb[4].mxu0 %vm43_vm1, %v19_v19  ;;  %348 = vmatmul.mubr.msk.f32.gmra.mrb[4].mxu1 %vm43_vm1, %v27_v20 }
  0x19   :  { %338 = vmatprep.mubr.msk.f32.mxu0 %vm43_vm1, %v20_v21  ;;  %350 = vmatprep.mubr.msk.f32.mxu1 %vm43_vm1, %v28_v22 }
  0x1c   :  { %339 = vmatmul.mubr.msk.f32.gmra.mrb[6].mxu0 %vm43_vm1, %v21_v23  ;;  %351 = vmatmul.mubr.msk.f32.gmra.mrb[6].mxu1 %vm43_vm1, %v29_v24 }
  0xe3   :  { %v331_v26 = vpop.f32.mrb[0].mxu0  ;;  %v343_v27 = vpop.f32.mrb[0].mxu1 }
  0xe4   :  { %v168_v28 = vadd.f32 %v331_v26, %v277_v25  ;;  %v208_v29 = vadd.f32 %v343_v27, %v277_v25  ;;  %v162_v30 = vpop.f32.mrb[1].mxu0  ;;  %v202_v31 = vpop.f32.mrb[1].mxu1 }
  0xe5   :  { %v163_v32 = vadd.f32 %v277_v25, %v162_v30  ;;  %v203_v33 = vadd.f32 %v277_v25, %v202_v31 }
  0xe6   :  { %v242_v34 = vmax.f32 %v168_v28, 0.0  ;;  %v250_v35 = vmax.f32 %v208_v29, 0.0 }
  0xe7   :  { %v241_v36 = vmax.f32 %v163_v32, 0.0  ;;  %v249_v37 = vmax.f32 %v203_v33, 0.0  ;;  %v334_v38 = vpop.f32.mrb[2].mxu0  ;;  %v346_v39 = vpop.f32.mrb[2].mxu1 }
  0xe8   :  { %258 = vst [vmem:[%s531_s3 + $0x8] sm:$0xff] %v242_v34  ;;  %266 = vst [vmem:[%s531_s3 + $0x48] sm:$0xff] %v250_v35  ;;  %v178_v40 = vadd.f32 %v334_v38, %v277_v25  ;;  %v218_v41 = vadd.f32 %v346_v39, %v277_v25  ;;  %v172_v42 = vpop.f32.mrb[3].mxu0  ;;  %v212_v43 = vpop.f32.mrb[3].mxu1 }
  0xe9   :  { %257 = vst [vmem:[%s531_s3] sm:$0xff] %v241_v36  ;;  %265 = vst [vmem:[%s531_s3 + $0x40] sm:$0xff] %v249_v37  ;;  %v173_v44 = vadd.f32 %v277_v25, %v172_v42  ;;  %v213_v45 = vadd.f32 %v277_v25, %v212_v43 }
  0xea   :  { %v244_v46 = vmax.f32 %v178_v40, 0.0  ;;  %v252_v47 = vmax.f32 %v218_v41, 0.0 }
  0xeb   :  { %v243_v48 = vmax.f32 %v173_v44, 0.0  ;;  %v251_v49 = vmax.f32 %v213_v45, 0.0  ;;  %v337_v50 = vpop.f32.mrb[4].mxu0  ;;  %v349_v51 = vpop.f32.mrb[4].mxu1 }
  0xec   :  { %260 = vst [vmem:[%s531_s3 + $0x18] sm:$0xff] %v244_v46  ;;  %268 = vst [vmem:[%s531_s3 + $0x58] sm:$0xff] %v252_v47  ;;  %v188_v52 = vadd.f32 %v337_v50, %v277_v25  ;;  %v228_v53 = vadd.f32 %v349_v51, %v277_v25  ;;  %v182_v54 = vpop.f32.mrb[5].mxu0  ;;  %v222_v55 = vpop.f32.mrb[5].mxu1 }
  0xed   :  { %259 = vst [vmem:[%s531_s3 + $0x10] sm:$0xff] %v243_v48  ;;  %267 = vst [vmem:[%s531_s3 + $0x50] sm:$0xff] %v251_v49  ;;  %v183_v56 = vadd.f32 %v277_v25, %v182_v54  ;;  %v223_v57 = vadd.f32 %v277_v25, %v222_v55 }
  0xee   :  { %v246_v58 = vmax.f32 %v188_v52, 0.0  ;;  %v254_v59 = vmax.f32 %v228_v53, 0.0 }
  0xef   :  { %v245_v60 = vmax.f32 %v183_v56, 0.0  ;;  %v253_v61 = vmax.f32 %v223_v57, 0.0  ;;  %v340_v62 = vpop.f32.mrb[6].mxu0  ;;  %v352_v63 = vpop.f32.mrb[6].mxu1 }
  0xf0   :  { %262 = vst [vmem:[%s531_s3 + $0x28] sm:$0xff] %v246_v58  ;;  %270 = vst [vmem:[%s531_s3 + $0x68] sm:$0xff] %v254_v59  ;;  %v198_v0 = vadd.f32 %v340_v62, %v277_v25  ;;  %v238_v1 = vadd.f32 %v352_v63, %v277_v25  ;;  %v192_v2 = vpop.f32.mrb[7].mxu0  ;;  %v232_v3 = vpop.f32.mrb[7].mxu1 }
  0xf1   :  { %261 = vst [vmem:[%s531_s3 + $0x20] sm:$0xff] %v245_v60  ;;  %269 = vst [vmem:[%s531_s3 + $0x60] sm:$0xff] %v253_v61  ;;  %v193_v4 = vadd.f32 %v277_v25, %v192_v2  ;;  %v233_v5 = vadd.f32 %v277_v25, %v232_v3 }
  0xf2   :  { %v248_v6 = vmax.f32 %v198_v0, 0.0  ;;  %v256_v7 = vmax.f32 %v238_v1, 0.0 }
  0xf3   :  { %v247_v8 = vmax.f32 %v193_v4, 0.0  ;;  %v255_v9 = vmax.f32 %v233_v5, 0.0 }
  0xf4   :  { %264 = vst [vmem:[%s531_s3 + $0x38] sm:$0xff] %v248_v6  ;;  %272 = vst [vmem:[%s531_s3 + $0x78] sm:$0xff] %v256_v7 }
  0xf5   :  { %263 = vst [vmem:[%s531_s3 + $0x30] sm:$0xff] %v247_v8  ;;  %271 = vst [vmem:[%s531_s3 + $0x70] sm:$0xff] %v255_v9 }

// kernel: tengcn_forward.15
= control target key start
LH: loop header
LB: loop body
LE: loop exit
PB: predicated region body
PF: predicated region fallthrough
CT: control target
= control target key end

     0   :  { %vm350_vm0 = vcmask 64512   ;;  %s3595_s1 = inlined_call_operand.vmem [shape: f32[392,640], index: 1, kind: input, shape index: {}]   ;;  %s3596_s0 = inlined_call_operand.vmem [shape: f32[128,392], index: 0, kind: input, shape index: {}]   ;;  %s3597_s2 = inlined_call_operand.vmem [shape: f32[1,640], index: 2, kind: input, shape index: {}]   ;;  %s3598_s3 = inlined_call_operand.vmem [shape: f32[128,640], index: 3, kind: output, shape index: {}]  }
   0x1   :  { %v79_v0 = vld [vmem:[%s3595_s1 + $0x8] sm:$0xff]  ;;  %v84_v1 = vld [vmem:[%s3595_s1 + $0x30] sm:$0xff]  ;;  %v81_v2 = vld [vmem:[%s3595_s1 + $0x18] sm:$0xff] }
   0x2   :  { %v1545_v3 = vpack.c.bf16 %v84_v1, %v79_v0  ;;  %v86_v4 = vld [vmem:[%s3595_s1 + $0x40] sm:$0xff]  ;;  %v83_v6 = vld [vmem:[%s3595_s1 + $0x28] sm:$0xff]  ;;  %v80_v9 = vld [vmem:[%s3595_s1 + $0x10] sm:$0xff] }
   0x3   :  { %v78_v5 = vld [vmem:[%s3595_s1] sm:$0xff]  ;;  %v1641_v7 = vpack.c.bf16 %v86_v4, %v81_v2  ;;  %v85_v10 = vld [vmem:[%s3595_s1 + $0x38] sm:$0xff]  ;;  %v91_v14 = vld [vmem:[%s3595_s1 + $0x68] sm:$0xff] }
   0x4   :  { %v1547_v8 = vpack.c.bf16 %v83_v6, %v78_v5  ;;  %v89_v11 = vld [vmem:[%s3595_s1 + $0x58] sm:$0xff]  ;;  %1546 = vmatprep.subr.bf16.mxu0 %v1545_v3  ;;  %v1643_v12 = vpack.c.bf16 %v85_v10, %v80_v9  ;;  %v94_v13 = vld [vmem:[%s3595_s1 + $0x80] sm:$0xff]  ;;  %v96_v15 = vld [vmem:[%s3595_s1 + $0x90] sm:$0xff] }
   0x5   :  { %1642 = vmatprep.subr.bf16.mxu1 %v1641_v7  ;;  %v1549_v16 = vpack.c.bf16 %v94_v13, %v89_v11  ;;  %v1645_v17 = vpack.c.bf16 %v96_v15, %v91_v14  ;;  %v88_v18 = vld [vmem:[%s3595_s1 + $0x50] sm:$0xff]  ;;  %v93_v19 = vld [vmem:[%s3595_s1 + $0x78] sm:$0xff]  ;;  %v90_v20 = vld [vmem:[%s3595_s1 + $0x60] sm:$0xff] }
   0x6   :  { %1548 = vmatpush1.bf16.msra.mxu0 %v1547_v8  ;;  %1644 = vmatpush1.bf16.msra.mxu1 %v1643_v12  ;;  %v1551_v21 = vpack.c.bf16 %v93_v19, %v88_v18  ;;  %v95_v22 = vld [vmem:[%s3595_s1 + $0x88] sm:$0xff]  ;;  %v104_v24 = vld [vmem:[%s3595_s1 + $0xd0] sm:$0xff]  ;;  %v101_v27 = vld [vmem:[%s3595_s1 + $0xb8] sm:$0xff] }
   0x7   :  { %v99_v23 = vld [vmem:[%s3595_s1 + $0xa8] sm:$0xff]  ;;  %1550 = vmatprep.subr.bf16.mxu0 %v1549_v16  ;;  %1646 = vmatprep.subr.bf16.mxu1 %v1645_v17  ;;  %v1647_v25 = vpack.c.bf16 %v95_v22, %v90_v20  ;;  %v106_v28 = vld [vmem:[%s3595_s1 + $0xe0] sm:$0xff]  ;;  %v100_v32 = vld [vmem:[%s3595_s1 + $0xb0] sm:$0xff] }
   0x8   :  { %v1553_v26 = vpack.c.bf16 %v104_v24, %v99_v23  ;;  %v98_v29 = vld [vmem:[%s3595_s1 + $0xa0] sm:$0xff]  ;;  %v1649_v30 = vpack.c.bf16 %v106_v28, %v101_v27  ;;  %v103_v31 = vld [vmem:[%s3595_s1 + $0xc8] sm:$0xff]  ;;  %v105_v33 = vld [vmem:[%s3595_s1 + $0xd8] sm:$0xff] }
   0x9   :  { %v1555_v34 = vpack.c.bf16 %v103_v31, %v98_v29  ;;  %v109_v35 = vld [vmem:[%s3595_s1 + $0xf8] sm:$0xff]  ;;  %v114_v36 = vld [vmem:[%s3595_s1 + $0x120] sm:$0xff]  ;;  %v111_v37 = vld [vmem:[%s3595_s1 + $0x108] sm:$0xff]  ;;  %v1651_v38 = vpack.c.bf16 %v105_v33, %v100_v32 }
   0xa   :  { %1552 = vmatpush1.bf16.msra.mxu0 %v1551_v21  ;;  %1648 = vmatpush1.bf16.msra.mxu1 %v1647_v25  ;;  %v1557_v39 = vpack.c.bf16 %v114_v36, %v109_v35  ;;  %v116_v40 = vld [vmem:[%s3595_s1 + $0x130] sm:$0xff]  ;;  %v113_v42 = vld [vmem:[%s3595_s1 + $0x118] sm:$0xff]  ;;  %v110_v44 = vld [vmem:[%s3595_s1 + $0x100] sm:$0xff] }
   0xb   :  { %1554 = vmatprep.subr.bf16.mxu0 %v1553_v26  ;;  %v108_v41 = vld [vmem:[%s3595_s1 + $0xf0] sm:$0xff]  ;;  %1650 = vmatprep.subr.bf16.mxu1 %v1649_v30  ;;  %v1653_v43 = vpack.c.bf16 %v116_v40, %v111_v37  ;;  %v115_v45 = vld [vmem:[%s3595_s1 + $0x128] sm:$0xff]  ;;  %v121_v48 = vld [vmem:[%s3595_s1 + $0x158] sm:$0xff] }
   0xc   :  { %v119_v46 = vld [vmem:[%s3595_s1 + $0x148] sm:$0xff]  ;;  %v124_v47 = vld [vmem:[%s3595_s1 + $0x170] sm:$0xff]  ;;  %v126_v49 = vld [vmem:[%s3595_s1 + $0x180] sm:$0xff]  ;;  %v1559_v50 = vpack.c.bf16 %v113_v42, %v108_v41  ;;  %v1655_v51 = vpack.c.bf16 %v115_v45, %v110_v44 }
   0xd   :  { %v1561_v52 = vpack.c.bf16 %v124_v47, %v119_v46  ;;  %v118_v53 = vld [vmem:[%s3595_s1 + $0x140] sm:$0xff]  ;;  %v123_v54 = vld [vmem:[%s3595_s1 + $0x168] sm:$0xff]  ;;  %v120_v55 = vld [vmem:[%s3595_s1 + $0x150] sm:$0xff]  ;;  %v1657_v56 = vpack.c.bf16 %v126_v49, %v121_v48 }
   0xe   :  { %1556 = vmatpush1.bf16.msra.mxu0 %v1555_v34  ;;  %1652 = vmatpush1.bf16.msra.mxu1 %v1651_v38  ;;  %v125_v57 = vld [vmem:[%s3595_s1 + $0x178] sm:$0xff]  ;;  %v134_v59 = vld [vmem:[%s3595_s1 + $0x1c0] sm:$0xff]  ;;  %v131_v60 = vld [vmem:[%s3595_s1 + $0x1a8] sm:$0xff]  ;;  %v1563_v62 = vpack.c.bf16 %v123_v54, %v118_v53 }
   0xf   :  { %1558 = vmatprep.subr.bf16.mxu0 %v1557_v39  ;;  %1654 = vmatprep.subr.bf16.mxu1 %v1653_v43  ;;  %v129_v58 = vld [vmem:[%s3595_s1 + $0x198] sm:$0xff]  ;;  %v136_v61 = vld [vmem:[%s3595_s1 + $0x1d0] sm:$0xff]  ;;  %v1659_v63 = vpack.c.bf16 %v125_v57, %v120_v55  ;;  %v130_v3 = vld [vmem:[%s3595_s1 + $0x1a0] sm:$0xff] }
  0x10   :  { %v1565_v0 = vpack.c.bf16 %v134_v59, %v129_v58  ;;  %v128_v1 = vld [vmem:[%s3595_s1 + $0x190] sm:$0xff]  ;;  %v133_v2 = vld [vmem:[%s3595_s1 + $0x1b8] sm:$0xff]  ;;  %v1661_v4 = vpack.c.bf16 %v136_v61, %v131_v60  ;;  %v135_v5 = vld [vmem:[%s3595_s1 + $0x1c8] sm:$0xff] }
  0x11   :  { %v139_v6 = vld [vmem:[%s3595_s1 + $0x1e8] sm:$0xff]  ;;  %v144_v7 = vld [vmem:[%s3595_s1 + $0x210] sm:$0xff]  ;;  %v141_v8 = vld [vmem:[%s3595_s1 + $0x1f8] sm:$0xff]  ;;  %v1567_v10 = vpack.c.bf16 %v133_v2, %v128_v1  ;;  %v1663_v11 = vpack.c.bf16 %v135_v5, %v130_v3 }
  0x12   :  { %1560 = vmatpush1.bf16.msra.mxu0 %v1559_v50  ;;  %1656 = vmatpush1.bf16.msra.mxu1 %v1655_v51  ;;  %v146_v9 = vld [vmem:[%s3595_s1 + $0x220] sm:$0xff]  ;;  %v1569_v12 = vpack.c.bf16 %v144_v7, %v139_v6  ;;  %v143_v14 = vld [vmem:[%s3595_s1 + $0x208] sm:$0xff]  ;;  %v140_v15 = vld [vmem:[%s3595_s1 + $0x1f0] sm:$0xff] }
  0x13   :  { %1562 = vmatprep.subr.bf16.mxu0 %v1561_v52  ;;  %1658 = vmatprep.subr.bf16.mxu1 %v1657_v56  ;;  %v138_v13 = vld [vmem:[%s3595_s1 + $0x1e0] sm:$0xff]  ;;  %v1665_v16 = vpack.c.bf16 %v146_v9, %v141_v8  ;;  %v145_v17 = vld [vmem:[%s3595_s1 + $0x218] sm:$0xff]  ;;  %v151_v20 = vld [vmem:[%s3595_s1 + $0x248] sm:$0xff] }
  0x14   :  { %v149_v18 = vld [vmem:[%s3595_s1 + $0x238] sm:$0xff]  ;;  %v154_v19 = vld [vmem:[%s3595_s1 + $0x260] sm:$0xff]  ;;  %v156_v21 = vld [vmem:[%s3595_s1 + $0x270] sm:$0xff]  ;;  %v1571_v22 = vpack.c.bf16 %v143_v14, %v138_v13  ;;  %v1667_v23 = vpack.c.bf16 %v145_v17, %v140_v15 }
  0x15   :  { %v1573_v24 = vpack.c.bf16 %v154_v19, %v149_v18  ;;  %v148_v25 = vld [vmem:[%s3595_s1 + $0x230] sm:$0xff]  ;;  %v153_v26 = vld [vmem:[%s3595_s1 + $0x258] sm:$0xff]  ;;  %v150_v27 = vld [vmem:[%s3595_s1 + $0x240] sm:$0xff]  ;;  %v1669_v28 = vpack.c.bf16 %v156_v21, %v151_v20 }
  0x16   :  { %1564 = vmatpush1.bf16.msra.mxu0 %v1563_v62  ;;  %1660 = vmatpush1.bf16.msra.mxu1 %v1659_v63  ;;  %v155_v29 = vld [vmem:[%s3595_s1 + $0x268] sm:$0xff]  ;;  %v164_v31 = vld [vmem:[%s3595_s1 + $0x2b0] sm:$0xff]  ;;  %v161_v32 = vld [vmem:[%s3595_s1 + $0x298] sm:$0xff]  ;;  %v1575_v34 = vpack.c.bf16 %v153_v26, %v148_v25 }
  0x17   :  { %1566 = vmatprep.subr.bf16.mxu0 %v1565_v0  ;;  %1662 = vmatprep.subr.bf16.mxu1 %v1661_v4  ;;  %v159_v30 = vld [vmem:[%s3595_s1 + $0x288] sm:$0xff]  ;;  %v166_v33 = vld [vmem:[%s3595_s1 + $0x2c0] sm:$0xff]  ;;  %v1671_v35 = vpack.c.bf16 %v155_v29, %v150_v27  ;;  %v160_v39 = vld [vmem:[%s3595_s1 + $0x290] sm:$0xff] }
  0x18   :  { %v1577_v36 = vpack.c.bf16 %v164_v31, %v159_v30  ;;  %v158_v37 = vld [vmem:[%s3595_s1 + $0x280] sm:$0xff]  ;;  %v163_v38 = vld [vmem:[%s3595_s1 + $0x2a8] sm:$0xff]  ;;  %v1673_v40 = vpack.c.bf16 %v166_v33, %v161_v32  ;;  %v165_v41 = vld [vmem:[%s3595_s1 + $0x2b8] sm:$0xff] }
  0x19   :  { %v169_v42 = vld [vmem:[%s3595_s1 + $0x2d8] sm:$0xff]  ;;  %v174_v43 = vld [vmem:[%s3595_s1 + $0x300] sm:$0xff]  ;;  %v171_v44 = vld [vmem:[%s3595_s1 + $0x2e8] sm:$0xff]  ;;  %v1579_v46 = vpack.c.bf16 %v163_v38, %v158_v37  ;;  %v1675_v47 = vpack.c.bf16 %v165_v41, %v160_v39 }
  0x1a   :  { %1568 = vmatpush1.bf16.msra.mxu0 %v1567_v10  ;;  %1664 = vmatpush1.bf16.msra.mxu1 %v1663_v11  ;;  %v176_v45 = vld [vmem:[%s3595_s1 + $0x310] sm:$0xff]  ;;  %v1581_v48 = vpack.c.bf16 %v174_v43, %v169_v42  ;;  %v173_v50 = vld [vmem:[%s3595_s1 + $0x2f8] sm:$0xff]  ;;  %v170_v51 = vld [vmem:[%s3595_s1 + $0x2e0] sm:$0xff] }
  0x1b   :  { %1570 = vmatprep.subr.bf16.mxu0 %v1569_v12  ;;  %1666 = vmatprep.subr.bf16.mxu1 %v1665_v16  ;;  %v168_v49 = vld [vmem:[%s3595_s1 + $0x2d0] sm:$0xff]  ;;  %v1677_v52 = vpack.c.bf16 %v176_v45, %v171_v44  ;;  %v175_v53 = vld [vmem:[%s3595_s1 + $0x308] sm:$0xff]  ;;  %v181_v56 = vld [vmem:[%s3595_s1 + $0x338] sm:$0xff] }
  0x1c   :  { %v179_v54 = vld [vmem:[%s3595_s1 + $0x328] sm:$0xff]  ;;  %v184_v55 = vld [vmem:[%s3595_s1 + $0x350] sm:$0xff]  ;;  %v186_v57 = vld [vmem:[%s3595_s1 + $0x360] sm:$0xff]  ;;  %v1583_v58 = vpack.c.bf16 %v173_v50, %v168_v49  ;;  %v1679_v59 = vpack.c.bf16 %v175_v53, %v170_v51 }
  0x1d   :  { %v1585_v60 = vpack.c.bf16 %v184_v55, %v179_v54  ;;  %v178_v61 = vld [vmem:[%s3595_s1 + $0x320] sm:$0xff]  ;;  %v183_v62 = vld [vmem:[%s3595_s1 + $0x348] sm:$0xff]  ;;  %v180_v63 = vld [vmem:[%s3595_s1 + $0x330] sm:$0xff]  ;;  %v1681_v0 = vpack.c.bf16 %v186_v57, %v181_v56 }
  0x1e   :  { %1572 = vmatpush1.bf16.msra.mxu0 %v1571_v22  ;;  %1668 = vmatpush1.bf16.msra.mxu1 %v1667_v23  ;;  %v185_v1 = vld [vmem:[%s3595_s1 + $0x358] sm:$0xff]  ;;  %v194_v3 = vld [vmem:[%s3595_s1 + $0x3a0] sm:$0xff]  ;;  %v191_v4 = vld [vmem:[%s3595_s1 + $0x388] sm:$0xff]  ;;  %v1587_v6 = vpack.c.bf16 %v183_v62, %v178_v61 }
  0x1f   :  { %1574 = vmatprep.subr.bf16.mxu0 %v1573_v24  ;;  %1670 = vmatprep.subr.bf16.mxu1 %v1669_v28  ;;  %v189_v2 = vld [vmem:[%s3595_s1 + $0x378] sm:$0xff]  ;;  %v196_v5 = vld [vmem:[%s3595_s1 + $0x3b0] sm:$0xff]  ;;  %v1683_v8 = vpack.c.bf16 %v185_v1, %v180_v63  ;;  %v190_v11 = vld [vmem:[%s3595_s1 + $0x380] sm:$0xff] }
  0x20   :  { %v188_v7 = vld [vmem:[%s3595_s1 + $0x370] sm:$0xff]  ;;  %v1589_v9 = vpack.c.bf16 %v194_v3, %v189_v2  ;;  %v193_v10 = vld [vmem:[%s3595_s1 + $0x398] sm:$0xff]  ;;  %v195_v12 = vld [vmem:[%s3595_s1 + $0x3a8] sm:$0xff]  ;;  %v1685_v13 = vpack.c.bf16 %v196_v5, %v191_v4 }
  0x21   :  { %v199_v14 = vld [vmem:[%s3595_s1 + $0x3c8] sm:$0xff]  ;;  %v204_v15 = vld [vmem:[%s3595_s1 + $0x3f0] sm:$0xff]  ;;  %v201_v17 = vld [vmem:[%s3595_s1 + $0x3d8] sm:$0xff]  ;;  %v1591_v19 = vpack.c.bf16 %v193_v10, %v188_v7  ;;  %v1687_v20 = vpack.c.bf16 %v195_v12, %v190_v11 }
  0x22   :  { %1576 = vmatpush1.bf16.msra.mxu0 %v1575_v34  ;;  %1672 = vmatpush1.bf16.msra.mxu1 %v1671_v35  ;;  %v2242_v16 = vld [vmem:[%s3596_s0 + $0x8] sm:$0xff]  ;;  %v206_v18 = vld [vmem:[%s3595_s1 + $0x400] sm:$0xff]  ;;  %v1593_v21 = vpack.c.bf16 %v204_v15, %v199_v14  ;;  %v200_v24 = vld [vmem:[%s3595_s1 + $0x3d0] sm:$0xff] }
  0x23   :  { %1578 = vmatprep.subr.bf16.mxu0 %v1577_v36  ;;  %1674 = vmatprep.subr.bf16.mxu1 %v1673_v40  ;;  %v198_v22 = vld [vmem:[%s3595_s1 + $0x3c0] sm:$0xff]  ;;  %v203_v23 = vld [vmem:[%s3595_s1 + $0x3e8] sm:$0xff]  ;;  %v1689_v25 = vpack.c.bf16 %v206_v18, %v201_v17  ;;  %v205_v26 = vld [vmem:[%s3595_s1 + $0x3f8] sm:$0xff] }
  0x24   :  { %463 = vmatprep.mubr.f32.mxu0 %v2242_v16  ;;  %785 = vmatprep.mubr.f32.mxu1 %v2242_v16  ;;  %v209_v27 = vld [vmem:[%s3595_s1 + $0x418] sm:$0xff]  ;;  %v214_v28 = vld [vmem:[%s3595_s1 + $0x440] sm:$0xff]  ;;  %v211_v29 = vld [vmem:[%s3595_s1 + $0x428] sm:$0xff]  ;;  %v1595_v31 = vpack.c.bf16 %v203_v23, %v198_v22  ;;  %v1691_v32 = vpack.c.bf16 %v205_v26, %v200_v24 }
  0x25   :  { %v216_v30 = vld [vmem:[%s3595_s1 + $0x450] sm:$0xff]  ;;  %v1597_v33 = vpack.c.bf16 %v214_v28, %v209_v27  ;;  %v213_v35 = vld [vmem:[%s3595_s1 + $0x438] sm:$0xff]  ;;  %v210_v36 = vld [vmem:[%s3595_s1 + $0x420] sm:$0xff] }
  0x26   :  { %1580 = vmatpush1.bf16.msra.mxu0 %v1579_v46  ;;  %1676 = vmatpush1.bf16.msra.mxu1 %v1675_v47  ;;  %v208_v34 = vld [vmem:[%s3595_s1 + $0x410] sm:$0xff]  ;;  %v1693_v37 = vpack.c.bf16 %v216_v30, %v211_v29  ;;  %v215_v38 = vld [vmem:[%s3595_s1 + $0x448] sm:$0xff]  ;;  %v221_v41 = vld [vmem:[%s3595_s1 + $0x478] sm:$0xff] }
  0x27   :  { %1582 = vmatprep.subr.bf16.mxu0 %v1581_v48  ;;  %1678 = vmatprep.subr.bf16.mxu1 %v1677_v52  ;;  %v219_v39 = vld [vmem:[%s3595_s1 + $0x468] sm:$0xff]  ;;  %v224_v40 = vld [vmem:[%s3595_s1 + $0x490] sm:$0xff]  ;;  %v226_v42 = vld [vmem:[%s3595_s1 + $0x4a0] sm:$0xff]  ;;  %v1599_v43 = vpack.c.bf16 %v213_v35, %v208_v34  ;;  %v1695_v44 = vpack.c.bf16 %v215_v38, %v210_v36 }
  0x28   :  { %v1601_v45 = vpack.c.bf16 %v224_v40, %v219_v39  ;;  %v218_v46 = vld [vmem:[%s3595_s1 + $0x460] sm:$0xff]  ;;  %v223_v47 = vld [vmem:[%s3595_s1 + $0x488] sm:$0xff]  ;;  %v220_v48 = vld [vmem:[%s3595_s1 + $0x470] sm:$0xff]  ;;  %v1697_v49 = vpack.c.bf16 %v226_v42, %v221_v41 }
  0x29   :  { %v225_v50 = vld [vmem:[%s3595_s1 + $0x498] sm:$0xff]  ;;  %v234_v52 = vld [vmem:[%s3595_s1 + $0x4e0] sm:$0xff]  ;;  %v231_v53 = vld [vmem:[%s3595_s1 + $0x4c8] sm:$0xff]  ;;  %v1603_v55 = vpack.c.bf16 %v223_v47, %v218_v46 }
  0x2a   :  { %1584 = vmatpush1.bf16.msra.mxu0 %v1583_v58  ;;  %1680 = vmatpush1.bf16.msra.mxu1 %v1679_v59  ;;  %v229_v51 = vld [vmem:[%s3595_s1 + $0x4b8] sm:$0xff]  ;;  %v236_v54 = vld [vmem:[%s3595_s1 + $0x4f0] sm:$0xff]  ;;  %v1699_v56 = vpack.c.bf16 %v225_v50, %v220_v48  ;;  %v235_v62 = vld [vmem:[%s3595_s1 + $0x4e8] sm:$0xff] }
  0x2b   :  { %1586 = vmatprep.subr.bf16.mxu0 %v1585_v60  ;;  %1682 = vmatprep.subr.bf16.mxu1 %v1681_v0  ;;  %v1605_v57 = vpack.c.bf16 %v234_v52, %v229_v51  ;;  %v228_v58 = vld [vmem:[%s3595_s1 + $0x4b0] sm:$0xff]  ;;  %v233_v59 = vld [vmem:[%s3595_s1 + $0x4d8] sm:$0xff]  ;;  %v230_v60 = vld [vmem:[%s3595_s1 + $0x4c0] sm:$0xff]  ;;  %v1701_v61 = vpack.c.bf16 %v236_v54, %v231_v53 }
  0x2c   :  { %v239_v63 = vld [vmem:[%s3595_s1 + $0x508] sm:$0xff]  ;;  %v244_v0 = vld [vmem:[%s3595_s1 + $0x530] sm:$0xff]  ;;  %v241_v1 = vld [vmem:[%s3595_s1 + $0x518] sm:$0xff]  ;;  %v1607_v3 = vpack.c.bf16 %v233_v59, %v228_v58  ;;  %v1703_v4 = vpack.c.bf16 %v235_v62, %v230_v60 }
  0x2d   :  { %v246_v2 = vld [vmem:[%s3595_s1 + $0x540] sm:$0xff]  ;;  %v1609_v5 = vpack.c.bf16 %v244_v0, %v239_v63  ;;  %v243_v7 = vld [vmem:[%s3595_s1 + $0x528] sm:$0xff]  ;;  %v245_v10 = vld [vmem:[%s3595_s1 + $0x538] sm:$0xff] }
  0x2e   :  { %1588 = vmatpush1.bf16.msra.mxu0 %v1587_v6  ;;  %1684 = vmatpush1.bf16.msra.mxu1 %v1683_v8  ;;  %v238_v6 = vld [vmem:[%s3595_s1 + $0x500] sm:$0xff]  ;;  %v1705_v8 = vpack.c.bf16 %v246_v2, %v241_v1  ;;  %v249_v11 = vld [vmem:[%s3595_s1 + $0x558] sm:$0xff]  ;;  %v251_v15 = vld [vmem:[%s3595_s1 + $0x568] sm:$0xff] }
  0x2f   :  { %1590 = vmatprep.subr.bf16.mxu0 %v1589_v9  ;;  %1686 = vmatprep.subr.bf16.mxu1 %v1685_v13  ;;  %v240_v9 = vld [vmem:[%s3595_s1 + $0x510] sm:$0xff]  ;;  %v254_v12 = vld [vmem:[%s3595_s1 + $0x580] sm:$0xff]  ;;  %v1611_v14 = vpack.c.bf16 %v243_v7, %v238_v6  ;;  %v2380_v18 = vld [vmem:[%s3596_s0 + $0x28] sm:$0xff] }
  0x30   :  { %v2369_v13 = vld [vmem:[%s3596_s0] sm:$0xff]  ;;  %v256_v17 = vld [vmem:[%s3595_s1 + $0x590] sm:$0xff]  ;;  %v253_v22 = vld [vmem:[%s3595_s1 + $0x578] sm:$0xff] }
  0x31   :  { %v250_v23 = vld [vmem:[%s3595_s1 + $0x560] sm:$0xff]  ;;  %v1709_v24 = vpack.c.bf16 %v256_v17, %v251_v15  ;;  %v259_v26 = vld [vmem:[%s3595_s1 + $0x5a8] sm:$0xff]  ;;  %v264_v27 = vld [vmem:[%s3595_s1 + $0x5d0] sm:$0xff] }
  0x32   :  { %1592 = vmatpush1.bf16.msra.mxu0 %v1591_v19  ;;  %1688 = vmatpush1.bf16.msra.mxu1 %v1687_v20  ;;  %v1707_v19 = vpack.c.bf16 %v245_v10, %v240_v9  ;;  %v1613_v20 = vpack.c.bf16 %v254_v12, %v249_v11  ;;  %v2405_v28 = vld [vmem:[%s3596_s0 + $0x20] sm:$0xff]  ;;  %v261_v29 = vld [vmem:[%s3595_s1 + $0x5b8] sm:$0xff]  ;;  %v1617_v34 = vpack.c.bf16 %v264_v27, %v259_v26  ;;  %v263_v36 = vld [vmem:[%s3595_s1 + $0x5c8] sm:$0xff] }
  0x33   :  { %1594 = vmatprep.subr.bf16.mxu0 %v1593_v21  ;;  %1690 = vmatprep.subr.bf16.mxu1 %v1689_v25  ;;  %v248_v21 = vld [vmem:[%s3595_s1 + $0x550] sm:$0xff]  ;;  %v255_v25 = vld [vmem:[%s3595_s1 + $0x588] sm:$0xff]  ;;  %v266_v30 = vld [vmem:[%s3595_s1 + $0x5e0] sm:$0xff] }
  0x34   :  { %v258_v35 = vld [vmem:[%s3595_s1 + $0x5a0] sm:$0xff]  ;;  %v1713_v38 = vpack.c.bf16 %v266_v30, %v261_v29  ;;  %v265_v39 = vld [vmem:[%s3595_s1 + $0x5d8] sm:$0xff]  ;;  %v275_v53 = vld [vmem:[%s3595_s1 + $0x628] sm:$0xff] }
  0x35   :  { %v269_v40 = vld [vmem:[%s3595_s1 + $0x5f8] sm:$0xff]  ;;  %v274_v41 = vld [vmem:[%s3595_s1 + $0x620] sm:$0xff]  ;;  %v1619_v46 = vpack.c.bf16 %v263_v36, %v258_v35  ;;  %v279_v54 = vld [vmem:[%s3595_s1 + $0x648] sm:$0xff] }
  0x36   :  { %1596 = vmatpush1.bf16.msra.mxu0 %v1595_v31  ;;  %1692 = vmatpush1.bf16.msra.mxu1 %v1691_v32  ;;  %v2418_v31 = vld [vmem:[%s3596_s0 + $0x48] sm:$0xff]  ;;  %v1615_v32 = vpack.c.bf16 %v253_v22, %v248_v21  ;;  %v2444_v42 = vld [vmem:[%s3596_s0 + $0x40] sm:$0xff]  ;;  %v1621_v48 = vpack.c.bf16 %v274_v41, %v269_v40  ;;  %v273_v50 = vld [vmem:[%s3595_s1 + $0x618] sm:$0xff] }
  0x37   :  { %1598 = vmatprep.subr.bf16.mxu0 %v1597_v33  ;;  %1694 = vmatprep.subr.bf16.mxu1 %v1693_v37  ;;  %v1711_v33 = vpack.c.bf16 %v255_v25, %v250_v23  ;;  %v260_v37 = vld [vmem:[%s3595_s1 + $0x5b0] sm:$0xff]  ;;  %v270_v51 = vld [vmem:[%s3595_s1 + $0x600] sm:$0xff]  ;;  %v2494_v59 = vld [vmem:[%s3596_s0 + $0x88] sm:$0xff] }
  0x38   :  { %v1715_v47 = vpack.c.bf16 %v265_v39, %v260_v37  ;;  %v286_v58 = vld [vmem:[%s3595_s1 + $0x680] sm:$0xff]  ;;  %v283_v0 = vld [vmem:[%s3595_s1 + $0x668] sm:$0xff]  ;;  %v280_v1 = vld [vmem:[%s3595_s1 + $0x650] sm:$0xff] }
  0x39   :  { %v278_v63 = vld [vmem:[%s3595_s1 + $0x640] sm:$0xff]  ;;  %v291_v7 = vld [vmem:[%s3595_s1 + $0x6a8] sm:$0xff]  ;;  %v293_v15 = vld [vmem:[%s3595_s1 + $0x6b8] sm:$0xff] }
  0x3a   :  { %1600 = vmatpush1.bf16.msra.mxu0 %v1599_v43  ;;  %1696 = vmatpush1.bf16.msra.mxu1 %v1695_v44  ;;  %v271_v43 = vld [vmem:[%s3595_s1 + $0x608] sm:$0xff]  ;;  %v276_v44 = vld [vmem:[%s3595_s1 + $0x630] sm:$0xff]  ;;  %v2520_v6 = vld [vmem:[%s3596_s0 + $0x80] sm:$0xff]  ;;  %v1627_v10 = vpack.c.bf16 %v283_v0, %v278_v63 }
  0x3b   :  { %1602 = vmatprep.subr.bf16.mxu0 %v1601_v45  ;;  %1698 = vmatprep.subr.bf16.mxu1 %v1697_v49  ;;  %v2456_v45 = vld [vmem:[%s3596_s0 + $0x68] sm:$0xff]  ;;  %v268_v49 = vld [vmem:[%s3595_s1 + $0x5f0] sm:$0xff]  ;;  %v1717_v52 = vpack.c.bf16 %v276_v44, %v271_v43  ;;  %v290_v17 = vld [vmem:[%s3595_s1 + $0x6a0] sm:$0xff] }
  0x3c   :  { %v1623_v60 = vpack.c.bf16 %v273_v50, %v268_v49  ;;  %v2532_v9 = vld [vmem:[%s3596_s0 + $0xa8] sm:$0xff]  ;;  %v304_v22 = vld [vmem:[%s3595_s1 + $0x710] sm:$0xff]  ;;  %v2558_v23 = vld [vmem:[%s3596_s0 + $0xa0] sm:$0xff] }
  0x3d   :  { %v299_v21 = vld [vmem:[%s3595_s1 + $0x6e8] sm:$0xff]  ;;  %v306_v25 = vld [vmem:[%s3595_s1 + $0x720] sm:$0xff]  ;;  %v305_v36 = vld [vmem:[%s3595_s1 + $0x718] sm:$0xff] }
  0x3e   :  { %1604 = vmatpush1.bf16.msra.mxu0 %v1603_v55  ;;  %1700 = vmatpush1.bf16.msra.mxu1 %v1699_v56  ;;  %v284_v55 = vld [vmem:[%s3595_s1 + $0x670] sm:$0xff]  ;;  %v2482_v56 = vld [vmem:[%s3596_s0 + $0x60] sm:$0xff]  ;;  %v2570_v26 = vld [vmem:[%s3596_s0 + $0xc8] sm:$0xff]  ;;  %v1633_v30 = vpack.c.bf16 %v304_v22, %v299_v21 }
  0x3f   :  { %1606 = vmatprep.subr.bf16.mxu0 %v1605_v57  ;;  %1702 = vmatprep.subr.bf16.mxu1 %v1701_v61  ;;  %v281_v57 = vld [vmem:[%s3595_s1 + $0x658] sm:$0xff]  ;;  %v1719_v61 = vpack.c.bf16 %v275_v53, %v270_v51  ;;  %v1625_v62 = vpack.c.bf16 %v284_v55, %v279_v54  ;;  %v2596_v39 = vld [vmem:[%s3596_s0 + $0xc0] sm:$0xff]  ;;  %v311_v40 = vld [vmem:[%s3595_s1 + $0x748] sm:$0xff] }
  0x40   :  { %v1721_v2 = vpack.c.bf16 %v286_v58, %v281_v57  ;;  %v309_v37 = vld [vmem:[%s3595_s1 + $0x738] sm:$0xff]  ;;  %v316_v41 = vld [vmem:[%s3595_s1 + $0x770] sm:$0xff]  ;;  %v2608_v43 = vld [vmem:[%s3596_s0 + $0xe8] sm:$0xff] }
  0x41   :  { %v313_v49 = vld [vmem:[%s3595_s1 + $0x758] sm:$0xff]  ;;  %v1733_v50 = vpack.c.bf16 %v316_v41, %v311_v40  ;;  %v310_v51 = vld [vmem:[%s3595_s1 + $0x740] sm:$0xff]  ;;  %v2634_v54 = vld [vmem:[%s3596_s0 + $0x108] sm:$0xff] }
  0x42   :  { %1608 = vmatpush1.bf16.msra.mxu0 %v1607_v3  ;;  %1704 = vmatpush1.bf16.msra.mxu1 %v1703_v4  ;;  %v285_v3 = vld [vmem:[%s3595_s1 + $0x678] sm:$0xff]  ;;  %v2628_v53 = vld [vmem:[%s3596_s0 + $0xe0] sm:$0xff]  ;;  %v319_v58 = vld [vmem:[%s3595_s1 + $0x788] sm:$0xff] }
  0x43   :  { %1610 = vmatprep.subr.bf16.mxu0 %v1609_v5  ;;  %1706 = vmatprep.subr.bf16.mxu1 %v1705_v8  ;;  %v289_v4 = vld [vmem:[%s3595_s1 + $0x698] sm:$0xff]  ;;  %v294_v5 = vld [vmem:[%s3595_s1 + $0x6c0] sm:$0xff]  ;;  %v296_v8 = vld [vmem:[%s3595_s1 + $0x6d0] sm:$0xff]  ;;  %v1723_v11 = vpack.c.bf16 %v285_v3, %v280_v1 }
  0x44   :  { %v1629_v12 = vpack.c.bf16 %v294_v5, %v289_v4  ;;  %v321_v63 = vld [vmem:[%s3595_s1 + $0x798] sm:$0xff]  ;;  %v2660_v0 = vld [vmem:[%s3596_s0 + $0x128] sm:$0xff]  ;;  %v318_v1 = vld [vmem:[%s3595_s1 + $0x780] sm:$0xff] }
  0x45   :  { %464 = vmatmul.mubr.f32.vlgmr.msra.gmra.mrb[0].mxu0 %v2369_v13  ;;  %786 = vmatmul.mubr.f32.vlgmr.msra.gmra.mrb[0].mxu1 %v2369_v13  ;;  %v320_v3 = vld [vmem:[%s3595_s1 + $0x790] sm:$0xff]  ;;  %v2674_v4 = vld [vmem:[%s3596_s0 + $0x120] sm:$0xff]  ;;  %v2680_v5 = vld [vmem:[%s3596_s0 + $0x148] sm:$0xff] }
  0x46   :  { %1612 = vmatpush1.bf16.msra.mxu0 %v1611_v14  ;;  %469 = vmatprep.mubr.f32.mxu0 %v2380_v18  ;;  %v288_v14 = vld [vmem:[%s3595_s1 + $0x690] sm:$0xff]  ;;  %v2751_v21 = vld [vmem:[%s3596_s0 + $0x1e8] sm:$0xff]  ;;  %v2759_v22 = vld [vmem:[%s3596_s0 + $0x1e0] sm:$0xff] }
  0x47   :  { %791 = vmatprep.mubr.f32.mxu1 %v2380_v18  ;;  %1708 = vmatpush1.bf16.msra.mxu1 %v1707_v19  ;;  %v1725_v19 = vpack.c.bf16 %v296_v8, %v291_v7  ;;  %v1631_v27 = vpack.c.bf16 %v293_v15, %v288_v14  ;;  %v1923_v7 = vmov 0.0|0.0   ;;  %v2689_v8 = vld [vmem:[%s3596_s0 + $0x140] sm:$0xff]  ;;  %v2723_v15 = vld [vmem:[%s3596_s0 + $0x1a8] sm:$0xff]  ;;  %v92_v40 = vld [vmem:[%s3595_s1 + $0x70] sm:$0xff] }
  0x48   :  { %1614 = vmatprep.subr.bf16.mxu0 %v1613_v20  ;;  %1710 = vmatprep.subr.bf16.mxu1 %v1709_v24  ;;  %v295_v20 = vld [vmem:[%s3595_s1 + $0x6c8] sm:$0xff]  ;;  %v301_v24 = vld [vmem:[%s3595_s1 + $0x6f8] sm:$0xff]  ;;  %v2717_v14 = vld [vmem:[%s3596_s0 + $0x180] sm:$0xff] }
  0x49   :  { %470 = vmatmul.mubr.f32.gmra.mrb[2].mxu0 %v2405_v28  ;;  %792 = vmatmul.mubr.f32.gmra.mrb[2].mxu1 %v2405_v28  ;;  %v1727_v29 = vpack.c.bf16 %v295_v20, %v290_v17  ;;  %v1729_v35 = vpack.c.bf16 %v306_v25, %v301_v24  ;;  %v2731_v17 = vld [vmem:[%s3596_s0 + $0x1a0] sm:$0xff]  ;;  %v2765_v24 = vld [vmem:[%s3596_s0 + $0x18] sm:$0xff] }
  0x4a   :  { %475 = vmatprep.mubr.f32.mxu0 %v2418_v31  ;;  %797 = vmatprep.mubr.f32.mxu1 %v2418_v31  ;;  %v2745_v20 = vld [vmem:[%s3596_s0 + $0x1c0] sm:$0xff]  ;;  %v97_v41 = vld [vmem:[%s3595_s1 + $0x98] sm:$0xff] }
  0x4b   :  { %1616 = vmatpush1.bf16.msra.mxu0 %v1615_v32  ;;  %1712 = vmatpush1.bf16.msra.mxu1 %v1711_v33  ;;  %v298_v32 = vld [vmem:[%s3595_s1 + $0x6e0] sm:$0xff]  ;;  %v303_v33 = vld [vmem:[%s3595_s1 + $0x708] sm:$0xff] }
  0x4c   :  { %1618 = vmatprep.subr.bf16.mxu0 %v1617_v34  ;;  %1714 = vmatprep.subr.bf16.mxu1 %v1713_v38  ;;  %v300_v34 = vld [vmem:[%s3595_s1 + $0x6f0] sm:$0xff]  ;;  %v314_v38 = vld [vmem:[%s3595_s1 + $0x760] sm:$0xff]  ;;  %v1635_v44 = vpack.c.bf16 %v303_v33, %v298_v32  ;;  %v177_v33 = vld [vmem:[%s3595_s1 + $0x318] sm:$0xff] }
  0x4d   :  { %476 = vmatmul.mubr.f32.gmra.mrb[4].mxu0 %v2444_v42  ;;  %798 = vmatmul.mubr.f32.gmra.mrb[4].mxu1 %v2444_v42  ;;  %v82_v25 = vld [vmem:[%s3595_s1 + $0x20] sm:$0xff]  ;;  %v172_v32 = vld [vmem:[%s3595_s1 + $0x2f0] sm:$0xff] }
  0x4e   :  { %481 = vmatprep.mubr.f32.mxu0 %v2456_v45  ;;  %803 = vmatprep.mubr.f32.mxu1 %v2456_v45 }
  0x4f   :  { %1620 = vmatpush1.bf16.msra.mxu0 %v1619_v46  ;;  %1716 = vmatpush1.bf16.msra.mxu1 %v1715_v47  ;;  %v1731_v46 = vpack.c.bf16 %v305_v36, %v300_v34  ;;  %v1637_v47 = vpack.c.bf16 %v314_v38, %v309_v37  ;;  %v2792_v34 = vld [vmem:[%s3596_s0 + $0x10] sm:$0xff]  ;;  %v2799_v36 = vld [vmem:[%s3596_s0 + $0x38] sm:$0xff]  ;;  %v1741_v38 = vpack.c.bf16 %v177_v33, %v172_v32 }
  0x50   :  { %1622 = vmatprep.subr.bf16.mxu0 %v1621_v48  ;;  %1718 = vmatprep.subr.bf16.mxu1 %v1717_v52  ;;  %v308_v48 = vld [vmem:[%s3595_s1 + $0x730] sm:$0xff]  ;;  %v315_v52 = vld [vmem:[%s3595_s1 + $0x768] sm:$0xff]  ;;  %v117_v32 = vld [vmem:[%s3595_s1 + $0x138] sm:$0xff] }
  0x51   :  { %482 = vmatmul.mubr.f32.gmra.mrb[6].mxu0 %v2482_v56  ;;  %804 = vmatmul.mubr.f32.gmra.mrb[6].mxu1 %v2482_v56  ;;  %v1639_v55 = vpack.c.bf16 %v313_v49, %v308_v48  ;;  %v1735_v57 = vpack.c.bf16 %v315_v52, %v310_v51  ;;  %v187_v48 = vld [vmem:[%s3595_s1 + $0x368] sm:$0xff]  ;;  %v2824_v49 = vld [vmem:[%s3596_s0 + $0x30] sm:$0xff]  ;;  %v1743_v51 = vpack.c.bf16 %v97_v41, %v92_v40  ;;  %v2903_v41 = vld [vmem:[%s3596_s0 + $0x98] sm:$0xff] }
  0x52   :  { %487 = vmatprep.mubr.f32.mxu0 %v2494_v59  ;;  %809 = vmatprep.mubr.f32.mxu1 %v2494_v59  ;;  %v272_v33 = vld [vmem:[%s3595_s1 + $0x610] sm:$0xff] }
  0x53   :  { %1624 = vmatpush1.bf16.msra.mxu0 %v1623_v60  ;;  %1720 = vmatpush1.bf16.msra.mxu1 %v1719_v61  ;;  %v162_v60 = vld [vmem:[%s3595_s1 + $0x2a0] sm:$0xff]  ;;  %v167_v61 = vld [vmem:[%s3595_s1 + $0x2c8] sm:$0xff]  ;;  %v2896_v40 = vld [vmem:[%s3596_s0 + $0x70] sm:$0xff] }
  0x54   :  { %1626 = vmatprep.subr.bf16.mxu0 %v1625_v62  ;;  %1722 = vmatprep.subr.bf16.mxu1 %v1721_v2  ;;  %v2651_v62 = vld [vmem:[%s3596_s0 + $0x100] sm:$0xff]  ;;  %v1737_v2 = vpack.c.bf16 %v167_v61, %v162_v60  ;;  %v267_v61 = vld [vmem:[%s3595_s1 + $0x5e8] sm:$0xff] }
  0x55   :  { %488 = vmatmul.mubr.f32.gmra.mrb[8].mxu0 %v2520_v6  ;;  %810 = vmatmul.mubr.f32.gmra.mrb[8].mxu1 %v2520_v6  ;;  %v262_v60 = vld [vmem:[%s3595_s1 + $0x5c0] sm:$0xff] }
  0x56   :  { %493 = vmatprep.mubr.f32.mxu0 %v2532_v9  ;;  %815 = vmatprep.mubr.f32.mxu1 %v2532_v9 }
  0x57   :  { %1628 = vmatpush1.bf16.msra.mxu0 %v1627_v10  ;;  %1724 = vmatpush1.bf16.msra.mxu1 %v1723_v11  ;;  %v2695_v10 = vld [vmem:[%s3596_s0 + $0x168] sm:$0xff]  ;;  %v2703_v11 = vld [vmem:[%s3596_s0 + $0x160] sm:$0xff] }
  0x58   :  { %1630 = vmatprep.subr.bf16.mxu0 %v1629_v12  ;;  %1726 = vmatprep.subr.bf16.mxu1 %v1725_v19  ;;  %v2709_v12 = vld [vmem:[%s3596_s0 + $0x188] sm:$0xff] }
  0x59   :  { %494 = vmatmul.mubr.f32.gmra.mrb[10].mxu0 %v2558_v23  ;;  %816 = vmatmul.mubr.f32.gmra.mrb[10].mxu1 %v2558_v23  ;;  %v2737_v19 = vld [vmem:[%s3596_s0 + $0x1c8] sm:$0xff] }
  0x5a   :  { %499 = vmatprep.mubr.f32.mxu0 %v2570_v26  ;;  %821 = vmatprep.mubr.f32.mxu1 %v2570_v26 }
  0x5b   :  { %1632 = vmatpush1.bf16.msra.mxu0 %v1631_v27  ;;  %1728 = vmatpush1.bf16.msra.mxu1 %v1727_v29  ;;  %v87_v27 = vld [vmem:[%s3595_s1 + $0x48] sm:$0xff]  ;;  %v242_v29 = vld [vmem:[%s3595_s1 + $0x520] sm:$0xff] }
  0x5c   :  { %1634 = vmatprep.subr.bf16.mxu0 %v1633_v30  ;;  %1730 = vmatprep.subr.bf16.mxu1 %v1729_v35  ;;  %v247_v30 = vld [vmem:[%s3595_s1 + $0x548] sm:$0xff]  ;;  %v1739_v35 = vpack.c.bf16 %v87_v27, %v82_v25  ;;  %v1776_v27 = vpack.c.bf16 %v267_v61, %v262_v60  ;;  %v2931_v60 = vld [vmem:[%s3596_s0 + $0x90] sm:$0xff]  ;;  %v2938_v61 = vld [vmem:[%s3596_s0 + $0xb8] sm:$0xff] }
  0x5d   :  { %500 = vmatmul.mubr.f32.gmra.mrb[12].mxu0 %v2596_v39  ;;  %822 = vmatmul.mubr.f32.gmra.mrb[12].mxu1 %v2596_v39  ;;  %v1770_v37 = vpack.c.bf16 %v247_v30, %v242_v29  ;;  %v112_v30 = vld [vmem:[%s3595_s1 + $0x110] sm:$0xff] }
  0x5e   :  { %505 = vmatprep.mubr.f32.mxu0 %v2608_v43  ;;  %827 = vmatprep.mubr.f32.mxu1 %v2608_v43 }
  0x5f   :  { %1636 = vmatpush1.bf16.msra.mxu0 %v1635_v44  ;;  %1732 = vmatpush1.bf16.msra.mxu1 %v1731_v46  ;;  %v252_v44 = vld [vmem:[%s3595_s1 + $0x570] sm:$0xff]  ;;  %v257_v46 = vld [vmem:[%s3595_s1 + $0x598] sm:$0xff] }
  0x60   :  { %1638 = vmatprep.subr.bf16.mxu0 %v1637_v47  ;;  %1734 = vmatprep.subr.bf16.mxu1 %v1733_v50  ;;  %v182_v47 = vld [vmem:[%s3595_s1 + $0x340] sm:$0xff]  ;;  %v2833_v50 = vld [vmem:[%s3596_s0 + $0x58] sm:$0xff]  ;;  %v1773_v52 = vpack.c.bf16 %v257_v46, %v252_v44  ;;  %v1751_v44 = vpack.c.bf16 %v117_v32, %v112_v30  ;;  %v292_v30 = vld [vmem:[%s3595_s1 + $0x6b0] sm:$0xff] }
  0x61   :  { %506 = vmatmul.mubr.f32.gmra.mrb[14].mxu0 %v2628_v53  ;;  %828 = vmatmul.mubr.f32.gmra.mrb[14].mxu1 %v2628_v53  ;;  %v297_v32 = vld [vmem:[%s3595_s1 + $0x6d8] sm:$0xff] }
  0x62   :  { %511 = vmatprep.mubr.f32.mxu0 %v2634_v54  ;;  %833 = vmatprep.mubr.f32.mxu1 %v2634_v54 }
  0x63   :  { %1640 = vmatpush1.bf16.msra.mxu0 %v1639_v55  ;;  %1736 = vmatpush1.bf16.msra.mxu1 %v1735_v57  ;;  %v1745_v55 = vpack.c.bf16 %v187_v48, %v182_v47  ;;  %v102_v57 = vld [vmem:[%s3595_s1 + $0xc0] sm:$0xff] }
  0x64   :  { %592 = vmatprep.subr.mxu0 %v319_v58  ;;  %914 = vmatprep.subr.mxu1 %v321_v63  ;;  %v107_v58 = vld [vmem:[%s3595_s1 + $0xe8] sm:$0xff]  ;;  %v192_v63 = vld [vmem:[%s3595_s1 + $0x390] sm:$0xff]  ;;  %v122_v48 = vld [vmem:[%s3595_s1 + $0x160] sm:$0xff] }
  0x65   :  { %512 = vmatmul.mubr.f32.gmra.mrb[16].mxu0 %v2651_v62  ;;  %834 = vmatmul.mubr.f32.gmra.mrb[16].mxu1 %v2651_v62  ;;  %v1747_v25 = vpack.c.bf16 %v107_v58, %v102_v57  ;;  %v212_v57 = vld [vmem:[%s3595_s1 + $0x430] sm:$0xff]  ;;  %v217_v58 = vld [vmem:[%s3595_s1 + $0x458] sm:$0xff] }
  0x66   :  { %517 = vmatprep.mubr.f32.mxu0 %v2660_v0  ;;  %839 = vmatprep.mubr.f32.mxu1 %v2660_v0 }
  0x67   :  { %593 = vmatpush1.msra.mxu0 %v318_v1  ;;  %915 = vmatpush1.msra.mxu1 %v320_v3  ;;  %v197_v1 = vld [vmem:[%s3595_s1 + $0x3b8] sm:$0xff] }
  0x68   :  { %1738 = vmatprep.subr.bf16.mxu0 %v1737_v2  ;;  %1769 = vmatprep.subr.bf16.mxu1 %v1923_v7  ;;  %v2861_v2 = vld [vmem:[%s3596_s0 + $0x50] sm:$0xff]  ;;  %v2868_v3 = vld [vmem:[%s3596_s0 + $0x78] sm:$0xff]  ;;  %v1749_v29 = vpack.c.bf16 %v197_v1, %v192_v63 }
  0x69   :  { %518 = vmatmul.mubr.f32.gmra.mrb[18].mxu0 %v2674_v4  ;;  %840 = vmatmul.mubr.f32.gmra.mrb[18].mxu1 %v2674_v4 }
  0x6a   :  { %523 = vmatprep.mubr.f32.mxu0 %v2680_v5  ;;  %845 = vmatprep.mubr.f32.mxu1 %v2680_v5 }
  0x6d   :  { %524 = vmatmul.mubr.f32.gmra.mrb[20].mxu0 %v2689_v8  ;;  %846 = vmatmul.mubr.f32.gmra.mrb[20].mxu1 %v2689_v8 }
  0x6e   :  { %529 = vmatprep.mubr.f32.mxu0 %v2695_v10  ;;  %851 = vmatprep.mubr.f32.mxu1 %v2695_v10 }
  0x71   :  { %530 = vmatmul.mubr.f32.gmra.mrb[22].mxu0 %v2703_v11  ;;  %852 = vmatmul.mubr.f32.gmra.mrb[22].mxu1 %v2703_v11 }
  0x72   :  { %535 = vmatprep.mubr.f32.mxu0 %v2709_v12  ;;  %857 = vmatprep.mubr.f32.mxu1 %v2709_v12 }
  0x75   :  { %536 = vmatmul.mubr.f32.gmra.mrb[24].mxu0 %v2717_v14  ;;  %858 = vmatmul.mubr.f32.gmra.mrb[24].mxu1 %v2717_v14 }
  0x76   :  { %541 = vmatprep.mubr.f32.mxu0 %v2723_v15  ;;  %863 = vmatprep.mubr.f32.mxu1 %v2723_v15 }
  0x79   :  { %542 = vmatmul.mubr.f32.gmra.mrb[26].mxu0 %v2731_v17  ;;  %864 = vmatmul.mubr.f32.gmra.mrb[26].mxu1 %v2731_v17 }
  0x7a   :  { %547 = vmatprep.mubr.f32.mxu0 %v2737_v19  ;;  %869 = vmatprep.mubr.f32.mxu1 %v2737_v19 }
  0x7d   :  { %548 = vmatmul.mubr.f32.gmra.mrb[28].mxu0 %v2745_v20  ;;  %870 = vmatmul.mubr.f32.gmra.mrb[28].mxu1 %v2745_v20 }
  0x7e   :  { %553 = vmatprep.mubr.f32.mxu0 %v2751_v21  ;;  %875 = vmatprep.mubr.f32.mxu1 %v2751_v21 }
  0x81   :  { %554 = vmatmul.mubr.f32.gmra.mrb[30].mxu0 %v2759_v22  ;;  %876 = vmatmul.mubr.f32.gmra.mrb[30].mxu1 %v2759_v22 }
  0x82   :  { %1417 = vmatprep.mubr.msk.f32.mxu0 %vm350_vm0, %v2765_v24  ;;  %1433 = vmatprep.mubr.msk.f32.mxu1 %vm350_vm0, %v2765_v24 }
  0x85   :  { %625 = vmatmul.mubr.f32.vlgmr.msra.gmra.mrb[0].mxu0 %v2792_v34  ;;  %947 = vmatmul.mubr.f32.vlgmr.msra.gmra.mrb[0].mxu1 %v2792_v34 }
  0x86   :  { %1740 = vmatpush3.bf16.msra.mxu0 %v1739_v35  ;;  %1418 = vmatprep.mubr.msk.f32.mxu0 %vm350_vm0, %v2799_v36  ;;  %v277_v35 = vld [vmem:[%s3595_s1 + $0x638] sm:$0xff] }
  0x87   :  { %1434 = vmatprep.mubr.msk.f32.mxu1 %vm350_vm0, %v2799_v36  ;;  %1771 = vmatpush1.bf16.msra.mxu1 %v1770_v37  ;;  %v202_v37 = vld [vmem:[%s3595_s1 + $0x3e0] sm:$0xff]  ;;  %v1779_v46 = vpack.c.bf16 %v277_v35, %v272_v33  ;;  %v227_v35 = vld [vmem:[%s3595_s1 + $0x4a8] sm:$0xff] }
  0x88   :  { %1742 = vmatprep.subr.bf16.mxu0 %v1741_v38  ;;  %1772 = vmatprep.subr.bf16.mxu1 %v1923_v7  ;;  %v207_v38 = vld [vmem:[%s3595_s1 + $0x408] sm:$0xff]  ;;  %v222_v33 = vld [vmem:[%s3595_s1 + $0x480] sm:$0xff] }
  0x89   :  { %631 = vmatmul.mubr.f32.gmra.mrb[2].mxu0 %v2824_v49  ;;  %953 = vmatmul.mubr.f32.gmra.mrb[2].mxu1 %v2824_v49  ;;  %v1753_v47 = vpack.c.bf16 %v207_v38, %v202_v37  ;;  %v2966_v37 = vld [vmem:[%s3596_s0 + $0xb0] sm:$0xff]  ;;  %v2973_v38 = vld [vmem:[%s3596_s0 + $0xd8] sm:$0xff] }
  0x8a   :  { %1419 = vmatprep.mubr.msk.f32.mxu0 %vm350_vm0, %v2833_v50  ;;  %1435 = vmatprep.mubr.msk.f32.mxu1 %vm350_vm0, %v2833_v50 }
  0x8b   :  { %1744 = vmatpush3.bf16.msra.mxu0 %v1743_v51  ;;  %1774 = vmatpush1.bf16.msra.mxu1 %v1773_v52  ;;  %v127_v51 = vld [vmem:[%s3595_s1 + $0x188] sm:$0xff]  ;;  %v282_v52 = vld [vmem:[%s3595_s1 + $0x660] sm:$0xff] }
  0x8c   :  { %1746 = vmatprep.subr.bf16.mxu0 %v1745_v55  ;;  %1775 = vmatprep.subr.bf16.mxu1 %v1923_v7  ;;  %v287_v55 = vld [vmem:[%s3595_s1 + $0x688] sm:$0xff]  ;;  %v1755_v63 = vpack.c.bf16 %v127_v51, %v122_v48  ;;  %v142_v48 = vld [vmem:[%s3595_s1 + $0x200] sm:$0xff] }
  0x8d   :  { %637 = vmatmul.mubr.f32.gmra.mrb[4].mxu0 %v2861_v2  ;;  %959 = vmatmul.mubr.f32.gmra.mrb[4].mxu1 %v2861_v2  ;;  %v1782_v1 = vpack.c.bf16 %v287_v55, %v282_v52  ;;  %v147_v51 = vld [vmem:[%s3595_s1 + $0x228] sm:$0xff]  ;;  %v302_v52 = vld [vmem:[%s3595_s1 + $0x700] sm:$0xff] }
  0x8e   :  { %1420 = vmatprep.mubr.msk.f32.mxu0 %vm350_vm0, %v2868_v3  ;;  %1436 = vmatprep.mubr.msk.f32.mxu1 %vm350_vm0, %v2868_v3  ;;  %v307_v55 = vld [vmem:[%s3595_s1 + $0x728] sm:$0xff] }
  0x8f   :  { %1748 = vmatpush3.bf16.msra.mxu0 %v1747_v25  ;;  %1777 = vmatpush1.bf16.msra.mxu1 %v1776_v27  ;;  %v1757_v25 = vpack.c.bf16 %v217_v58, %v212_v57  ;;  %v132_v27 = vld [vmem:[%s3595_s1 + $0x1b0] sm:$0xff]  ;;  %v237_v58 = vld [vmem:[%s3595_s1 + $0x4f8] sm:$0xff] }
  0x90   :  { %1750 = vmatprep.subr.bf16.mxu0 %v1749_v29  ;;  %1778 = vmatprep.subr.bf16.mxu1 %v1923_v7  ;;  %v137_v29 = vld [vmem:[%s3595_s1 + $0x1d8] sm:$0xff]  ;;  %v232_v57 = vld [vmem:[%s3595_s1 + $0x4d0] sm:$0xff] }
  0x91   :  { %643 = vmatmul.mubr.f32.gmra.mrb[6].mxu0 %v2896_v40  ;;  %965 = vmatmul.mubr.f32.gmra.mrb[6].mxu1 %v2896_v40 }
  0x92   :  { %1421 = vmatprep.mubr.msk.f32.mxu0 %vm350_vm0, %v2903_v41  ;;  %1437 = vmatprep.mubr.msk.f32.mxu1 %vm350_vm0, %v2903_v41 }
  0x93   :  { %1752 = vmatpush3.bf16.msra.mxu0 %v1751_v44  ;;  %1780 = vmatpush1.bf16.msra.mxu1 %v1779_v46  ;;  %v1759_v44 = vpack.c.bf16 %v137_v29, %v132_v27  ;;  %v1785_v46 = vpack.c.bf16 %v297_v32, %v292_v30  ;;  %v1788_v27 = vpack.c.bf16 %v307_v55, %v302_v52  ;;  %v152_v30 = vld [vmem:[%s3595_s1 + $0x250] sm:$0xff]  ;;  %v157_v32 = vld [vmem:[%s3595_s1 + $0x278] sm:$0xff]  ;;  %v322_v55 = vld [vmem:[%s3595_s1 + $0x7a0] sm:$0xff] }
  0x94   :  { %1754 = vmatprep.subr.bf16.mxu0 %v1753_v47  ;;  %1781 = vmatprep.subr.bf16.mxu1 %v1923_v7  ;;  %v1761_v47 = vpack.c.bf16 %v227_v35, %v222_v33  ;;  %v1765_v29 = vpack.c.bf16 %v237_v58, %v232_v57  ;;  %v312_v33 = vld [vmem:[%s3595_s1 + $0x750] sm:$0xff]  ;;  %v317_v35 = vld [vmem:[%s3595_s1 + $0x778] sm:$0xff] }
  0x95   :  { %649 = vmatmul.mubr.f32.gmra.mrb[8].mxu0 %v2931_v60  ;;  %971 = vmatmul.mubr.f32.gmra.mrb[8].mxu1 %v2931_v60  ;;  %v3054_v52 = vld [vmem:[%s3596_s0 + $0x138] sm:$0xff]  ;;  %v3066_v57 = vld [vmem:[%s3596_s0 + $0x130] sm:$0xff] }
  0x96   :  { %1422 = vmatprep.mubr.msk.f32.mxu0 %vm350_vm0, %v2938_v61  ;;  %1438 = vmatprep.mubr.msk.f32.mxu1 %vm350_vm0, %v2938_v61  ;;  %v3073_v58 = vld [vmem:[%s3596_s0 + $0x158] sm:$0xff] }
  0x97   :  { %1756 = vmatpush3.bf16.msra.mxu0 %v1755_v63  ;;  %1783 = vmatpush1.bf16.msra.mxu1 %v1782_v1  ;;  %v3001_v63 = vld [vmem:[%s3596_s0 + $0xd0] sm:$0xff]  ;;  %v3008_v1 = vld [vmem:[%s3596_s0 + $0xf8] sm:$0xff] }
  0x98   :  { %1758 = vmatprep.subr.bf16.mxu0 %v1757_v25  ;;  %1784 = vmatprep.subr.bf16.mxu1 %v1923_v7  ;;  %v1763_v25 = vpack.c.bf16 %v147_v51, %v142_v48  ;;  %v1791_v48 = vpack.c.bf16 %v317_v35, %v312_v33  ;;  %v3047_v51 = vld [vmem:[%s3596_s0 + $0x110] sm:$0xff]  ;;  %v3121_v33 = vld [vmem:[%s3596_s0 + $0x1b8] sm:$0xff] }
  0x99   :  { %655 = vmatmul.mubr.f32.gmra.mrb[10].mxu0 %v2966_v37  ;;  %977 = vmatmul.mubr.f32.gmra.mrb[10].mxu1 %v2966_v37  ;;  %v3130_v35 = vld [vmem:[%s3596_s0 + $0x1b0] sm:$0xff] }
  0x9a   :  { %1423 = vmatprep.mubr.msk.f32.mxu0 %vm350_vm0, %v2973_v38  ;;  %1439 = vmatprep.mubr.msk.f32.mxu1 %vm350_vm0, %v2973_v38 }
  0x9b   :  { %1760 = vmatpush3.bf16.msra.mxu0 %v1759_v44  ;;  %1786 = vmatpush1.bf16.msra.mxu1 %v1785_v46  ;;  %v3030_v44 = vld [vmem:[%s3596_s0 + $0xf0] sm:$0xff]  ;;  %v3037_v46 = vld [vmem:[%s3596_s0 + $0x118] sm:$0xff] }
  0x9c   :  { %1762 = vmatprep.subr.bf16.mxu0 %v1761_v47  ;;  %1787 = vmatprep.subr.bf16.mxu1 %v1923_v7  ;;  %v1767_v47 = vpack.c.bf16 %v157_v32, %v152_v30  ;;  %v3105_v30 = vld [vmem:[%s3596_s0 + $0x198] sm:$0xff]  ;;  %v3114_v32 = vld [vmem:[%s3596_s0 + $0x190] sm:$0xff] }
  0x9d   :  { %661 = vmatmul.mubr.f32.gmra.mrb[12].mxu0 %v3001_v63  ;;  %983 = vmatmul.mubr.f32.gmra.mrb[12].mxu1 %v3001_v63 }
  0x9e   :  { %1424 = vmatprep.mubr.msk.f32.mxu0 %vm350_vm0, %v3008_v1  ;;  %1440 = vmatprep.mubr.msk.f32.mxu1 %vm350_vm0, %v3008_v1 }
  0x9f   :  { %1764 = vmatpush3.bf16.msra.mxu0 %v1763_v25  ;;  %1789 = vmatpush1.bf16.msra.mxu1 %v1788_v27  ;;  %v3082_v25 = vld [vmem:[%s3596_s0 + $0x150] sm:$0xff]  ;;  %v3089_v27 = vld [vmem:[%s3596_s0 + $0x178] sm:$0xff] }
  0xa0   :  { %1766 = vmatprep.subr.bf16.mxu0 %v1765_v29  ;;  %1790 = vmatprep.subr.bf16.mxu1 %v1923_v7  ;;  %v1924_v7 = vmov 0.0   ;;  %v3098_v29 = vld [vmem:[%s3596_s0 + $0x170] sm:$0xff] }
  0xa1   :  { %667 = vmatmul.mubr.f32.gmra.mrb[14].mxu0 %v3030_v44  ;;  %989 = vmatmul.mubr.f32.gmra.mrb[14].mxu1 %v3030_v44 }
  0xa2   :  { %1425 = vmatprep.mubr.msk.f32.mxu0 %vm350_vm0, %v3037_v46  ;;  %1441 = vmatprep.mubr.msk.f32.mxu1 %vm350_vm0, %v3037_v46 }
  0xa3   :  { %1768 = vmatpush3.bf16.msra.mxu0 %v1767_v47  ;;  %1792 = vmatpush1.bf16.msra.mxu1 %v1791_v48  ;;  %v3137_v47 = vld [vmem:[%s3596_s0 + $0x1d8] sm:$0xff]  ;;  %v3146_v48 = vld [vmem:[%s3596_s0 + $0x1d0] sm:$0xff] }
  0xa4   :  { %1220 = vmatprep.subr.mxu1 %v1924_v7  ;;  %v3153_v7 = vld [vmem:[%s3596_s0 + $0x1f8] sm:$0xff] }
  0xa5   :  { %673 = vmatmul.mubr.f32.gmra.mrb[16].mxu0 %v3047_v51  ;;  %995 = vmatmul.mubr.f32.gmra.mrb[16].mxu1 %v3047_v51 }
  0xa6   :  { %1426 = vmatprep.mubr.msk.f32.mxu0 %vm350_vm0, %v3054_v52  ;;  %1442 = vmatprep.mubr.msk.f32.mxu1 %vm350_vm0, %v3054_v52 }
  0xa7   :  { %1221 = vmatpush1.msra.mxu1 %v322_v55  ;;  %v3162_v55 = vld [vmem:[%s3596_s0 + $0x1f0] sm:$0xff] }
  0xa9   :  { %679 = vmatmul.mubr.f32.gmra.mrb[18].mxu0 %v3066_v57  ;;  %1001 = vmatmul.mubr.f32.gmra.mrb[18].mxu1 %v3066_v57 }
  0xaa   :  { %1427 = vmatprep.mubr.msk.f32.mxu0 %vm350_vm0, %v3073_v58  ;;  %1443 = vmatprep.mubr.msk.f32.mxu1 %vm350_vm0, %v3073_v58 }
  0xad   :  { %685 = vmatmul.mubr.f32.gmra.mrb[20].mxu0 %v3082_v25  ;;  %1007 = vmatmul.mubr.f32.gmra.mrb[20].mxu1 %v3082_v25 }
  0xae   :  { %1428 = vmatprep.mubr.msk.f32.mxu0 %vm350_vm0, %v3089_v27  ;;  %1444 = vmatprep.mubr.msk.f32.mxu1 %vm350_vm0, %v3089_v27 }
  0xb1   :  { %691 = vmatmul.mubr.f32.gmra.mrb[22].mxu0 %v3098_v29  ;;  %1013 = vmatmul.mubr.f32.gmra.mrb[22].mxu1 %v3098_v29 }
  0xb2   :  { %1429 = vmatprep.mubr.msk.f32.mxu0 %vm350_vm0, %v3105_v30  ;;  %1445 = vmatprep.mubr.msk.f32.mxu1 %vm350_vm0, %v3105_v30 }
  0xb5   :  { %697 = vmatmul.mubr.f32.gmra.mrb[24].mxu0 %v3114_v32  ;;  %1019 = vmatmul.mubr.f32.gmra.mrb[24].mxu1 %v3114_v32 }
  0xb6   :  { %1430 = vmatprep.mubr.msk.f32.mxu0 %vm350_vm0, %v3121_v33  ;;  %1446 = vmatprep.mubr.msk.f32.mxu1 %vm350_vm0, %v3121_v33 }
  0xb9   :  { %703 = vmatmul.mubr.f32.gmra.mrb[26].mxu0 %v3130_v35  ;;  %1025 = vmatmul.mubr.f32.gmra.mrb[26].mxu1 %v3130_v35 }
  0xba   :  { %1431 = vmatprep.mubr.msk.f32.mxu0 %vm350_vm0, %v3137_v47  ;;  %1447 = vmatprep.mubr.msk.f32.mxu1 %vm350_vm0, %v3137_v47 }
  0xbd   :  { %709 = vmatmul.mubr.f32.gmra.mrb[28].mxu0 %v3146_v48  ;;  %1031 = vmatmul.mubr.f32.gmra.mrb[28].mxu1 %v3146_v48 }
  0xbe   :  { %1432 = vmatprep.mubr.msk.f32.mxu0 %vm350_vm0, %v3153_v7  ;;  %1448 = vmatprep.mubr.msk.f32.mxu1 %vm350_vm0, %v3153_v7 }
  0xc1   :  { %715 = vmatmul.mubr.f32.gmra.mrb[30].mxu0 %v3162_v55  ;;  %1037 = vmatmul.mubr.f32.gmra.mrb[30].mxu1 %v3162_v55 }
  0xc2   :  { %1107 = vmatprep.mubr.f32.mxu0 %v2242_v16  ;;  %1449 = vmatprep.mubr.msk.f32.mxu1 %vm350_vm0, %v2765_v24  ;;  %v325_v16 = vlaneseq }
  0xc5   :  { %1108 = vmatmul.mubr.f32.vlgmr.msra.gmra.mrb[32].mxu0 %v2369_v13  ;;  %1253 = vmatmul.mubr.f32.vlgmr.msra.gmra.mrb[32].mxu1 %v2792_v34  ;;  %v3248_v13 = vshrl.u32 %v325_v16, 7 }
  0xc6   :  { %1112 = vmatprep.mubr.f32.mxu0 %v2380_v18  ;;  %1450 = vmatprep.mubr.msk.f32.mxu1 %vm350_vm0, %v2799_v36 }
  0xc7   :  { %v327_v18 = vsub.s32 0, %v3248_v13 }
  0xc9   :  { %1113 = vmatmul.mubr.f32.gmra.mrb[34].mxu0 %v2405_v28  ;;  %1258 = vmatmul.mubr.f32.gmra.mrb[34].mxu1 %v2824_v49  ;;  %v3254_v28 = vld [vmem:[%s3597_s2] sm:$0x1f] }
  0xca   :  { %1117 = vmatprep.mubr.f32.mxu0 %v2418_v31  ;;  %1451 = vmatprep.mubr.msk.f32.mxu1 %vm350_vm0, %v2833_v50  ;;  %v335_v31 = vsub.s32 2, %v3248_v13 }
  0xcd   :  { %1118 = vmatmul.mubr.f32.gmra.mrb[36].mxu0 %v2444_v42  ;;  %1263 = vmatmul.mubr.f32.gmra.mrb[36].mxu1 %v2861_v2  ;;  %v331_v42 = vsub.s32 1, %v3248_v13 }
  0xce   :  { %1122 = vmatprep.mubr.f32.mxu0 %v2456_v45  ;;  %1452 = vmatprep.mubr.msk.f32.mxu1 %vm350_vm0, %v2868_v3  ;;  %v339_v45 = vsub.s32 3, %v3248_v13 }
  0xd1   :  { %1123 = vmatmul.mubr.f32.gmra.mrb[38].mxu0 %v2482_v56  ;;  %1268 = vmatmul.mubr.f32.gmra.mrb[38].mxu1 %v2896_v40  ;;  %v3260_v56 = vrot.slane %v3254_v28, %v327_v18 }
  0xd2   :  { %1127 = vmatprep.mubr.f32.mxu0 %v2494_v59  ;;  %1453 = vmatprep.mubr.msk.f32.mxu1 %vm350_vm0, %v2903_v41  ;;  %v3263_v59 = vrot.slane %v3254_v28, %v335_v31 }
  0xd5   :  { %1128 = vmatmul.mubr.f32.gmra.mrb[40].mxu0 %v2520_v6  ;;  %1273 = vmatmul.mubr.f32.gmra.mrb[40].mxu1 %v2931_v60  ;;  %v3266_v6 = vrot.slane %v3254_v28, %v331_v42 }
  0xd6   :  { %1132 = vmatprep.mubr.f32.mxu0 %v2532_v9  ;;  %1454 = vmatprep.mubr.msk.f32.mxu1 %vm350_vm0, %v2938_v61  ;;  %v3269_v9 = vrot.slane %v3254_v28, %v339_v45 }
  0xd9   :  { %1133 = vmatmul.mubr.f32.gmra.mrb[42].mxu0 %v2558_v23  ;;  %1278 = vmatmul.mubr.f32.gmra.mrb[42].mxu1 %v2966_v37 }
  0xda   :  { %1137 = vmatprep.mubr.f32.mxu0 %v2570_v26  ;;  %1455 = vmatprep.mubr.msk.f32.mxu1 %vm350_vm0, %v2973_v38 }
  0xdd   :  { %1138 = vmatmul.mubr.f32.gmra.mrb[44].mxu0 %v2596_v39  ;;  %1283 = vmatmul.mubr.f32.gmra.mrb[44].mxu1 %v3001_v63 }
  0xde   :  { %1142 = vmatprep.mubr.f32.mxu0 %v2608_v43  ;;  %1456 = vmatprep.mubr.msk.f32.mxu1 %vm350_vm0, %v3008_v1 }
  0xe1   :  { %1143 = vmatmul.mubr.f32.gmra.mrb[46].mxu0 %v2628_v53  ;;  %1288 = vmatmul.mubr.f32.gmra.mrb[46].mxu1 %v3030_v44 }
  0xe2   :  { %1147 = vmatprep.mubr.f32.mxu0 %v2634_v54  ;;  %1457 = vmatprep.mubr.msk.f32.mxu1 %vm350_vm0, %v3037_v46 }
  0xe5   :  { %1148 = vmatmul.mubr.f32.gmra.mrb[48].mxu0 %v2651_v62  ;;  %1293 = vmatmul.mubr.f32.gmra.mrb[48].mxu1 %v3047_v51 }
  0xe6   :  { %1152 = vmatprep.mubr.f32.mxu0 %v2660_v0  ;;  %1458 = vmatprep.mubr.msk.f32.mxu1 %vm350_vm0, %v3054_v52 }
  0xe9   :  { %1153 = vmatmul.mubr.f32.gmra.mrb[50].mxu0 %v2674_v4  ;;  %1298 = vmatmul.mubr.f32.gmra.mrb[50].mxu1 %v3066_v57 }
  0xea   :  { %1157 = vmatprep.mubr.f32.mxu0 %v2680_v5  ;;  %1459 = vmatprep.mubr.msk.f32.mxu1 %vm350_vm0, %v3073_v58 }
  0xed   :  { %1158 = vmatmul.mubr.f32.gmra.mrb[52].mxu0 %v2689_v8  ;;  %1303 = vmatmul.mubr.f32.gmra.mrb[52].mxu1 %v3082_v25 }
  0xee   :  { %1162 = vmatprep.mubr.f32.mxu0 %v2695_v10  ;;  %1460 = vmatprep.mubr.msk.f32.mxu1 %vm350_vm0, %v3089_v27 }
  0xf1   :  { %1163 = vmatmul.mubr.f32.gmra.mrb[54].mxu0 %v2703_v11  ;;  %1308 = vmatmul.mubr.f32.gmra.mrb[54].mxu1 %v3098_v29 }
  0xf2   :  { %1167 = vmatprep.mubr.f32.mxu0 %v2709_v12  ;;  %1461 = vmatprep.mubr.msk.f32.mxu1 %vm350_vm0, %v3105_v30 }
  0xf5   :  { %1168 = vmatmul.mubr.f32.gmra.mrb[56].mxu0 %v2717_v14  ;;  %1313 = vmatmul.mubr.f32.gmra.mrb[56].mxu1 %v3114_v32 }
  0xf6   :  { %1172 = vmatprep.mubr.f32.mxu0 %v2723_v15  ;;  %1462 = vmatprep.mubr.msk.f32.mxu1 %vm350_vm0, %v3121_v33 }
  0xf9   :  { %1173 = vmatmul.mubr.f32.gmra.mrb[58].mxu0 %v2731_v17  ;;  %1318 = vmatmul.mubr.f32.gmra.mrb[58].mxu1 %v3130_v35 }
  0xfa   :  { %1177 = vmatprep.mubr.f32.mxu0 %v2737_v19  ;;  %1463 = vmatprep.mubr.msk.f32.mxu1 %vm350_vm0, %v3137_v47 }
  0xfd   :  { %1178 = vmatmul.mubr.f32.gmra.mrb[60].mxu0 %v2745_v20  ;;  %1323 = vmatmul.mubr.f32.gmra.mrb[60].mxu1 %v3146_v48 }
  0xfe   :  { %1182 = vmatprep.mubr.f32.mxu0 %v2751_v21  ;;  %1464 = vmatprep.mubr.msk.f32.mxu1 %vm350_vm0, %v3153_v7 }
 0x101   :  { %1183 = vmatmul.mubr.f32.gmra.mrb[62].mxu0 %v2759_v22  ;;  %1328 = vmatmul.mubr.f32.gmra.mrb[62].mxu1 %v3162_v55 }
 0x158   :  { %v626_v23 = vpop.f32.mrb[0].mxu0  ;;  %v948_v39 = vpop.f32.mrb[0].mxu1 }
 0x159   :  { %v1793_v26 = vadd.f32 %v626_v23, %v3260_v56  ;;  %v628_v43 = vpop.f32.mrb[1].mxu0  ;;  %v1825_v53 = vadd.f32 %v948_v39, %v3263_v59  ;;  %v950_v62 = vpop.f32.mrb[1].mxu1 }
 0x15a   :  { %v1794_v54 = vadd.f32 %v628_v43, %v3266_v6  ;;  %v1826_v0 = vadd.f32 %v950_v62, %v3269_v9 }
 0x15b   :  { %1333 = vst [vmem:[%s3598_s3] sm:$0xff] %v1793_v26  ;;  %1335 = vst [vmem:[%s3598_s3 + $0x10] sm:$0xff] %v1825_v53 }
 0x15c   :  { %1334 = vst [vmem:[%s3598_s3 + $0x8] sm:$0xff] %v1794_v54  ;;  %v632_v4 = vpop.f32.mrb[2].mxu0  ;;  %1336 = vst [vmem:[%s3598_s3 + $0x18] sm:$0xff] %v1826_v0  ;;  %v954_v8 = vpop.f32.mrb[2].mxu1 }
 0x15d   :  { %v1795_v5 = vadd.f32 %v632_v4, %v3260_v56  ;;  %v634_v10 = vpop.f32.mrb[3].mxu0  ;;  %v1827_v11 = vadd.f32 %v954_v8, %v3263_v59  ;;  %v956_v14 = vpop.f32.mrb[3].mxu1 }
 0x15e   :  { %v1796_v12 = vadd.f32 %v634_v10, %v3266_v6  ;;  %v1828_v15 = vadd.f32 %v956_v14, %v3269_v9 }
 0x15f   :  { %1338 = vst [vmem:[%s3598_s3 + $0x28] sm:$0xff] %v1795_v5  ;;  %1340 = vst [vmem:[%s3598_s3 + $0x38] sm:$0xff] %v1827_v11 }
 0x160   :  { %1339 = vst [vmem:[%s3598_s3 + $0x30] sm:$0xff] %v1796_v12  ;;  %v638_v17 = vpop.f32.mrb[4].mxu0  ;;  %1341 = vst [vmem:[%s3598_s3 + $0x40] sm:$0xff] %v1828_v15  ;;  %v960_v20 = vpop.f32.mrb[4].mxu1 }
 0x161   :  { %v1797_v19 = vadd.f32 %v638_v17, %v3260_v56  ;;  %v640_v21 = vpop.f32.mrb[5].mxu0  ;;  %v1829_v22 = vadd.f32 %v960_v20, %v3263_v59  ;;  %v962_v34 = vpop.f32.mrb[5].mxu1 }
 0x162   :  { %v1798_v24 = vadd.f32 %v640_v21, %v3266_v6  ;;  %v1830_v36 = vadd.f32 %v962_v34, %v3269_v9 }
 0x163   :  { %1343 = vst [vmem:[%s3598_s3 + $0x50] sm:$0xff] %v1797_v19  ;;  %1345 = vst [vmem:[%s3598_s3 + $0x60] sm:$0xff] %v1829_v22 }
 0x164   :  { %1344 = vst [vmem:[%s3598_s3 + $0x58] sm:$0xff] %v1798_v24  ;;  %v644_v49 = vpop.f32.mrb[6].mxu0  ;;  %1346 = vst [vmem:[%s3598_s3 + $0x68] sm:$0xff] %v1830_v36  ;;  %v966_v2 = vpop.f32.mrb[6].mxu1 }
 0x165   :  { %v1799_v50 = vadd.f32 %v644_v49, %v3260_v56  ;;  %v646_v3 = vpop.f32.mrb[7].mxu0  ;;  %v1831_v40 = vadd.f32 %v966_v2, %v3263_v59  ;;  %v968_v60 = vpop.f32.mrb[7].mxu1 }
 0x166   :  { %v1800_v41 = vadd.f32 %v646_v3, %v3266_v6  ;;  %v1832_v61 = vadd.f32 %v968_v60, %v3269_v9 }
 0x167   :  { %1348 = vst [vmem:[%s3598_s3 + $0x78] sm:$0xff] %v1799_v50  ;;  %1350 = vst [vmem:[%s3598_s3 + $0x88] sm:$0xff] %v1831_v40 }
 0x168   :  { %1349 = vst [vmem:[%s3598_s3 + $0x80] sm:$0xff] %v1800_v41  ;;  %v650_v37 = vpop.f32.mrb[8].mxu0  ;;  %1351 = vst [vmem:[%s3598_s3 + $0x90] sm:$0xff] %v1832_v61  ;;  %v972_v63 = vpop.f32.mrb[8].mxu1 }
 0x169   :  { %v1801_v38 = vadd.f32 %v650_v37, %v3260_v56  ;;  %v652_v1 = vpop.f32.mrb[9].mxu0  ;;  %v1833_v44 = vadd.f32 %v972_v63, %v3263_v59  ;;  %v974_v51 = vpop.f32.mrb[9].mxu1 }
 0x16a   :  { %v1802_v46 = vadd.f32 %v652_v1, %v3266_v6  ;;  %v1834_v52 = vadd.f32 %v974_v51, %v3269_v9 }
 0x16b   :  { %1353 = vst [vmem:[%s3598_s3 + $0xa0] sm:$0xff] %v1801_v38  ;;  %1355 = vst [vmem:[%s3598_s3 + $0xb0] sm:$0xff] %v1833_v44 }
 0x16c   :  { %1354 = vst [vmem:[%s3598_s3 + $0xa8] sm:$0xff] %v1802_v46  ;;  %v656_v57 = vpop.f32.mrb[10].mxu0  ;;  %1356 = vst [vmem:[%s3598_s3 + $0xb8] sm:$0xff] %v1834_v52  ;;  %v978_v25 = vpop.f32.mrb[10].mxu1 }
 0x16d   :  { %v1803_v58 = vadd.f32 %v656_v57, %v3260_v56  ;;  %v658_v27 = vpop.f32.mrb[11].mxu0  ;;  %v1835_v29 = vadd.f32 %v978_v25, %v3263_v59  ;;  %v980_v32 = vpop.f32.mrb[11].mxu1 }
 0x16e   :  { %v1804_v30 = vadd.f32 %v658_v27, %v3266_v6  ;;  %v1836_v33 = vadd.f32 %v980_v32, %v3269_v9 }
 0x16f   :  { %1358 = vst [vmem:[%s3598_s3 + $0xc8] sm:$0xff] %v1803_v58  ;;  %1360 = vst [vmem:[%s3598_s3 + $0xd8] sm:$0xff] %v1835_v29 }
 0x170   :  { %1359 = vst [vmem:[%s3598_s3 + $0xd0] sm:$0xff] %v1804_v30  ;;  %v662_v35 = vpop.f32.mrb[12].mxu0  ;;  %1361 = vst [vmem:[%s3598_s3 + $0xe0] sm:$0xff] %v1836_v33  ;;  %v984_v48 = vpop.f32.mrb[12].mxu1 }
 0x171   :  { %v1805_v47 = vadd.f32 %v662_v35, %v3260_v56  ;;  %v664_v7 = vpop.f32.mrb[13].mxu0  ;;  %v1837_v55 = vadd.f32 %v984_v48, %v3263_v59  ;;  %v986_v18 = vpop.f32.mrb[13].mxu1 }
 0x172   :  { %v1806_v16 = vadd.f32 %v664_v7, %v3266_v6  ;;  %v1838_v31 = vadd.f32 %v986_v18, %v3269_v9 }
 0x173   :  { %1363 = vst [vmem:[%s3598_s3 + $0xf0] sm:$0xff] %v1805_v47  ;;  %1365 = vst [vmem:[%s3598_s3 + $0x100] sm:$0xff] %v1837_v55 }
 0x174   :  { %1364 = vst [vmem:[%s3598_s3 + $0xf8] sm:$0xff] %v1806_v16  ;;  %v668_v42 = vpop.f32.mrb[14].mxu0  ;;  %1366 = vst [vmem:[%s3598_s3 + $0x108] sm:$0xff] %v1838_v31  ;;  %v990_v23 = vpop.f32.mrb[14].mxu1 }
 0x175   :  { %v1807_v45 = vadd.f32 %v668_v42, %v3260_v56  ;;  %v670_v26 = vpop.f32.mrb[15].mxu0  ;;  %v1839_v39 = vadd.f32 %v990_v23, %v3263_v59  ;;  %v992_v53 = vpop.f32.mrb[15].mxu1 }
 0x176   :  { %v1808_v43 = vadd.f32 %v670_v26, %v3266_v6  ;;  %v1840_v54 = vadd.f32 %v992_v53, %v3269_v9 }
 0x177   :  { %1368 = vst [vmem:[%s3598_s3 + $0x118] sm:$0xff] %v1807_v45  ;;  %1370 = vst [vmem:[%s3598_s3 + $0x128] sm:$0xff] %v1839_v39 }
 0x178   :  { %1369 = vst [vmem:[%s3598_s3 + $0x120] sm:$0xff] %v1808_v43  ;;  %v674_v62 = vpop.f32.mrb[16].mxu0  ;;  %1371 = vst [vmem:[%s3598_s3 + $0x130] sm:$0xff] %v1840_v54  ;;  %v996_v4 = vpop.f32.mrb[16].mxu1  ;;  %v343_v54 = vsub.s32 4, %v3248_v13 }
 0x179   :  { %v1809_v0 = vadd.f32 %v674_v62, %v3260_v56  ;;  %v676_v5 = vpop.f32.mrb[17].mxu0  ;;  %v1841_v8 = vadd.f32 %v996_v4, %v3263_v59  ;;  %v998_v11 = vpop.f32.mrb[17].mxu1 }
 0x17a   :  { %v1810_v10 = vadd.f32 %v676_v5, %v3266_v6  ;;  %v1842_v12 = vadd.f32 %v998_v11, %v3269_v9 }
 0x17b   :  { %1373 = vst [vmem:[%s3598_s3 + $0x140] sm:$0xff] %v1809_v0  ;;  %1375 = vst [vmem:[%s3598_s3 + $0x150] sm:$0xff] %v1841_v8 }
 0x17c   :  { %1374 = vst [vmem:[%s3598_s3 + $0x148] sm:$0xff] %v1810_v10  ;;  %v680_v14 = vpop.f32.mrb[18].mxu0  ;;  %1376 = vst [vmem:[%s3598_s3 + $0x158] sm:$0xff] %v1842_v12  ;;  %v1002_v17 = vpop.f32.mrb[18].mxu1 }
 0x17d   :  { %v1811_v15 = vadd.f32 %v680_v14, %v3260_v56  ;;  %v682_v19 = vpop.f32.mrb[19].mxu0  ;;  %v1843_v20 = vadd.f32 %v1002_v17, %v3263_v59  ;;  %v1004_v22 = vpop.f32.mrb[19].mxu1 }
 0x17e   :  { %v1812_v21 = vadd.f32 %v682_v19, %v3266_v6  ;;  %v1844_v24 = vadd.f32 %v1004_v22, %v3269_v9 }
 0x17f   :  { %1378 = vst [vmem:[%s3598_s3 + $0x168] sm:$0xff] %v1811_v15  ;;  %1380 = vst [vmem:[%s3598_s3 + $0x178] sm:$0xff] %v1843_v20 }
 0x180   :  { %1379 = vst [vmem:[%s3598_s3 + $0x170] sm:$0xff] %v1812_v21  ;;  %v686_v34 = vpop.f32.mrb[20].mxu0  ;;  %1381 = vst [vmem:[%s3598_s3 + $0x180] sm:$0xff] %v1844_v24  ;;  %v1008_v49 = vpop.f32.mrb[20].mxu1 }
 0x181   :  { %v1813_v36 = vadd.f32 %v686_v34, %v3260_v56  ;;  %v688_v50 = vpop.f32.mrb[21].mxu0  ;;  %v1845_v2 = vadd.f32 %v1008_v49, %v3263_v59  ;;  %v1010_v40 = vpop.f32.mrb[21].mxu1 }
 0x182   :  { %v1814_v3 = vadd.f32 %v688_v50, %v3266_v6  ;;  %v1846_v41 = vadd.f32 %v1010_v40, %v3269_v9 }
 0x183   :  { %1383 = vst [vmem:[%s3598_s3 + $0x190] sm:$0xff] %v1813_v36  ;;  %1385 = vst [vmem:[%s3598_s3 + $0x1a0] sm:$0xff] %v1845_v2 }
 0x184   :  { %1384 = vst [vmem:[%s3598_s3 + $0x198] sm:$0xff] %v1814_v3  ;;  %v692_v60 = vpop.f32.mrb[22].mxu0  ;;  %1386 = vst [vmem:[%s3598_s3 + $0x1a8] sm:$0xff] %v1846_v41  ;;  %v1014_v37 = vpop.f32.mrb[22].mxu1 }
 0x185   :  { %v1815_v61 = vadd.f32 %v692_v60, %v3260_v56  ;;  %v694_v38 = vpop.f32.mrb[23].mxu0  ;;  %v1847_v63 = vadd.f32 %v1014_v37, %v3263_v59  ;;  %v1016_v44 = vpop.f32.mrb[23].mxu1 }
 0x186   :  { %v1816_v1 = vadd.f32 %v694_v38, %v3266_v6  ;;  %v1848_v46 = vadd.f32 %v1016_v44, %v3269_v9 }
 0x187   :  { %1388 = vst [vmem:[%s3598_s3 + $0x1b8] sm:$0xff] %v1815_v61  ;;  %1390 = vst [vmem:[%s3598_s3 + $0x1c8] sm:$0xff] %v1847_v63 }
 0x188   :  { %1389 = vst [vmem:[%s3598_s3 + $0x1c0] sm:$0xff] %v1816_v1  ;;  %v698_v51 = vpop.f32.mrb[24].mxu0  ;;  %1391 = vst [vmem:[%s3598_s3 + $0x1d0] sm:$0xff] %v1848_v46  ;;  %v1020_v57 = vpop.f32.mrb[24].mxu1 }
 0x189   :  { %v1817_v52 = vadd.f32 %v698_v51, %v3260_v56  ;;  %v700_v58 = vpop.f32.mrb[25].mxu0  ;;  %v1849_v25 = vadd.f32 %v1020_v57, %v3263_v59  ;;  %v1022_v29 = vpop.f32.mrb[25].mxu1 }
 0x18a   :  { %v1818_v27 = vadd.f32 %v700_v58, %v3266_v6  ;;  %v1850_v30 = vadd.f32 %v1022_v29, %v3269_v9 }
 0x18b   :  { %1393 = vst [vmem:[%s3598_s3 + $0x1e0] sm:$0xff] %v1817_v52  ;;  %1395 = vst [vmem:[%s3598_s3 + $0x1f0] sm:$0xff] %v1849_v25 }
 0x18c   :  { %1394 = vst [vmem:[%s3598_s3 + $0x1e8] sm:$0xff] %v1818_v27  ;;  %v704_v32 = vpop.f32.mrb[26].mxu0  ;;  %1396 = vst [vmem:[%s3598_s3 + $0x1f8] sm:$0xff] %v1850_v30  ;;  %v1026_v35 = vpop.f32.mrb[26].mxu1 }
 0x18d   :  { %v1819_v33 = vadd.f32 %v704_v32, %v3260_v56  ;;  %v706_v47 = vpop.f32.mrb[27].mxu0  ;;  %v1851_v48 = vadd.f32 %v1026_v35, %v3263_v59  ;;  %v1028_v55 = vpop.f32.mrb[27].mxu1 }
 0x18e   :  { %v1820_v7 = vadd.f32 %v706_v47, %v3266_v6  ;;  %v1852_v16 = vadd.f32 %v1028_v55, %v3269_v9 }
 0x18f   :  { %1398 = vst [vmem:[%s3598_s3 + $0x208] sm:$0xff] %v1819_v33  ;;  %1400 = vst [vmem:[%s3598_s3 + $0x218] sm:$0xff] %v1851_v48 }
 0x190   :  { %1399 = vst [vmem:[%s3598_s3 + $0x210] sm:$0xff] %v1820_v7  ;;  %v710_v18 = vpop.f32.mrb[28].mxu0  ;;  %1401 = vst [vmem:[%s3598_s3 + $0x220] sm:$0xff] %v1852_v16  ;;  %v1032_v42 = vpop.f32.mrb[28].mxu1 }
 0x191   :  { %v1821_v31 = vadd.f32 %v710_v18, %v3260_v56  ;;  %v712_v45 = vpop.f32.mrb[29].mxu0  ;;  %v1853_v23 = vadd.f32 %v1032_v42, %v3263_v59  ;;  %v1034_v39 = vpop.f32.mrb[29].mxu1 }
 0x192   :  { %v1822_v26 = vadd.f32 %v712_v45, %v3266_v6  ;;  %v1854_v43 = vadd.f32 %v1034_v39, %v3269_v9 }
 0x193   :  { %1403 = vst [vmem:[%s3598_s3 + $0x230] sm:$0xff] %v1821_v31  ;;  %1405 = vst [vmem:[%s3598_s3 + $0x240] sm:$0xff] %v1853_v23 }
 0x194   :  { %1404 = vst [vmem:[%s3598_s3 + $0x238] sm:$0xff] %v1822_v26  ;;  %v716_v53 = vpop.f32.mrb[30].mxu0  ;;  %1406 = vst [vmem:[%s3598_s3 + $0x248] sm:$0xff] %v1854_v43  ;;  %v1038_v0 = vpop.f32.mrb[30].mxu1 }
 0x195   :  { %v1823_v62 = vadd.f32 %v716_v53, %v3260_v56  ;;  %v718_v4 = vpop.f32.mrb[31].mxu0  ;;  %v1855_v5 = vadd.f32 %v1038_v0, %v3263_v59  ;;  %v1040_v10 = vpop.f32.mrb[31].mxu1  ;;  %v3526_v56 = vrot.slane %v3254_v28, %v343_v54 }
 0x196   :  { %v1824_v8 = vadd.f32 %v718_v4, %v3266_v6  ;;  %v1856_v11 = vadd.f32 %v1040_v10, %v3269_v9 }
 0x197   :  { %1408 = vst [vmem:[%s3598_s3 + $0x258] sm:$0xff] %v1823_v62  ;;  %1410 = vst [vmem:[%s3598_s3 + $0x268] sm:$0xff] %v1855_v5 }
 0x198   :  { %1409 = vst [vmem:[%s3598_s3 + $0x260] sm:$0xff] %v1824_v8  ;;  %v1497_v13 = vpop.f32.mrb[32].mxu0  ;;  %1411 = vst [vmem:[%s3598_s3 + $0x270] sm:$0xff] %v1856_v11  ;;  %v1254_v6 = vpop.f32.mrb[32].mxu1 }
 0x199   :  { %v1498_v59 = vpop.f32.mrb[33].mxu0  ;;  %v1256_v9 = vpop.f32.mrb[33].mxu1 }
 0x19a   :  { %v1499_v12 = vadd.f32 %v1498_v59, %v1497_v13 }
 0x19c   :  { %v1500_v14 = vpop.f32.mrb[34].mxu0  ;;  %v1110_v15 = vadd.f32 %v1499_v12, %v3526_v56  ;;  %v1259_v19 = vpop.f32.mrb[34].mxu1 }
 0x19d   :  { %v1501_v17 = vpop.f32.mrb[35].mxu0  ;;  %v1261_v22 = vpop.f32.mrb[35].mxu1 }
 0x19e   :  { %v1502_v20 = vadd.f32 %v1501_v17, %v1500_v14  ;;  %v1255_v21 = vadd.f32 %v1254_v6, %v1110_v15 }
 0x1a0   :  { %1337 = vst [vmem:[%s3598_s3 + $0x20] sm:$0xff] %v1255_v21  ;;  %v1503_v28 = vpop.f32.mrb[36].mxu0  ;;  %v1115_v24 = vadd.f32 %v1502_v20, %v3526_v56  ;;  %v1264_v36 = vpop.f32.mrb[36].mxu1 }
 0x1a1   :  { %v1504_v34 = vpop.f32.mrb[37].mxu0  ;;  %v1266_v2 = vpop.f32.mrb[37].mxu1 }
 0x1a2   :  { %v1505_v49 = vadd.f32 %v1504_v34, %v1503_v28  ;;  %v1260_v50 = vadd.f32 %v1259_v19, %v1115_v24 }
 0x1a4   :  { %1342 = vst [vmem:[%s3598_s3 + $0x48] sm:$0xff] %v1260_v50  ;;  %v1506_v3 = vpop.f32.mrb[38].mxu0  ;;  %v1120_v40 = vadd.f32 %v1505_v49, %v3526_v56  ;;  %v1269_v60 = vpop.f32.mrb[38].mxu1 }
 0x1a5   :  { %v1507_v41 = vpop.f32.mrb[39].mxu0  ;;  %v1271_v38 = vpop.f32.mrb[39].mxu1 }
 0x1a6   :  { %v1508_v61 = vadd.f32 %v1507_v41, %v1506_v3  ;;  %v1265_v37 = vadd.f32 %v1264_v36, %v1120_v40 }
 0x1a8   :  { %1347 = vst [vmem:[%s3598_s3 + $0x70] sm:$0xff] %v1265_v37  ;;  %v1509_v63 = vpop.f32.mrb[40].mxu0  ;;  %v1125_v1 = vadd.f32 %v1508_v61, %v3526_v56  ;;  %v1274_v46 = vpop.f32.mrb[40].mxu1 }
 0x1a9   :  { %v1510_v44 = vpop.f32.mrb[41].mxu0  ;;  %v1276_v57 = vpop.f32.mrb[41].mxu1 }
 0x1aa   :  { %v1511_v51 = vadd.f32 %v1510_v44, %v1509_v63  ;;  %v1270_v52 = vadd.f32 %v1269_v60, %v1125_v1 }
 0x1ac   :  { %1352 = vst [vmem:[%s3598_s3 + $0x98] sm:$0xff] %v1270_v52  ;;  %v1512_v58 = vpop.f32.mrb[42].mxu0  ;;  %v1130_v25 = vadd.f32 %v1511_v51, %v3526_v56  ;;  %v1279_v29 = vpop.f32.mrb[42].mxu1 }
 0x1ad   :  { %v1513_v27 = vpop.f32.mrb[43].mxu0  ;;  %v1281_v33 = vpop.f32.mrb[43].mxu1 }
 0x1ae   :  { %v1514_v30 = vadd.f32 %v1513_v27, %v1512_v58  ;;  %v1275_v32 = vadd.f32 %v1274_v46, %v1130_v25 }
 0x1b0   :  { %1357 = vst [vmem:[%s3598_s3 + $0xc0] sm:$0xff] %v1275_v32  ;;  %v1515_v35 = vpop.f32.mrb[44].mxu0  ;;  %v1135_v47 = vadd.f32 %v1514_v30, %v3526_v56  ;;  %v1284_v7 = vpop.f32.mrb[44].mxu1 }
 0x1b1   :  { %v1516_v48 = vpop.f32.mrb[45].mxu0  ;;  %v1286_v18 = vpop.f32.mrb[45].mxu1 }
 0x1b2   :  { %v1517_v55 = vadd.f32 %v1516_v48, %v1515_v35  ;;  %v1280_v16 = vadd.f32 %v1279_v29, %v1135_v47 }
 0x1b4   :  { %1362 = vst [vmem:[%s3598_s3 + $0xe8] sm:$0xff] %v1280_v16  ;;  %v1518_v31 = vpop.f32.mrb[46].mxu0  ;;  %v1140_v42 = vadd.f32 %v1517_v55, %v3526_v56  ;;  %v1289_v23 = vpop.f32.mrb[46].mxu1 }
 0x1b5   :  { %v1519_v45 = vpop.f32.mrb[47].mxu0  ;;  %v1291_v43 = vpop.f32.mrb[47].mxu1 }
 0x1b6   :  { %v1520_v26 = vadd.f32 %v1519_v45, %v1518_v31  ;;  %v1285_v39 = vadd.f32 %v1284_v7, %v1140_v42 }
 0x1b8   :  { %1367 = vst [vmem:[%s3598_s3 + $0x110] sm:$0xff] %v1285_v39  ;;  %v1521_v53 = vpop.f32.mrb[48].mxu0  ;;  %v1145_v54 = vadd.f32 %v1520_v26, %v3526_v56  ;;  %v1294_v0 = vpop.f32.mrb[48].mxu1 }
 0x1b9   :  { %v1522_v62 = vpop.f32.mrb[49].mxu0  ;;  %v1296_v8 = vpop.f32.mrb[49].mxu1 }
 0x1ba   :  { %v1523_v4 = vadd.f32 %v1522_v62, %v1521_v53  ;;  %v1290_v5 = vadd.f32 %v1289_v23, %v1145_v54 }
 0x1bc   :  { %1372 = vst [vmem:[%s3598_s3 + $0x138] sm:$0xff] %v1290_v5  ;;  %v1524_v10 = vpop.f32.mrb[50].mxu0  ;;  %v1150_v11 = vadd.f32 %v1523_v4, %v3526_v56  ;;  %v1299_v59 = vpop.f32.mrb[50].mxu1 }
 0x1bd   :  { %v1525_v13 = vpop.f32.mrb[51].mxu0  ;;  %v1301_v9 = vpop.f32.mrb[51].mxu1 }
 0x1be   :  { %v1526_v6 = vadd.f32 %v1525_v13, %v1524_v10  ;;  %v1295_v12 = vadd.f32 %v1294_v0, %v1150_v11 }
 0x1c0   :  { %1377 = vst [vmem:[%s3598_s3 + $0x160] sm:$0xff] %v1295_v12  ;;  %v1527_v14 = vpop.f32.mrb[52].mxu0  ;;  %v1155_v15 = vadd.f32 %v1526_v6, %v3526_v56  ;;  %v1304_v19 = vpop.f32.mrb[52].mxu1 }
 0x1c1   :  { %v1528_v17 = vpop.f32.mrb[53].mxu0  ;;  %v1306_v22 = vpop.f32.mrb[53].mxu1 }
 0x1c2   :  { %v1529_v20 = vadd.f32 %v1528_v17, %v1527_v14  ;;  %v1300_v21 = vadd.f32 %v1299_v59, %v1155_v15 }
 0x1c4   :  { %1382 = vst [vmem:[%s3598_s3 + $0x188] sm:$0xff] %v1300_v21  ;;  %v1530_v28 = vpop.f32.mrb[54].mxu0  ;;  %v1160_v24 = vadd.f32 %v1529_v20, %v3526_v56  ;;  %v1309_v36 = vpop.f32.mrb[54].mxu1 }
 0x1c5   :  { %v1531_v34 = vpop.f32.mrb[55].mxu0  ;;  %v1311_v2 = vpop.f32.mrb[55].mxu1 }
 0x1c6   :  { %v1532_v49 = vadd.f32 %v1531_v34, %v1530_v28  ;;  %v1305_v50 = vadd.f32 %v1304_v19, %v1160_v24 }
 0x1c8   :  { %1387 = vst [vmem:[%s3598_s3 + $0x1b0] sm:$0xff] %v1305_v50  ;;  %v1533_v3 = vpop.f32.mrb[56].mxu0  ;;  %v1165_v40 = vadd.f32 %v1532_v49, %v3526_v56  ;;  %v1314_v60 = vpop.f32.mrb[56].mxu1 }
 0x1c9   :  { %v1534_v41 = vpop.f32.mrb[57].mxu0  ;;  %v1316_v38 = vpop.f32.mrb[57].mxu1 }
 0x1ca   :  { %v1535_v61 = vadd.f32 %v1534_v41, %v1533_v3  ;;  %v1310_v37 = vadd.f32 %v1309_v36, %v1165_v40 }
 0x1cc   :  { %1392 = vst [vmem:[%s3598_s3 + $0x1d8] sm:$0xff] %v1310_v37  ;;  %v1536_v63 = vpop.f32.mrb[58].mxu0  ;;  %v1170_v1 = vadd.f32 %v1535_v61, %v3526_v56  ;;  %v1319_v46 = vpop.f32.mrb[58].mxu1 }
 0x1cd   :  { %v1537_v44 = vpop.f32.mrb[59].mxu0  ;;  %v1321_v57 = vpop.f32.mrb[59].mxu1 }
 0x1ce   :  { %v1538_v51 = vadd.f32 %v1537_v44, %v1536_v63  ;;  %v1315_v52 = vadd.f32 %v1314_v60, %v1170_v1 }
 0x1d0   :  { %1397 = vst [vmem:[%s3598_s3 + $0x200] sm:$0xff] %v1315_v52  ;;  %v1539_v58 = vpop.f32.mrb[60].mxu0  ;;  %v1175_v25 = vadd.f32 %v1538_v51, %v3526_v56  ;;  %v1324_v29 = vpop.f32.mrb[60].mxu1 }
 0x1d1   :  { %v1540_v27 = vpop.f32.mrb[61].mxu0  ;;  %v1326_v33 = vpop.f32.mrb[61].mxu1 }
 0x1d2   :  { %v1541_v30 = vadd.f32 %v1540_v27, %v1539_v58  ;;  %v1320_v32 = vadd.f32 %v1319_v46, %v1175_v25 }
 0x1d4   :  { %1402 = vst [vmem:[%s3598_s3 + $0x228] sm:$0xff] %v1320_v32  ;;  %v1542_v35 = vpop.f32.mrb[62].mxu0  ;;  %v1180_v47 = vadd.f32 %v1541_v30, %v3526_v56  ;;  %v1329_v7 = vpop.f32.mrb[62].mxu1 }
 0x1d5   :  { %v1543_v48 = vpop.f32.mrb[63].mxu0  ;;  %v1331_v18 = vpop.f32.mrb[63].mxu1 }
 0x1d6   :  { %v1544_v55 = vadd.f32 %v1543_v48, %v1542_v35  ;;  %v1325_v16 = vadd.f32 %v1324_v29, %v1180_v47 }
 0x1d8   :  { %1407 = vst [vmem:[%s3598_s3 + $0x250] sm:$0xff] %v1325_v16  ;;  %v1185_v31 = vadd.f32 %v1544_v55, %v3526_v56 }
 0x1da   :  { %v1330_v42 = vadd.f32 %v1329_v7, %v1185_v31 }
 0x1dc   :  { %1412 = vst [vmem:[%s3598_s3 + $0x278] sm:$0xff] %v1330_v42 }

// kernel: tengcn_forward.16
= control target key start
LH: loop header
LB: loop body
LE: loop exit
PB: predicated region body
PF: predicated region fallthrough
CT: control target
= control target key end

     0   :  { %s2231_s1 = inlined_call_operand.vmem [shape: f32[1024,128], index: 1, kind: input, shape index: {}]   ;;  %s2232_s0 = inlined_call_operand.vmem [shape: f32[128,1024], index: 0, kind: input, shape index: {}]   ;;  %s2233_s2 = inlined_call_operand.vmem [shape: f32[1,128], index: 2, kind: input, shape index: {}]   ;;  %s2234_s3 = inlined_call_operand.vmem [shape: f32[128,128], index: 3, kind: output, shape index: {}]  }
   0x1   :  { %v158_v0 = vld [vmem:[%s2231_s1 + $0x80] sm:$0xff]  ;;  %v159_v1 = vld [vmem:[%s2231_s1 + $0x88] sm:$0xff]  ;;  %v160_v11 = vld [vmem:[%s2231_s1 + $0x90] sm:$0xff] }
   0x2   :  { %v142_v2 = vld [vmem:[%s2231_s1] sm:$0xff]  ;;  %v1198_v3 = vpack.c.bf16 %v159_v1, %v158_v0  ;;  %v143_v4 = vld [vmem:[%s2231_s1 + $0x8] sm:$0xff]  ;;  %v161_v13 = vld [vmem:[%s2231_s1 + $0x98] sm:$0xff] }
   0x3   :  { %v190_v5 = vld [vmem:[%s2231_s1 + $0x180] sm:$0xff]  ;;  %v191_v6 = vld [vmem:[%s2231_s1 + $0x188] sm:$0xff]  ;;  %v1200_v7 = vpack.c.bf16 %v143_v4, %v142_v2  ;;  %v144_v14 = vld [vmem:[%s2231_s1 + $0x10] sm:$0xff]  ;;  %v1202_v16 = vpack.c.bf16 %v161_v13, %v160_v11 }
   0x4   :  { %v1230_v8 = vpack.c.bf16 %v191_v6, %v190_v5  ;;  %v174_v9 = vld [vmem:[%s2231_s1 + $0x100] sm:$0xff]  ;;  %v175_v10 = vld [vmem:[%s2231_s1 + $0x108] sm:$0xff]  ;;  %1199 = vmatprep.subr.bf16.mxu0 %v1198_v3  ;;  %v145_v15 = vld [vmem:[%s2231_s1 + $0x18] sm:$0xff] }
   0x5   :  { %v1232_v12 = vpack.c.bf16 %v175_v10, %v174_v9  ;;  %1201 = vmatpush3.bf16.msra.mxu0 %v1200_v7  ;;  %v1204_v17 = vpack.c.bf16 %v145_v15, %v144_v14  ;;  %v192_v18 = vld [vmem:[%s2231_s1 + $0x190] sm:$0xff]  ;;  %v193_v19 = vld [vmem:[%s2231_s1 + $0x198] sm:$0xff]  ;;  %v162_v23 = vld [vmem:[%s2231_s1 + $0xa0] sm:$0xff] }
   0x6   :  { %1231 = vmatprep.subr.bf16.mxu1 %v1230_v8  ;;  %v176_v20 = vld [vmem:[%s2231_s1 + $0x110] sm:$0xff]  ;;  %v1234_v21 = vpack.c.bf16 %v193_v19, %v192_v18  ;;  %v177_v22 = vld [vmem:[%s2231_s1 + $0x118] sm:$0xff]  ;;  %v163_v24 = vld [vmem:[%s2231_s1 + $0xa8] sm:$0xff]  ;;  %1203 = vmatprep.subr.bf16.mxu0 %v1202_v16 }
   0x7   :  { %1233 = vmatpush3.bf16.msra.mxu1 %v1232_v12  ;;  %v1236_v25 = vpack.c.bf16 %v177_v22, %v176_v20  ;;  %v1206_v26 = vpack.c.bf16 %v163_v24, %v162_v23  ;;  %v146_v27 = vld [vmem:[%s2231_s1 + $0x20] sm:$0xff]  ;;  %v147_v28 = vld [vmem:[%s2231_s1 + $0x28] sm:$0xff]  ;;  %v164_v35 = vld [vmem:[%s2231_s1 + $0xb0] sm:$0xff] }
   0x8   :  { %v194_v29 = vld [vmem:[%s2231_s1 + $0x1a0] sm:$0xff]  ;;  %1235 = vmatprep.subr.bf16.mxu1 %v1234_v21  ;;  %v195_v30 = vld [vmem:[%s2231_s1 + $0x1a8] sm:$0xff]  ;;  %v1208_v33 = vpack.c.bf16 %v147_v28, %v146_v27  ;;  %v165_v36 = vld [vmem:[%s2231_s1 + $0xb8] sm:$0xff] }
   0x9   :  { %v178_v31 = vld [vmem:[%s2231_s1 + $0x120] sm:$0xff]  ;;  %v179_v32 = vld [vmem:[%s2231_s1 + $0x128] sm:$0xff]  ;;  %1205 = vmatpush3.bf16.msra.mxu0 %v1204_v17  ;;  %v1238_v34 = vpack.c.bf16 %v195_v30, %v194_v29  ;;  %v148_v37 = vld [vmem:[%s2231_s1 + $0x30] sm:$0xff]  ;;  %v1210_v39 = vpack.c.bf16 %v165_v36, %v164_v35 }
   0xa   :  { %1207 = vmatprep.subr.bf16.mxu0 %v1206_v26  ;;  %v1240_v38 = vpack.c.bf16 %v179_v32, %v178_v31  ;;  %v149_v40 = vld [vmem:[%s2231_s1 + $0x38] sm:$0xff]  ;;  %v196_v41 = vld [vmem:[%s2231_s1 + $0x1b0] sm:$0xff]  ;;  %v166_v46 = vld [vmem:[%s2231_s1 + $0xc0] sm:$0xff] }
   0xb   :  { %1237 = vmatpush3.bf16.msra.mxu1 %v1236_v25  ;;  %v197_v42 = vld [vmem:[%s2231_s1 + $0x1b8] sm:$0xff]  ;;  %v180_v44 = vld [vmem:[%s2231_s1 + $0x130] sm:$0xff]  ;;  %v167_v47 = vld [vmem:[%s2231_s1 + $0xc8] sm:$0xff]  ;;  %v1212_v48 = vpack.c.bf16 %v149_v40, %v148_v37 }
   0xc   :  { %1239 = vmatprep.subr.bf16.mxu1 %v1238_v34  ;;  %v1242_v43 = vpack.c.bf16 %v197_v42, %v196_v41  ;;  %v181_v45 = vld [vmem:[%s2231_s1 + $0x138] sm:$0xff]  ;;  %v198_v49 = vld [vmem:[%s2231_s1 + $0x1c0] sm:$0xff]  ;;  %v199_v50 = vld [vmem:[%s2231_s1 + $0x1c8] sm:$0xff]  ;;  %v1214_v52 = vpack.c.bf16 %v167_v47, %v166_v46 }
   0xd   :  { %1209 = vmatpush3.bf16.msra.mxu0 %v1208_v33  ;;  %v1244_v51 = vpack.c.bf16 %v181_v45, %v180_v44  ;;  %v150_v53 = vld [vmem:[%s2231_s1 + $0x40] sm:$0xff]  ;;  %v151_v54 = vld [vmem:[%s2231_s1 + $0x48] sm:$0xff]  ;;  %v1246_v56 = vpack.c.bf16 %v199_v50, %v198_v49  ;;  %v168_v58 = vld [vmem:[%s2231_s1 + $0xd0] sm:$0xff] }
   0xe   :  { %1211 = vmatprep.subr.bf16.mxu0 %v1210_v39  ;;  %v182_v55 = vld [vmem:[%s2231_s1 + $0x140] sm:$0xff]  ;;  %v183_v57 = vld [vmem:[%s2231_s1 + $0x148] sm:$0xff]  ;;  %v169_v59 = vld [vmem:[%s2231_s1 + $0xd8] sm:$0xff]  ;;  %v1216_v62 = vpack.c.bf16 %v151_v54, %v150_v53 }
   0xf   :  { %1241 = vmatpush3.bf16.msra.mxu1 %v1240_v38  ;;  %v200_v60 = vld [vmem:[%s2231_s1 + $0x1d0] sm:$0xff]  ;;  %v201_v61 = vld [vmem:[%s2231_s1 + $0x1d8] sm:$0xff]  ;;  %v1248_v63 = vpack.c.bf16 %v183_v57, %v182_v55  ;;  %v1218_v0 = vpack.c.bf16 %v169_v59, %v168_v58  ;;  %v170_v6 = vld [vmem:[%s2231_s1 + $0xe0] sm:$0xff] }
  0x10   :  { %1243 = vmatprep.subr.bf16.mxu1 %v1242_v43  ;;  %v152_v1 = vld [vmem:[%s2231_s1 + $0x50] sm:$0xff]  ;;  %v153_v2 = vld [vmem:[%s2231_s1 + $0x58] sm:$0xff]  ;;  %v1250_v4 = vpack.c.bf16 %v201_v61, %v200_v60  ;;  %v171_v7 = vld [vmem:[%s2231_s1 + $0xe8] sm:$0xff] }
  0x11   :  { %1213 = vmatpush3.bf16.msra.mxu0 %v1212_v48  ;;  %v184_v3 = vld [vmem:[%s2231_s1 + $0x150] sm:$0xff]  ;;  %v185_v5 = vld [vmem:[%s2231_s1 + $0x158] sm:$0xff]  ;;  %v202_v8 = vld [vmem:[%s2231_s1 + $0x1e0] sm:$0xff]  ;;  %v1220_v10 = vpack.c.bf16 %v153_v2, %v152_v1  ;;  %v1222_v14 = vpack.c.bf16 %v171_v7, %v170_v6 }
  0x12   :  { %1215 = vmatprep.subr.bf16.mxu0 %v1214_v52  ;;  %v203_v9 = vld [vmem:[%s2231_s1 + $0x1e8] sm:$0xff]  ;;  %v154_v11 = vld [vmem:[%s2231_s1 + $0x60] sm:$0xff]  ;;  %v1252_v13 = vpack.c.bf16 %v185_v5, %v184_v3  ;;  %v172_v19 = vld [vmem:[%s2231_s1 + $0xf0] sm:$0xff] }
  0x13   :  { %1245 = vmatpush3.bf16.msra.mxu1 %v1244_v51  ;;  %v15_v12 = vld [vmem:[%s2232_s0 + $0x8] sm:$0xff]  ;;  %v186_v16 = vld [vmem:[%s2231_s1 + $0x160] sm:$0xff]  ;;  %v1254_v18 = vpack.c.bf16 %v203_v9, %v202_v8  ;;  %v173_v20 = vld [vmem:[%s2231_s1 + $0xf8] sm:$0xff] }
  0x14   :  { %1247 = vmatprep.subr.bf16.mxu1 %v1246_v56  ;;  %v155_v15 = vld [vmem:[%s2231_s1 + $0x68] sm:$0xff]  ;;  %341 = vmatprep.mubr.f32.mxu0 %v15_v12  ;;  %v17_v21 = vld [vmem:[%s2232_s0 + $0x18] sm:$0xff]  ;;  %v204_v22 = vld [vmem:[%s2231_s1 + $0x1f0] sm:$0xff]  ;;  %v1226_v26 = vpack.c.bf16 %v173_v20, %v172_v19 }
  0x15   :  { %1217 = vmatpush3.bf16.msra.mxu0 %v1216_v62  ;;  %v187_v17 = vld [vmem:[%s2231_s1 + $0x168] sm:$0xff]  ;;  %v205_v23 = vld [vmem:[%s2231_s1 + $0x1f8] sm:$0xff]  ;;  %486 = vmatprep.mubr.f32.mxu1 %v17_v21  ;;  %v1224_v24 = vpack.c.bf16 %v155_v15, %v154_v11  ;;  %v156_v27 = vld [vmem:[%s2231_s1 + $0x70] sm:$0xff] }
  0x16   :  { %1219 = vmatprep.subr.bf16.mxu0 %v1218_v0  ;;  %v1256_v25 = vpack.c.bf16 %v187_v17, %v186_v16  ;;  %v157_v28 = vld [vmem:[%s2231_s1 + $0x78] sm:$0xff]  ;;  %v188_v29 = vld [vmem:[%s2231_s1 + $0x170] sm:$0xff]  ;;  %v1258_v30 = vpack.c.bf16 %v205_v23, %v204_v22  ;;  %v222_v32 = vld [vmem:[%s2231_s1 + $0x280] sm:$0xff] }
  0x17   :  { %1249 = vmatpush3.bf16.msra.mxu1 %v1248_v63  ;;  %v189_v31 = vld [vmem:[%s2231_s1 + $0x178] sm:$0xff]  ;;  %v223_v33 = vld [vmem:[%s2231_s1 + $0x288] sm:$0xff]  ;;  %v254_v34 = vld [vmem:[%s2231_s1 + $0x380] sm:$0xff]  ;;  %v1228_v36 = vpack.c.bf16 %v157_v28, %v156_v27 }
  0x18   :  { %1251 = vmatprep.subr.bf16.mxu1 %v1250_v4  ;;  %v255_v35 = vld [vmem:[%s2231_s1 + $0x388] sm:$0xff]  ;;  %v1260_v37 = vpack.c.bf16 %v189_v31, %v188_v29  ;;  %v1262_v38 = vpack.c.bf16 %v223_v33, %v222_v32  ;;  %v206_v39 = vld [vmem:[%s2231_s1 + $0x200] sm:$0xff]  ;;  %v224_v44 = vld [vmem:[%s2231_s1 + $0x290] sm:$0xff] }
  0x19   :  { %1221 = vmatpush3.bf16.msra.mxu0 %v1220_v10  ;;  %v207_v40 = vld [vmem:[%s2231_s1 + $0x208] sm:$0xff]  ;;  %v1294_v41 = vpack.c.bf16 %v255_v35, %v254_v34  ;;  %v238_v42 = vld [vmem:[%s2231_s1 + $0x300] sm:$0xff]  ;;  %v225_v45 = vld [vmem:[%s2231_s1 + $0x298] sm:$0xff] }
  0x1a   :  { %1223 = vmatprep.subr.bf16.mxu0 %v1222_v14  ;;  %v239_v43 = vld [vmem:[%s2231_s1 + $0x308] sm:$0xff]  ;;  %v14_v46 = vld [vmem:[%s2232_s0] sm:$0xff]  ;;  %v1264_v47 = vpack.c.bf16 %v207_v40, %v206_v39  ;;  %v256_v48 = vld [vmem:[%s2231_s1 + $0x390] sm:$0xff]  ;;  %v1266_v54 = vpack.c.bf16 %v225_v45, %v224_v44 }
  0x1b   :  { %1253 = vmatpush3.bf16.msra.mxu1 %v1252_v13  ;;  %v257_v49 = vld [vmem:[%s2231_s1 + $0x398] sm:$0xff]  ;;  %v16_v50 = vld [vmem:[%s2232_s0 + $0x10] sm:$0xff]  ;;  %v23_v51 = vld [vmem:[%s2232_s0 + $0x48] sm:$0xff]  ;;  %v1296_v52 = vpack.c.bf16 %v239_v43, %v238_v42 }
  0x1c   :  { %1255 = vmatprep.subr.bf16.mxu1 %v1254_v18  ;;  %v25_v53 = vld [vmem:[%s2232_s0 + $0x58] sm:$0xff]  ;;  %v208_v55 = vld [vmem:[%s2231_s1 + $0x210] sm:$0xff]  ;;  %v1298_v58 = vpack.c.bf16 %v257_v49, %v256_v48  ;;  %v226_v60 = vld [vmem:[%s2231_s1 + $0x2a0] sm:$0xff] }
  0x1d   :  { %1225 = vmatpush3.bf16.msra.mxu0 %v1224_v24  ;;  %v209_v56 = vld [vmem:[%s2231_s1 + $0x218] sm:$0xff]  ;;  %v240_v57 = vld [vmem:[%s2231_s1 + $0x310] sm:$0xff]  ;;  %v227_v61 = vld [vmem:[%s2231_s1 + $0x2a8] sm:$0xff] }
  0x1e   :  { %1227 = vmatprep.subr.bf16.mxu0 %v1226_v26  ;;  %v241_v59 = vld [vmem:[%s2231_s1 + $0x318] sm:$0xff]  ;;  %v22_v62 = vld [vmem:[%s2232_s0 + $0x40] sm:$0xff]  ;;  %v259_v0 = vld [vmem:[%s2231_s1 + $0x3a8] sm:$0xff]  ;;  %v1268_v4 = vpack.c.bf16 %v209_v56, %v208_v55  ;;  %v1270_v6 = vpack.c.bf16 %v227_v61, %v226_v60 }
  0x1f   :  { %1257 = vmatpush3.bf16.msra.mxu1 %v1256_v25  ;;  %v258_v63 = vld [vmem:[%s2231_s1 + $0x3a0] sm:$0xff]  ;;  %v24_v1 = vld [vmem:[%s2232_s0 + $0x50] sm:$0xff]  ;;  %v31_v2 = vld [vmem:[%s2232_s0 + $0x88] sm:$0xff]  ;;  %v1300_v5 = vpack.c.bf16 %v241_v59, %v240_v57 }
  0x20   :  { %1259 = vmatprep.subr.bf16.mxu1 %v1258_v30  ;;  %v33_v3 = vld [vmem:[%s2232_s0 + $0x98] sm:$0xff]  ;;  %v210_v7 = vld [vmem:[%s2231_s1 + $0x220] sm:$0xff]  ;;  %v211_v8 = vld [vmem:[%s2231_s1 + $0x228] sm:$0xff]  ;;  %v1302_v10 = vpack.c.bf16 %v259_v0, %v258_v63 }
  0x21   :  { %1229 = vmatpush3.bf16.msra.mxu0 %v1228_v36  ;;  %v242_v9 = vld [vmem:[%s2231_s1 + $0x320] sm:$0xff]  ;;  %v243_v11 = vld [vmem:[%s2231_s1 + $0x328] sm:$0xff]  ;;  %v228_v12 = vld [vmem:[%s2231_s1 + $0x2b0] sm:$0xff]  ;;  %v1272_v20 = vpack.c.bf16 %v211_v8, %v210_v7 }
  0x22   :  { %1263 = vmatprep.subr.bf16.mxu0 %v1262_v38  ;;  %v229_v13 = vld [vmem:[%s2231_s1 + $0x2b8] sm:$0xff]  ;;  %v30_v14 = vld [vmem:[%s2232_s0 + $0x80] sm:$0xff]  ;;  %v260_v15 = vld [vmem:[%s2231_s1 + $0x3b0] sm:$0xff]  ;;  %v1304_v21 = vpack.c.bf16 %v243_v11, %v242_v9 }
  0x23   :  { %1261 = vmatpush3.bf16.msra.mxu1 %v1260_v37  ;;  %v261_v16 = vld [vmem:[%s2231_s1 + $0x3b8] sm:$0xff]  ;;  %v32_v17 = vld [vmem:[%s2232_s0 + $0x90] sm:$0xff]  ;;  %v39_v18 = vld [vmem:[%s2232_s0 + $0xc8] sm:$0xff]  ;;  %v1274_v22 = vpack.c.bf16 %v229_v13, %v228_v12 }
  0x24   :  { %1295 = vmatprep.subr.bf16.mxu1 %v1294_v41  ;;  %342 = vmatmul.mubr.f32.vlgmr.msra.gmra.mrb[0].mxu0 %v14_v46  ;;  %v41_v19 = vld [vmem:[%s2232_s0 + $0xd8] sm:$0xff]  ;;  %v212_v23 = vld [vmem:[%s2231_s1 + $0x230] sm:$0xff]  ;;  %v1306_v26 = vpack.c.bf16 %v261_v16, %v260_v15  ;;  %v230_v28 = vld [vmem:[%s2231_s1 + $0x2c0] sm:$0xff] }
  0x25   :  { %1265 = vmatpush3.bf16.msra.mxu0 %v1264_v47  ;;  %346 = vmatprep.mubr.f32.mxu0 %v23_v51  ;;  %v213_v24 = vld [vmem:[%s2231_s1 + $0x238] sm:$0xff]  ;;  %v244_v25 = vld [vmem:[%s2231_s1 + $0x330] sm:$0xff]  ;;  %v231_v29 = vld [vmem:[%s2231_s1 + $0x2c8] sm:$0xff] }
  0x26   :  { %487 = vmatmul.mubr.f32.vlgmr.msra.gmra.mrb[0].mxu1 %v16_v50  ;;  %1267 = vmatprep.subr.bf16.mxu0 %v1266_v54  ;;  %v245_v27 = vld [vmem:[%s2231_s1 + $0x338] sm:$0xff]  ;;  %v38_v30 = vld [vmem:[%s2232_s0 + $0xc0] sm:$0xff]  ;;  %v40_v31 = vld [vmem:[%s2232_s0 + $0xd0] sm:$0xff]  ;;  %v1276_v33 = vpack.c.bf16 %v213_v24, %v212_v23  ;;  %v1278_v38 = vpack.c.bf16 %v231_v29, %v230_v28 }
  0x27   :  { %1297 = vmatpush3.bf16.msra.mxu1 %v1296_v52  ;;  %491 = vmatprep.mubr.f32.mxu1 %v25_v53  ;;  %v47_v32 = vld [vmem:[%s2232_s0 + $0x108] sm:$0xff]  ;;  %v262_v34 = vld [vmem:[%s2231_s1 + $0x3c0] sm:$0xff]  ;;  %v49_v36 = vld [vmem:[%s2232_s0 + $0x118] sm:$0xff]  ;;  %v1308_v37 = vpack.c.bf16 %v245_v27, %v244_v25 }
  0x28   :  { %347 = vmatmul.mubr.f32.gmra.mrb[2].mxu0 %v22_v62  ;;  %1299 = vmatprep.subr.bf16.mxu1 %v1298_v58  ;;  %v263_v35 = vld [vmem:[%s2231_s1 + $0x3c8] sm:$0xff]  ;;  %v214_v39 = vld [vmem:[%s2231_s1 + $0x240] sm:$0xff]  ;;  %v48_v45 = vld [vmem:[%s2232_s0 + $0x110] sm:$0xff] }
  0x29   :  { %351 = vmatprep.mubr.f32.mxu0 %v31_v2  ;;  %1269 = vmatpush3.bf16.msra.mxu0 %v1268_v4  ;;  %v215_v40 = vld [vmem:[%s2231_s1 + $0x248] sm:$0xff]  ;;  %v1310_v41 = vpack.c.bf16 %v263_v35, %v262_v34  ;;  %v246_v42 = vld [vmem:[%s2231_s1 + $0x340] sm:$0xff]  ;;  %v232_v46 = vld [vmem:[%s2231_s1 + $0x2d0] sm:$0xff] }
  0x2a   :  { %492 = vmatmul.mubr.f32.gmra.mrb[2].mxu1 %v24_v1  ;;  %1271 = vmatprep.subr.bf16.mxu0 %v1270_v6  ;;  %v247_v43 = vld [vmem:[%s2231_s1 + $0x348] sm:$0xff]  ;;  %v46_v44 = vld [vmem:[%s2232_s0 + $0x100] sm:$0xff]  ;;  %v57_v48 = vld [vmem:[%s2232_s0 + $0x158] sm:$0xff]  ;;  %v1280_v49 = vpack.c.bf16 %v215_v40, %v214_v39 }
  0x2b   :  { %496 = vmatprep.mubr.f32.mxu1 %v33_v3  ;;  %1301 = vmatpush3.bf16.msra.mxu1 %v1300_v5  ;;  %v55_v47 = vld [vmem:[%s2232_s0 + $0x148] sm:$0xff]  ;;  %v233_v50 = vld [vmem:[%s2231_s1 + $0x2d8] sm:$0xff]  ;;  %v1312_v51 = vpack.c.bf16 %v247_v43, %v246_v42  ;;  %v216_v53 = vld [vmem:[%s2231_s1 + $0x250] sm:$0xff] }
  0x2c   :  { %352 = vmatmul.mubr.f32.gmra.mrb[4].mxu0 %v30_v14  ;;  %1303 = vmatprep.subr.bf16.mxu1 %v1302_v10  ;;  %v1282_v52 = vpack.c.bf16 %v233_v50, %v232_v46  ;;  %v217_v54 = vld [vmem:[%s2231_s1 + $0x258] sm:$0xff]  ;;  %v264_v55 = vld [vmem:[%s2231_s1 + $0x3d0] sm:$0xff]  ;;  %v54_v58 = vld [vmem:[%s2232_s0 + $0x140] sm:$0xff] }
  0x2d   :  { %356 = vmatprep.mubr.f32.mxu0 %v39_v18  ;;  %1273 = vmatpush3.bf16.msra.mxu0 %v1272_v20  ;;  %v265_v56 = vld [vmem:[%s2231_s1 + $0x3d8] sm:$0xff]  ;;  %v248_v57 = vld [vmem:[%s2231_s1 + $0x350] sm:$0xff]  ;;  %v63_v62 = vld [vmem:[%s2232_s0 + $0x188] sm:$0xff]  ;;  %v1284_v63 = vpack.c.bf16 %v217_v54, %v216_v53 }
  0x2e   :  { %497 = vmatmul.mubr.f32.gmra.mrb[4].mxu1 %v32_v17  ;;  %1275 = vmatprep.subr.bf16.mxu0 %v1274_v22  ;;  %v1314_v59 = vpack.c.bf16 %v265_v56, %v264_v55  ;;  %v249_v60 = vld [vmem:[%s2231_s1 + $0x358] sm:$0xff]  ;;  %v56_v61 = vld [vmem:[%s2232_s0 + $0x150] sm:$0xff]  ;;  %v234_v2 = vld [vmem:[%s2231_s1 + $0x2e0] sm:$0xff] }
  0x2f   :  { %501 = vmatprep.mubr.f32.mxu1 %v41_v19  ;;  %1305 = vmatpush3.bf16.msra.mxu1 %v1304_v21  ;;  %v65_v0 = vld [vmem:[%s2232_s0 + $0x198] sm:$0xff]  ;;  %v1316_v1 = vpack.c.bf16 %v249_v60, %v248_v57  ;;  %v235_v3 = vld [vmem:[%s2231_s1 + $0x2e8] sm:$0xff]  ;;  %v62_v4 = vld [vmem:[%s2232_s0 + $0x180] sm:$0xff] }
  0x30   :  { %357 = vmatmul.mubr.f32.gmra.mrb[6].mxu0 %v38_v30  ;;  %1307 = vmatprep.subr.bf16.mxu1 %v1306_v26  ;;  %v1286_v5 = vpack.c.bf16 %v235_v3, %v234_v2  ;;  %v218_v6 = vld [vmem:[%s2231_s1 + $0x260] sm:$0xff]  ;;  %v219_v7 = vld [vmem:[%s2231_s1 + $0x268] sm:$0xff]  ;;  %v64_v8 = vld [vmem:[%s2232_s0 + $0x190] sm:$0xff] }
  0x31   :  { %361 = vmatprep.mubr.f32.mxu0 %v47_v32  ;;  %1277 = vmatpush3.bf16.msra.mxu0 %v1276_v33  ;;  %v266_v9 = vld [vmem:[%s2231_s1 + $0x3e0] sm:$0xff]  ;;  %v267_v10 = vld [vmem:[%s2231_s1 + $0x3e8] sm:$0xff]  ;;  %v1288_v12 = vpack.c.bf16 %v219_v7, %v218_v6  ;;  %v73_v16 = vld [vmem:[%s2232_s0 + $0x1d8] sm:$0xff] }
  0x32   :  { %502 = vmatmul.mubr.f32.gmra.mrb[6].mxu1 %v40_v31  ;;  %1279 = vmatprep.subr.bf16.mxu0 %v1278_v38  ;;  %v71_v11 = vld [vmem:[%s2232_s0 + $0x1c8] sm:$0xff]  ;;  %v1318_v13 = vpack.c.bf16 %v267_v10, %v266_v9  ;;  %v250_v14 = vld [vmem:[%s2231_s1 + $0x360] sm:$0xff]  ;;  %v236_v19 = vld [vmem:[%s2231_s1 + $0x2f0] sm:$0xff] }
  0x33   :  { %506 = vmatprep.mubr.f32.mxu1 %v49_v36  ;;  %1309 = vmatpush3.bf16.msra.mxu1 %v1308_v37  ;;  %v251_v15 = vld [vmem:[%s2231_s1 + $0x368] sm:$0xff]  ;;  %v70_v18 = vld [vmem:[%s2232_s0 + $0x1c0] sm:$0xff]  ;;  %v237_v20 = vld [vmem:[%s2231_s1 + $0x2f8] sm:$0xff] }
  0x34   :  { %362 = vmatmul.mubr.f32.gmra.mrb[8].mxu0 %v46_v44  ;;  %1311 = vmatprep.subr.bf16.mxu1 %v1310_v41  ;;  %v1320_v17 = vpack.c.bf16 %v251_v15, %v250_v14  ;;  %v72_v21 = vld [vmem:[%s2232_s0 + $0x1d0] sm:$0xff]  ;;  %v1290_v22 = vpack.c.bf16 %v237_v20, %v236_v19  ;;  %v221_v24 = vld [vmem:[%s2231_s1 + $0x278] sm:$0xff]  ;;  %v79_v25 = vld [vmem:[%s2232_s0 + $0x208] sm:$0xff] }
  0x35   :  { %366 = vmatprep.mubr.f32.mxu0 %v55_v47  ;;  %1281 = vmatpush3.bf16.msra.mxu0 %v1280_v49  ;;  %v220_v23 = vld [vmem:[%s2231_s1 + $0x270] sm:$0xff]  ;;  %v269_v28 = vld [vmem:[%s2231_s1 + $0x3f8] sm:$0xff]  ;;  %v78_v34 = vld [vmem:[%s2232_s0 + $0x200] sm:$0xff] }
  0x36   :  { %507 = vmatmul.mubr.f32.gmra.mrb[8].mxu1 %v48_v45  ;;  %1283 = vmatprep.subr.bf16.mxu0 %v1282_v52  ;;  %v1292_v26 = vpack.c.bf16 %v221_v24, %v220_v23  ;;  %v268_v27 = vld [vmem:[%s2231_s1 + $0x3f0] sm:$0xff]  ;;  %v81_v29 = vld [vmem:[%s2232_s0 + $0x218] sm:$0xff]  ;;  %v87_v36 = vld [vmem:[%s2232_s0 + $0x248] sm:$0xff] }
  0x37   :  { %511 = vmatprep.mubr.f32.mxu1 %v57_v48  ;;  %1313 = vmatpush3.bf16.msra.mxu1 %v1312_v51  ;;  %v1322_v30 = vpack.c.bf16 %v269_v28, %v268_v27  ;;  %v252_v31 = vld [vmem:[%s2231_s1 + $0x370] sm:$0xff]  ;;  %v253_v32 = vld [vmem:[%s2231_s1 + $0x378] sm:$0xff]  ;;  %v86_v38 = vld [vmem:[%s2232_s0 + $0x240] sm:$0xff] }
  0x38   :  { %367 = vmatmul.mubr.f32.gmra.mrb[10].mxu0 %v54_v58  ;;  %1315 = vmatprep.subr.bf16.mxu1 %v1314_v59  ;;  %v1324_v33 = vpack.c.bf16 %v253_v32, %v252_v31  ;;  %v80_v35 = vld [vmem:[%s2232_s0 + $0x210] sm:$0xff]  ;;  %v89_v37 = vld [vmem:[%s2232_s0 + $0x258] sm:$0xff]  ;;  %v95_v40 = vld [vmem:[%s2232_s0 + $0x288] sm:$0xff] }
  0x39   :  { %371 = vmatprep.mubr.f32.mxu0 %v63_v62  ;;  %1285 = vmatpush3.bf16.msra.mxu0 %v1284_v63  ;;  %v88_v39 = vld [vmem:[%s2232_s0 + $0x250] sm:$0xff]  ;;  %v97_v41 = vld [vmem:[%s2232_s0 + $0x298] sm:$0xff]  ;;  %v94_v42 = vld [vmem:[%s2232_s0 + $0x280] sm:$0xff] }
  0x3a   :  { %512 = vmatmul.mubr.f32.gmra.mrb[10].mxu1 %v56_v61  ;;  %1287 = vmatprep.subr.bf16.mxu0 %v1286_v5  ;;  %v96_v43 = vld [vmem:[%s2232_s0 + $0x290] sm:$0xff]  ;;  %v103_v44 = vld [vmem:[%s2232_s0 + $0x2c8] sm:$0xff]  ;;  %v105_v45 = vld [vmem:[%s2232_s0 + $0x2d8] sm:$0xff] }
  0x3b   :  { %516 = vmatprep.mubr.f32.mxu1 %v65_v0  ;;  %1317 = vmatpush3.bf16.msra.mxu1 %v1316_v1  ;;  %v102_v46 = vld [vmem:[%s2232_s0 + $0x2c0] sm:$0xff]  ;;  %v104_v47 = vld [vmem:[%s2232_s0 + $0x2d0] sm:$0xff]  ;;  %v111_v48 = vld [vmem:[%s2232_s0 + $0x308] sm:$0xff] }
  0x3c   :  { %372 = vmatmul.mubr.f32.gmra.mrb[12].mxu0 %v62_v4  ;;  %1319 = vmatprep.subr.bf16.mxu1 %v1318_v13  ;;  %v113_v49 = vld [vmem:[%s2232_s0 + $0x318] sm:$0xff]  ;;  %v110_v50 = vld [vmem:[%s2232_s0 + $0x300] sm:$0xff]  ;;  %v112_v51 = vld [vmem:[%s2232_s0 + $0x310] sm:$0xff] }
  0x3d   :  { %376 = vmatprep.mubr.f32.mxu0 %v71_v11  ;;  %1289 = vmatpush3.bf16.msra.mxu0 %v1288_v12  ;;  %v119_v52 = vld [vmem:[%s2232_s0 + $0x348] sm:$0xff]  ;;  %v121_v53 = vld [vmem:[%s2232_s0 + $0x358] sm:$0xff]  ;;  %v118_v54 = vld [vmem:[%s2232_s0 + $0x340] sm:$0xff] }
  0x3e   :  { %517 = vmatmul.mubr.f32.gmra.mrb[12].mxu1 %v64_v8  ;;  %1291 = vmatprep.subr.bf16.mxu0 %v1290_v22  ;;  %v120_v55 = vld [vmem:[%s2232_s0 + $0x350] sm:$0xff]  ;;  %v127_v56 = vld [vmem:[%s2232_s0 + $0x388] sm:$0xff]  ;;  %v129_v57 = vld [vmem:[%s2232_s0 + $0x398] sm:$0xff] }
  0x3f   :  { %521 = vmatprep.mubr.f32.mxu1 %v73_v16  ;;  %1321 = vmatpush3.bf16.msra.mxu1 %v1320_v17  ;;  %v126_v58 = vld [vmem:[%s2232_s0 + $0x380] sm:$0xff]  ;;  %v128_v59 = vld [vmem:[%s2232_s0 + $0x390] sm:$0xff]  ;;  %v135_v60 = vld [vmem:[%s2232_s0 + $0x3c8] sm:$0xff] }
  0x40   :  { %377 = vmatmul.mubr.f32.gmra.mrb[14].mxu0 %v70_v18  ;;  %1323 = vmatprep.subr.bf16.mxu1 %v1322_v30  ;;  %v137_v61 = vld [vmem:[%s2232_s0 + $0x3d8] sm:$0xff]  ;;  %v134_v62 = vld [vmem:[%s2232_s0 + $0x3c0] sm:$0xff]  ;;  %v136_v63 = vld [vmem:[%s2232_s0 + $0x3d0] sm:$0xff] }
  0x41   :  { %381 = vmatprep.mubr.f32.mxu0 %v79_v25  ;;  %1293 = vmatpush3.bf16.msra.mxu0 %v1292_v26  ;;  %v19_v0 = vld [vmem:[%s2232_s0 + $0x28] sm:$0xff]  ;;  %v21_v1 = vld [vmem:[%s2232_s0 + $0x38] sm:$0xff]  ;;  %v18_v2 = vld [vmem:[%s2232_s0 + $0x20] sm:$0xff] }
  0x42   :  { %522 = vmatmul.mubr.f32.gmra.mrb[14].mxu1 %v72_v21  ;;  %v20_v3 = vld [vmem:[%s2232_s0 + $0x30] sm:$0xff]  ;;  %v27_v4 = vld [vmem:[%s2232_s0 + $0x68] sm:$0xff]  ;;  %v29_v5 = vld [vmem:[%s2232_s0 + $0x78] sm:$0xff] }
  0x43   :  { %526 = vmatprep.mubr.f32.mxu1 %v81_v29  ;;  %1325 = vmatpush3.bf16.msra.mxu1 %v1324_v33  ;;  %v26_v6 = vld [vmem:[%s2232_s0 + $0x60] sm:$0xff]  ;;  %v28_v7 = vld [vmem:[%s2232_s0 + $0x70] sm:$0xff]  ;;  %v35_v8 = vld [vmem:[%s2232_s0 + $0xa8] sm:$0xff] }
  0x44   :  { %382 = vmatmul.mubr.f32.gmra.mrb[16].mxu0 %v78_v34  ;;  %v37_v9 = vld [vmem:[%s2232_s0 + $0xb8] sm:$0xff]  ;;  %v34_v10 = vld [vmem:[%s2232_s0 + $0xa0] sm:$0xff]  ;;  %v36_v11 = vld [vmem:[%s2232_s0 + $0xb0] sm:$0xff] }
  0x45   :  { %386 = vmatprep.mubr.f32.mxu0 %v87_v36  ;;  %v43_v12 = vld [vmem:[%s2232_s0 + $0xe8] sm:$0xff]  ;;  %v45_v13 = vld [vmem:[%s2232_s0 + $0xf8] sm:$0xff]  ;;  %v42_v14 = vld [vmem:[%s2232_s0 + $0xe0] sm:$0xff] }
  0x46   :  { %527 = vmatmul.mubr.f32.gmra.mrb[16].mxu1 %v80_v35  ;;  %v44_v15 = vld [vmem:[%s2232_s0 + $0xf0] sm:$0xff]  ;;  %v51_v16 = vld [vmem:[%s2232_s0 + $0x128] sm:$0xff]  ;;  %v53_v17 = vld [vmem:[%s2232_s0 + $0x138] sm:$0xff] }
  0x47   :  { %531 = vmatprep.mubr.f32.mxu1 %v89_v37  ;;  %v50_v18 = vld [vmem:[%s2232_s0 + $0x120] sm:$0xff]  ;;  %v52_v19 = vld [vmem:[%s2232_s0 + $0x130] sm:$0xff]  ;;  %v59_v20 = vld [vmem:[%s2232_s0 + $0x168] sm:$0xff] }
  0x48   :  { %387 = vmatmul.mubr.f32.gmra.mrb[18].mxu0 %v86_v38  ;;  %v61_v21 = vld [vmem:[%s2232_s0 + $0x178] sm:$0xff]  ;;  %v58_v22 = vld [vmem:[%s2232_s0 + $0x160] sm:$0xff]  ;;  %v60_v23 = vld [vmem:[%s2232_s0 + $0x170] sm:$0xff] }
  0x49   :  { %391 = vmatprep.mubr.f32.mxu0 %v95_v40  ;;  %v67_v24 = vld [vmem:[%s2232_s0 + $0x1a8] sm:$0xff]  ;;  %v69_v25 = vld [vmem:[%s2232_s0 + $0x1b8] sm:$0xff]  ;;  %v66_v26 = vld [vmem:[%s2232_s0 + $0x1a0] sm:$0xff] }
  0x4a   :  { %532 = vmatmul.mubr.f32.gmra.mrb[18].mxu1 %v88_v39  ;;  %v68_v27 = vld [vmem:[%s2232_s0 + $0x1b0] sm:$0xff]  ;;  %v75_v28 = vld [vmem:[%s2232_s0 + $0x1e8] sm:$0xff]  ;;  %v77_v29 = vld [vmem:[%s2232_s0 + $0x1f8] sm:$0xff] }
  0x4b   :  { %536 = vmatprep.mubr.f32.mxu1 %v97_v41  ;;  %v74_v30 = vld [vmem:[%s2232_s0 + $0x1e0] sm:$0xff]  ;;  %v76_v31 = vld [vmem:[%s2232_s0 + $0x1f0] sm:$0xff]  ;;  %v83_v32 = vld [vmem:[%s2232_s0 + $0x228] sm:$0xff] }
  0x4c   :  { %392 = vmatmul.mubr.f32.gmra.mrb[20].mxu0 %v94_v42  ;;  %v85_v33 = vld [vmem:[%s2232_s0 + $0x238] sm:$0xff]  ;;  %v82_v34 = vld [vmem:[%s2232_s0 + $0x220] sm:$0xff]  ;;  %v84_v35 = vld [vmem:[%s2232_s0 + $0x230] sm:$0xff] }
  0x4d   :  { %396 = vmatprep.mubr.f32.mxu0 %v103_v44  ;;  %v91_v36 = vld [vmem:[%s2232_s0 + $0x268] sm:$0xff]  ;;  %v93_v37 = vld [vmem:[%s2232_s0 + $0x278] sm:$0xff]  ;;  %v90_v38 = vld [vmem:[%s2232_s0 + $0x260] sm:$0xff] }
  0x4e   :  { %537 = vmatmul.mubr.f32.gmra.mrb[20].mxu1 %v96_v43  ;;  %v92_v39 = vld [vmem:[%s2232_s0 + $0x270] sm:$0xff]  ;;  %v99_v40 = vld [vmem:[%s2232_s0 + $0x2a8] sm:$0xff]  ;;  %v101_v41 = vld [vmem:[%s2232_s0 + $0x2b8] sm:$0xff] }
  0x4f   :  { %541 = vmatprep.mubr.f32.mxu1 %v105_v45  ;;  %v98_v42 = vld [vmem:[%s2232_s0 + $0x2a0] sm:$0xff]  ;;  %v100_v43 = vld [vmem:[%s2232_s0 + $0x2b0] sm:$0xff]  ;;  %v107_v44 = vld [vmem:[%s2232_s0 + $0x2e8] sm:$0xff] }
  0x50   :  { %397 = vmatmul.mubr.f32.gmra.mrb[22].mxu0 %v102_v46  ;;  %v109_v45 = vld [vmem:[%s2232_s0 + $0x2f8] sm:$0xff]  ;;  %v106_v46 = vld [vmem:[%s2232_s0 + $0x2e0] sm:$0xff] }
  0x51   :  { %401 = vmatprep.mubr.f32.mxu0 %v111_v48  ;;  %v115_v48 = vld [vmem:[%s2232_s0 + $0x328] sm:$0xff] }
  0x52   :  { %542 = vmatmul.mubr.f32.gmra.mrb[22].mxu1 %v104_v47  ;;  %v108_v47 = vld [vmem:[%s2232_s0 + $0x2f0] sm:$0xff] }
  0x53   :  { %546 = vmatprep.mubr.f32.mxu1 %v113_v49  ;;  %v117_v49 = vld [vmem:[%s2232_s0 + $0x338] sm:$0xff] }
  0x54   :  { %402 = vmatmul.mubr.f32.gmra.mrb[24].mxu0 %v110_v50  ;;  %v114_v50 = vld [vmem:[%s2232_s0 + $0x320] sm:$0xff] }
  0x55   :  { %406 = vmatprep.mubr.f32.mxu0 %v119_v52  ;;  %v123_v52 = vld [vmem:[%s2232_s0 + $0x368] sm:$0xff] }
  0x56   :  { %547 = vmatmul.mubr.f32.gmra.mrb[24].mxu1 %v112_v51  ;;  %v116_v51 = vld [vmem:[%s2232_s0 + $0x330] sm:$0xff] }
  0x57   :  { %551 = vmatprep.mubr.f32.mxu1 %v121_v53  ;;  %v125_v53 = vld [vmem:[%s2232_s0 + $0x378] sm:$0xff] }
  0x58   :  { %407 = vmatmul.mubr.f32.gmra.mrb[26].mxu0 %v118_v54  ;;  %v122_v54 = vld [vmem:[%s2232_s0 + $0x360] sm:$0xff] }
  0x59   :  { %411 = vmatprep.mubr.f32.mxu0 %v127_v56  ;;  %v131_v56 = vld [vmem:[%s2232_s0 + $0x3a8] sm:$0xff] }
  0x5a   :  { %552 = vmatmul.mubr.f32.gmra.mrb[26].mxu1 %v120_v55  ;;  %v124_v55 = vld [vmem:[%s2232_s0 + $0x370] sm:$0xff] }
  0x5b   :  { %556 = vmatprep.mubr.f32.mxu1 %v129_v57  ;;  %v133_v57 = vld [vmem:[%s2232_s0 + $0x3b8] sm:$0xff] }
  0x5c   :  { %412 = vmatmul.mubr.f32.gmra.mrb[28].mxu0 %v126_v58  ;;  %v130_v58 = vld [vmem:[%s2232_s0 + $0x3a0] sm:$0xff] }
  0x5d   :  { %416 = vmatprep.mubr.f32.mxu0 %v135_v60  ;;  %v139_v60 = vld [vmem:[%s2232_s0 + $0x3e8] sm:$0xff] }
  0x5e   :  { %557 = vmatmul.mubr.f32.gmra.mrb[28].mxu1 %v128_v59  ;;  %v132_v59 = vld [vmem:[%s2232_s0 + $0x3b0] sm:$0xff] }
  0x5f   :  { %561 = vmatprep.mubr.f32.mxu1 %v137_v61  ;;  %v141_v61 = vld [vmem:[%s2232_s0 + $0x3f8] sm:$0xff] }
  0x60   :  { %417 = vmatmul.mubr.f32.gmra.mrb[30].mxu0 %v134_v62  ;;  %v138_v62 = vld [vmem:[%s2232_s0 + $0x3e0] sm:$0xff] }
  0x61   :  { %631 = vmatprep.mubr.f32.mxu0 %v19_v0 }
  0x62   :  { %562 = vmatmul.mubr.f32.gmra.mrb[30].mxu1 %v136_v63  ;;  %v140_v63 = vld [vmem:[%s2232_s0 + $0x3f0] sm:$0xff] }
  0x63   :  { %776 = vmatprep.mubr.f32.mxu1 %v21_v1  ;;  %v2117_v1 = vld [vmem:[%s2233_s2] ss:$0 sm:$0xff] }
  0x64   :  { %632 = vmatmul.mubr.f32.vlgmr.msra.gmra.mrb[32].mxu0 %v18_v2 }
  0x65   :  { %636 = vmatprep.mubr.f32.mxu0 %v27_v4 }
  0x66   :  { %777 = vmatmul.mubr.f32.vlgmr.msra.gmra.mrb[32].mxu1 %v20_v3 }
  0x67   :  { %781 = vmatprep.mubr.f32.mxu1 %v29_v5 }
  0x68   :  { %637 = vmatmul.mubr.f32.gmra.mrb[34].mxu0 %v26_v6 }
  0x69   :  { %641 = vmatprep.mubr.f32.mxu0 %v35_v8 }
  0x6a   :  { %782 = vmatmul.mubr.f32.gmra.mrb[34].mxu1 %v28_v7 }
  0x6b   :  { %786 = vmatprep.mubr.f32.mxu1 %v37_v9 }
  0x6c   :  { %642 = vmatmul.mubr.f32.gmra.mrb[36].mxu0 %v34_v10 }
  0x6d   :  { %646 = vmatprep.mubr.f32.mxu0 %v43_v12 }
  0x6e   :  { %787 = vmatmul.mubr.f32.gmra.mrb[36].mxu1 %v36_v11 }
  0x6f   :  { %791 = vmatprep.mubr.f32.mxu1 %v45_v13 }
  0x70   :  { %647 = vmatmul.mubr.f32.gmra.mrb[38].mxu0 %v42_v14 }
  0x71   :  { %651 = vmatprep.mubr.f32.mxu0 %v51_v16 }
  0x72   :  { %792 = vmatmul.mubr.f32.gmra.mrb[38].mxu1 %v44_v15 }
  0x73   :  { %796 = vmatprep.mubr.f32.mxu1 %v53_v17 }
  0x74   :  { %652 = vmatmul.mubr.f32.gmra.mrb[40].mxu0 %v50_v18 }
  0x75   :  { %656 = vmatprep.mubr.f32.mxu0 %v59_v20 }
  0x76   :  { %797 = vmatmul.mubr.f32.gmra.mrb[40].mxu1 %v52_v19 }
  0x77   :  { %801 = vmatprep.mubr.f32.mxu1 %v61_v21 }
  0x78   :  { %657 = vmatmul.mubr.f32.gmra.mrb[42].mxu0 %v58_v22 }
  0x79   :  { %661 = vmatprep.mubr.f32.mxu0 %v67_v24 }
  0x7a   :  { %802 = vmatmul.mubr.f32.gmra.mrb[42].mxu1 %v60_v23 }
  0x7b   :  { %806 = vmatprep.mubr.f32.mxu1 %v69_v25 }
  0x7c   :  { %662 = vmatmul.mubr.f32.gmra.mrb[44].mxu0 %v66_v26 }
  0x7d   :  { %666 = vmatprep.mubr.f32.mxu0 %v75_v28 }
  0x7e   :  { %807 = vmatmul.mubr.f32.gmra.mrb[44].mxu1 %v68_v27 }
  0x7f   :  { %811 = vmatprep.mubr.f32.mxu1 %v77_v29 }
  0x80   :  { %667 = vmatmul.mubr.f32.gmra.mrb[46].mxu0 %v74_v30 }
  0x81   :  { %671 = vmatprep.mubr.f32.mxu0 %v83_v32 }
  0x82   :  { %812 = vmatmul.mubr.f32.gmra.mrb[46].mxu1 %v76_v31 }
  0x83   :  { %816 = vmatprep.mubr.f32.mxu1 %v85_v33 }
  0x84   :  { %672 = vmatmul.mubr.f32.gmra.mrb[48].mxu0 %v82_v34 }
  0x85   :  { %676 = vmatprep.mubr.f32.mxu0 %v91_v36 }
  0x86   :  { %817 = vmatmul.mubr.f32.gmra.mrb[48].mxu1 %v84_v35 }
  0x87   :  { %821 = vmatprep.mubr.f32.mxu1 %v93_v37 }
  0x88   :  { %677 = vmatmul.mubr.f32.gmra.mrb[50].mxu0 %v90_v38 }
  0x89   :  { %681 = vmatprep.mubr.f32.mxu0 %v99_v40 }
  0x8a   :  { %822 = vmatmul.mubr.f32.gmra.mrb[50].mxu1 %v92_v39 }
  0x8b   :  { %826 = vmatprep.mubr.f32.mxu1 %v101_v41 }
  0x8c   :  { %682 = vmatmul.mubr.f32.gmra.mrb[52].mxu0 %v98_v42 }
  0x8d   :  { %686 = vmatprep.mubr.f32.mxu0 %v107_v44 }
  0x8e   :  { %827 = vmatmul.mubr.f32.gmra.mrb[52].mxu1 %v100_v43 }
  0x8f   :  { %831 = vmatprep.mubr.f32.mxu1 %v109_v45 }
  0x90   :  { %687 = vmatmul.mubr.f32.gmra.mrb[54].mxu0 %v106_v46 }
  0x91   :  { %691 = vmatprep.mubr.f32.mxu0 %v115_v48 }
  0x92   :  { %832 = vmatmul.mubr.f32.gmra.mrb[54].mxu1 %v108_v47 }
  0x93   :  { %836 = vmatprep.mubr.f32.mxu1 %v117_v49 }
  0x94   :  { %692 = vmatmul.mubr.f32.gmra.mrb[56].mxu0 %v114_v50 }
  0x95   :  { %696 = vmatprep.mubr.f32.mxu0 %v123_v52 }
  0x96   :  { %837 = vmatmul.mubr.f32.gmra.mrb[56].mxu1 %v116_v51 }
  0x97   :  { %841 = vmatprep.mubr.f32.mxu1 %v125_v53 }
  0x98   :  { %697 = vmatmul.mubr.f32.gmra.mrb[58].mxu0 %v122_v54 }
  0x99   :  { %701 = vmatprep.mubr.f32.mxu0 %v131_v56 }
  0x9a   :  { %842 = vmatmul.mubr.f32.gmra.mrb[58].mxu1 %v124_v55 }
  0x9b   :  { %846 = vmatprep.mubr.f32.mxu1 %v133_v57 }
  0x9c   :  { %702 = vmatmul.mubr.f32.gmra.mrb[60].mxu0 %v130_v58 }
  0x9d   :  { %706 = vmatprep.mubr.f32.mxu0 %v139_v60 }
  0x9e   :  { %847 = vmatmul.mubr.f32.gmra.mrb[60].mxu1 %v132_v59 }
  0x9f   :  { %851 = vmatprep.mubr.f32.mxu1 %v141_v61 }
  0xa0   :  { %707 = vmatmul.mubr.f32.gmra.mrb[62].mxu0 %v138_v62 }
  0xa2   :  { %852 = vmatmul.mubr.f32.gmra.mrb[62].mxu1 %v140_v63 }
  0xf7   :  { %v910_v0 = vpop.f32.mrb[0].mxu0 }
  0xf8   :  { %v911_v2 = vpop.f32.mrb[1].mxu0 }
  0xf9   :  { %v990_v3 = vpop.f32.mrb[0].mxu1  ;;  %v912_v4 = vadd.f32 %v911_v2, %v910_v0 }
  0xfa   :  { %v991_v5 = vpop.f32.mrb[1].mxu1 }
  0xfb   :  { %v992_v6 = vadd.f32 %v991_v5, %v990_v3  ;;  %v344_v7 = vadd.f32 %v912_v4, %v2117_v1  ;;  %v913_v8 = vpop.f32.mrb[2].mxu0 }
  0xfc   :  { %v914_v9 = vpop.f32.mrb[3].mxu0 }
  0xfd   :  { %v993_v10 = vpop.f32.mrb[2].mxu1  ;;  %v2120_v11 = vadd.f32 %v992_v6, %v344_v7  ;;  %v915_v12 = vadd.f32 %v914_v9, %v913_v8 }
  0xfe   :  { %v994_v13 = vpop.f32.mrb[3].mxu1 }
  0xff   :  { %v995_v14 = vadd.f32 %v994_v13, %v993_v10  ;;  %v349_v15 = vadd.f32 %v915_v12, %v2117_v1  ;;  %v916_v16 = vpop.f32.mrb[4].mxu0 }
 0x100   :  { %v917_v17 = vpop.f32.mrb[5].mxu0 }
 0x101   :  { %v996_v18 = vpop.f32.mrb[4].mxu1  ;;  %v2123_v19 = vadd.f32 %v995_v14, %v349_v15  ;;  %v918_v20 = vadd.f32 %v917_v17, %v916_v16 }
 0x102   :  { %v997_v21 = vpop.f32.mrb[5].mxu1 }
 0x103   :  { %v998_v22 = vadd.f32 %v997_v21, %v996_v18  ;;  %v354_v23 = vadd.f32 %v918_v20, %v2117_v1  ;;  %v919_v24 = vpop.f32.mrb[6].mxu0 }
 0x104   :  { %v920_v25 = vpop.f32.mrb[7].mxu0 }
 0x105   :  { %v999_v26 = vpop.f32.mrb[6].mxu1  ;;  %v2126_v27 = vadd.f32 %v998_v22, %v354_v23  ;;  %v921_v28 = vadd.f32 %v920_v25, %v919_v24 }
 0x106   :  { %v1000_v29 = vpop.f32.mrb[7].mxu1 }
 0x107   :  { %v1001_v30 = vadd.f32 %v1000_v29, %v999_v26  ;;  %v359_v31 = vadd.f32 %v921_v28, %v2117_v1  ;;  %v922_v32 = vpop.f32.mrb[8].mxu0 }
 0x108   :  { %v923_v33 = vpop.f32.mrb[9].mxu0 }
 0x109   :  { %v1002_v34 = vpop.f32.mrb[8].mxu1  ;;  %v2129_v35 = vadd.f32 %v1001_v30, %v359_v31  ;;  %v924_v36 = vadd.f32 %v923_v33, %v922_v32 }
 0x10a   :  { %v1003_v37 = vpop.f32.mrb[9].mxu1 }
 0x10b   :  { %v1004_v38 = vadd.f32 %v1003_v37, %v1002_v34  ;;  %v364_v39 = vadd.f32 %v924_v36, %v2117_v1  ;;  %v925_v40 = vpop.f32.mrb[10].mxu0 }
 0x10c   :  { %v926_v41 = vpop.f32.mrb[11].mxu0 }
 0x10d   :  { %v1005_v42 = vpop.f32.mrb[10].mxu1  ;;  %v2132_v43 = vadd.f32 %v1004_v38, %v364_v39  ;;  %v927_v44 = vadd.f32 %v926_v41, %v925_v40 }
 0x10e   :  { %v1006_v45 = vpop.f32.mrb[11].mxu1 }
 0x10f   :  { %v1007_v46 = vadd.f32 %v1006_v45, %v1005_v42  ;;  %v369_v47 = vadd.f32 %v927_v44, %v2117_v1  ;;  %v928_v48 = vpop.f32.mrb[12].mxu0 }
 0x110   :  { %v929_v49 = vpop.f32.mrb[13].mxu0 }
 0x111   :  { %v1008_v50 = vpop.f32.mrb[12].mxu1  ;;  %v2135_v51 = vadd.f32 %v1007_v46, %v369_v47  ;;  %v930_v52 = vadd.f32 %v929_v49, %v928_v48 }
 0x112   :  { %v1009_v53 = vpop.f32.mrb[13].mxu1 }
 0x113   :  { %v1010_v54 = vadd.f32 %v1009_v53, %v1008_v50  ;;  %v374_v55 = vadd.f32 %v930_v52, %v2117_v1  ;;  %v931_v56 = vpop.f32.mrb[14].mxu0 }
 0x114   :  { %v932_v57 = vpop.f32.mrb[15].mxu0 }
 0x115   :  { %v1011_v58 = vpop.f32.mrb[14].mxu1  ;;  %v2138_v59 = vadd.f32 %v1010_v54, %v374_v55  ;;  %v933_v60 = vadd.f32 %v932_v57, %v931_v56 }
 0x116   :  { %v1012_v61 = vpop.f32.mrb[15].mxu1 }
 0x117   :  { %v1013_v62 = vadd.f32 %v1012_v61, %v1011_v58  ;;  %v379_v63 = vadd.f32 %v933_v60, %v2117_v1  ;;  %v934_v0 = vpop.f32.mrb[16].mxu0 }
 0x118   :  { %v935_v2 = vpop.f32.mrb[17].mxu0 }
 0x119   :  { %v1014_v3 = vpop.f32.mrb[16].mxu1  ;;  %v2141_v4 = vadd.f32 %v1013_v62, %v379_v63  ;;  %v936_v5 = vadd.f32 %v935_v2, %v934_v0 }
 0x11a   :  { %v1015_v6 = vpop.f32.mrb[17].mxu1 }
 0x11b   :  { %v1016_v7 = vadd.f32 %v1015_v6, %v1014_v3  ;;  %v384_v8 = vadd.f32 %v936_v5, %v2117_v1  ;;  %v937_v9 = vpop.f32.mrb[18].mxu0 }
 0x11c   :  { %v938_v10 = vpop.f32.mrb[19].mxu0 }
 0x11d   :  { %v1017_v12 = vpop.f32.mrb[18].mxu1  ;;  %v2144_v13 = vadd.f32 %v1016_v7, %v384_v8  ;;  %v939_v14 = vadd.f32 %v938_v10, %v937_v9 }
 0x11e   :  { %v1018_v15 = vpop.f32.mrb[19].mxu1 }
 0x11f   :  { %v1019_v16 = vadd.f32 %v1018_v15, %v1017_v12  ;;  %v389_v17 = vadd.f32 %v939_v14, %v2117_v1  ;;  %v940_v18 = vpop.f32.mrb[20].mxu0 }
 0x120   :  { %v941_v20 = vpop.f32.mrb[21].mxu0 }
 0x121   :  { %v1020_v21 = vpop.f32.mrb[20].mxu1  ;;  %v2147_v22 = vadd.f32 %v1019_v16, %v389_v17  ;;  %v942_v23 = vadd.f32 %v941_v20, %v940_v18 }
 0x122   :  { %v1021_v24 = vpop.f32.mrb[21].mxu1 }
 0x123   :  { %v1022_v25 = vadd.f32 %v1021_v24, %v1020_v21  ;;  %v394_v26 = vadd.f32 %v942_v23, %v2117_v1  ;;  %v943_v28 = vpop.f32.mrb[22].mxu0 }
 0x124   :  { %v944_v29 = vpop.f32.mrb[23].mxu0 }
 0x125   :  { %v1023_v30 = vpop.f32.mrb[22].mxu1  ;;  %v2150_v31 = vadd.f32 %v1022_v25, %v394_v26  ;;  %v945_v32 = vadd.f32 %v944_v29, %v943_v28 }
 0x126   :  { %v1024_v33 = vpop.f32.mrb[23].mxu1 }
 0x127   :  { %v1025_v34 = vadd.f32 %v1024_v33, %v1023_v30  ;;  %v399_v36 = vadd.f32 %v945_v32, %v2117_v1  ;;  %v946_v37 = vpop.f32.mrb[24].mxu0 }
 0x128   :  { %v947_v38 = vpop.f32.mrb[25].mxu0 }
 0x129   :  { %v1026_v39 = vpop.f32.mrb[24].mxu1  ;;  %v2153_v40 = vadd.f32 %v1025_v34, %v399_v36  ;;  %v948_v41 = vadd.f32 %v947_v38, %v946_v37 }
 0x12a   :  { %v1027_v42 = vpop.f32.mrb[25].mxu1 }
 0x12b   :  { %v1028_v44 = vadd.f32 %v1027_v42, %v1026_v39  ;;  %v404_v45 = vadd.f32 %v948_v41, %v2117_v1  ;;  %v949_v46 = vpop.f32.mrb[26].mxu0 }
 0x12c   :  { %v950_v47 = vpop.f32.mrb[27].mxu0 }
 0x12d   :  { %v1029_v48 = vpop.f32.mrb[26].mxu1  ;;  %v2156_v49 = vadd.f32 %v1028_v44, %v404_v45  ;;  %v951_v50 = vadd.f32 %v950_v47, %v949_v46 }
 0x12e   :  { %v1030_v52 = vpop.f32.mrb[27].mxu1 }
 0x12f   :  { %v1031_v53 = vadd.f32 %v1030_v52, %v1029_v48  ;;  %v409_v54 = vadd.f32 %v951_v50, %v2117_v1  ;;  %v952_v55 = vpop.f32.mrb[28].mxu0 }
 0x130   :  { %v953_v56 = vpop.f32.mrb[29].mxu0 }
 0x131   :  { %v1032_v57 = vpop.f32.mrb[28].mxu1  ;;  %v2159_v58 = vadd.f32 %v1031_v53, %v409_v54  ;;  %v954_v60 = vadd.f32 %v953_v56, %v952_v55 }
 0x132   :  { %v1033_v61 = vpop.f32.mrb[29].mxu1 }
 0x133   :  { %v1034_v62 = vadd.f32 %v1033_v61, %v1032_v57  ;;  %v414_v63 = vadd.f32 %v954_v60, %v2117_v1  ;;  %v955_v0 = vpop.f32.mrb[30].mxu0 }
 0x134   :  { %v956_v2 = vpop.f32.mrb[31].mxu0 }
 0x135   :  { %v1035_v3 = vpop.f32.mrb[30].mxu1  ;;  %v2162_v5 = vadd.f32 %v1034_v62, %v414_v63  ;;  %v957_v6 = vadd.f32 %v956_v2, %v955_v0 }
 0x136   :  { %v1036_v7 = vpop.f32.mrb[31].mxu1 }
 0x137   :  { %v1037_v8 = vadd.f32 %v1036_v7, %v1035_v3  ;;  %v419_v9 = vadd.f32 %v957_v6, %v2117_v1  ;;  %v1070_v10 = vpop.f32.mrb[32].mxu0 }
 0x138   :  { %v1071_v12 = vpop.f32.mrb[33].mxu0 }
 0x139   :  { %v1150_v14 = vpop.f32.mrb[32].mxu1  ;;  %v2165_v15 = vadd.f32 %v1037_v8, %v419_v9  ;;  %v1072_v16 = vadd.f32 %v1071_v12, %v1070_v10 }
 0x13a   :  { %v1151_v17 = vpop.f32.mrb[33].mxu1 }
 0x13b   :  { %v1152_v18 = vadd.f32 %v1151_v17, %v1150_v14  ;;  %v634_v20 = vadd.f32 %v1072_v16, %v2120_v11  ;;  %v1073_v21 = vpop.f32.mrb[34].mxu0 }
 0x13c   :  { %v1074_v23 = vpop.f32.mrb[35].mxu0 }
 0x13d   :  { %v1153_v24 = vpop.f32.mrb[34].mxu1  ;;  %v779_v25 = vadd.f32 %v1152_v18, %v634_v20  ;;  %v1075_v26 = vadd.f32 %v1074_v23, %v1073_v21 }
 0x13e   :  { %v1154_v28 = vpop.f32.mrb[35].mxu1 }
 0x13f   :  { %v1155_v29 = vadd.f32 %v1154_v28, %v1153_v24  ;;  %857 = vst [vmem:[%s2234_s3] sm:$0xff] %v779_v25  ;;  %v639_v1 = vadd.f32 %v1075_v26, %v2123_v19  ;;  %v1076_v30 = vpop.f32.mrb[36].mxu0 }
 0x140   :  { %v1077_v32 = vpop.f32.mrb[37].mxu0 }
 0x141   :  { %v1156_v33 = vpop.f32.mrb[36].mxu1  ;;  %v784_v34 = vadd.f32 %v1155_v29, %v639_v1  ;;  %v1078_v36 = vadd.f32 %v1077_v32, %v1076_v30 }
 0x142   :  { %v1157_v37 = vpop.f32.mrb[37].mxu1 }
 0x143   :  { %v1158_v11 = vadd.f32 %v1157_v37, %v1156_v33  ;;  %858 = vst [vmem:[%s2234_s3 + $0x8] sm:$0xff] %v784_v34  ;;  %v644_v38 = vadd.f32 %v1078_v36, %v2126_v27  ;;  %v1079_v39 = vpop.f32.mrb[38].mxu0 }
 0x144   :  { %v1080_v41 = vpop.f32.mrb[39].mxu0 }
 0x145   :  { %v1159_v42 = vpop.f32.mrb[38].mxu1  ;;  %v789_v44 = vadd.f32 %v1158_v11, %v644_v38  ;;  %v1081_v45 = vadd.f32 %v1080_v41, %v1079_v39 }
 0x146   :  { %v1160_v46 = vpop.f32.mrb[39].mxu1 }
 0x147   :  { %v1161_v19 = vadd.f32 %v1160_v46, %v1159_v42  ;;  %859 = vst [vmem:[%s2234_s3 + $0x10] sm:$0xff] %v789_v44  ;;  %v649_v47 = vadd.f32 %v1081_v45, %v2129_v35  ;;  %v1082_v48 = vpop.f32.mrb[40].mxu0 }
 0x148   :  { %v1083_v50 = vpop.f32.mrb[41].mxu0 }
 0x149   :  { %v1162_v52 = vpop.f32.mrb[40].mxu1  ;;  %v794_v53 = vadd.f32 %v1161_v19, %v649_v47  ;;  %v1084_v54 = vadd.f32 %v1083_v50, %v1082_v48 }
 0x14a   :  { %v1163_v55 = vpop.f32.mrb[41].mxu1 }
 0x14b   :  { %v1164_v27 = vadd.f32 %v1163_v55, %v1162_v52  ;;  %860 = vst [vmem:[%s2234_s3 + $0x18] sm:$0xff] %v794_v53  ;;  %v654_v56 = vadd.f32 %v1084_v54, %v2132_v43  ;;  %v1085_v57 = vpop.f32.mrb[42].mxu0 }
 0x14c   :  { %v1086_v60 = vpop.f32.mrb[43].mxu0 }
 0x14d   :  { %v1165_v61 = vpop.f32.mrb[42].mxu1  ;;  %v799_v62 = vadd.f32 %v1164_v27, %v654_v56  ;;  %v1087_v63 = vadd.f32 %v1086_v60, %v1085_v57 }
 0x14e   :  { %v1166_v0 = vpop.f32.mrb[43].mxu1 }
 0x14f   :  { %v1167_v35 = vadd.f32 %v1166_v0, %v1165_v61  ;;  %861 = vst [vmem:[%s2234_s3 + $0x20] sm:$0xff] %v799_v62  ;;  %v659_v2 = vadd.f32 %v1087_v63, %v2135_v51  ;;  %v1088_v3 = vpop.f32.mrb[44].mxu0 }
 0x150   :  { %v1089_v6 = vpop.f32.mrb[45].mxu0 }
 0x151   :  { %v1168_v7 = vpop.f32.mrb[44].mxu1  ;;  %v804_v8 = vadd.f32 %v1167_v35, %v659_v2  ;;  %v1090_v9 = vadd.f32 %v1089_v6, %v1088_v3 }
 0x152   :  { %v1169_v10 = vpop.f32.mrb[45].mxu1 }
 0x153   :  { %v1170_v43 = vadd.f32 %v1169_v10, %v1168_v7  ;;  %862 = vst [vmem:[%s2234_s3 + $0x28] sm:$0xff] %v804_v8  ;;  %v664_v12 = vadd.f32 %v1090_v9, %v2138_v59  ;;  %v1091_v14 = vpop.f32.mrb[46].mxu0 }
 0x154   :  { %v1092_v16 = vpop.f32.mrb[47].mxu0 }
 0x155   :  { %v1171_v17 = vpop.f32.mrb[46].mxu1  ;;  %v809_v18 = vadd.f32 %v1170_v43, %v664_v12  ;;  %v1093_v20 = vadd.f32 %v1092_v16, %v1091_v14 }
 0x156   :  { %v1172_v21 = vpop.f32.mrb[47].mxu1 }
 0x157   :  { %v1173_v51 = vadd.f32 %v1172_v21, %v1171_v17  ;;  %863 = vst [vmem:[%s2234_s3 + $0x30] sm:$0xff] %v809_v18  ;;  %v669_v23 = vadd.f32 %v1093_v20, %v2141_v4  ;;  %v1094_v24 = vpop.f32.mrb[48].mxu0 }
 0x158   :  { %v1095_v25 = vpop.f32.mrb[49].mxu0 }
 0x159   :  { %v1174_v26 = vpop.f32.mrb[48].mxu1  ;;  %v814_v28 = vadd.f32 %v1173_v51, %v669_v23  ;;  %v1096_v29 = vadd.f32 %v1095_v25, %v1094_v24 }
 0x15a   :  { %v1175_v1 = vpop.f32.mrb[49].mxu1 }
 0x15b   :  { %v1176_v59 = vadd.f32 %v1175_v1, %v1174_v26  ;;  %864 = vst [vmem:[%s2234_s3 + $0x38] sm:$0xff] %v814_v28  ;;  %v674_v30 = vadd.f32 %v1096_v29, %v2144_v13  ;;  %v1097_v32 = vpop.f32.mrb[50].mxu0 }
 0x15c   :  { %v1098_v33 = vpop.f32.mrb[51].mxu0 }
 0x15d   :  { %v1177_v34 = vpop.f32.mrb[50].mxu1  ;;  %v819_v36 = vadd.f32 %v1176_v59, %v674_v30  ;;  %v1099_v37 = vadd.f32 %v1098_v33, %v1097_v32 }
 0x15e   :  { %v1178_v11 = vpop.f32.mrb[51].mxu1 }
 0x15f   :  { %v1179_v4 = vadd.f32 %v1178_v11, %v1177_v34  ;;  %865 = vst [vmem:[%s2234_s3 + $0x40] sm:$0xff] %v819_v36  ;;  %v679_v38 = vadd.f32 %v1099_v37, %v2147_v22  ;;  %v1100_v39 = vpop.f32.mrb[52].mxu0 }
 0x160   :  { %v1101_v41 = vpop.f32.mrb[53].mxu0 }
 0x161   :  { %v1180_v42 = vpop.f32.mrb[52].mxu1  ;;  %v824_v44 = vadd.f32 %v1179_v4, %v679_v38  ;;  %v1102_v45 = vadd.f32 %v1101_v41, %v1100_v39 }
 0x162   :  { %v1181_v46 = vpop.f32.mrb[53].mxu1 }
 0x163   :  { %v1182_v13 = vadd.f32 %v1181_v46, %v1180_v42  ;;  %866 = vst [vmem:[%s2234_s3 + $0x48] sm:$0xff] %v824_v44  ;;  %v684_v19 = vadd.f32 %v1102_v45, %v2150_v31  ;;  %v1103_v47 = vpop.f32.mrb[54].mxu0 }
 0x164   :  { %v1104_v48 = vpop.f32.mrb[55].mxu0 }
 0x165   :  { %v1183_v50 = vpop.f32.mrb[54].mxu1  ;;  %v829_v52 = vadd.f32 %v1182_v13, %v684_v19  ;;  %v1105_v53 = vadd.f32 %v1104_v48, %v1103_v47 }
 0x166   :  { %v1184_v54 = vpop.f32.mrb[55].mxu1 }
 0x167   :  { %v1185_v22 = vadd.f32 %v1184_v54, %v1183_v50  ;;  %867 = vst [vmem:[%s2234_s3 + $0x50] sm:$0xff] %v829_v52  ;;  %v689_v55 = vadd.f32 %v1105_v53, %v2153_v40  ;;  %v1106_v27 = vpop.f32.mrb[56].mxu0 }
 0x168   :  { %v1107_v56 = vpop.f32.mrb[57].mxu0 }
 0x169   :  { %v1186_v57 = vpop.f32.mrb[56].mxu1  ;;  %v834_v60 = vadd.f32 %v1185_v22, %v689_v55  ;;  %v1108_v61 = vadd.f32 %v1107_v56, %v1106_v27 }
 0x16a   :  { %v1187_v62 = vpop.f32.mrb[57].mxu1 }
 0x16b   :  { %v1188_v31 = vadd.f32 %v1187_v62, %v1186_v57  ;;  %868 = vst [vmem:[%s2234_s3 + $0x58] sm:$0xff] %v834_v60  ;;  %v694_v63 = vadd.f32 %v1108_v61, %v2156_v49  ;;  %v1109_v0 = vpop.f32.mrb[58].mxu0 }
 0x16c   :  { %v1110_v35 = vpop.f32.mrb[59].mxu0 }
 0x16d   :  { %v1189_v2 = vpop.f32.mrb[58].mxu1  ;;  %v839_v3 = vadd.f32 %v1188_v31, %v694_v63  ;;  %v1111_v6 = vadd.f32 %v1110_v35, %v1109_v0 }
 0x16e   :  { %v1190_v7 = vpop.f32.mrb[59].mxu1 }
 0x16f   :  { %v1191_v40 = vadd.f32 %v1190_v7, %v1189_v2  ;;  %869 = vst [vmem:[%s2234_s3 + $0x60] sm:$0xff] %v839_v3  ;;  %v699_v8 = vadd.f32 %v1111_v6, %v2159_v58  ;;  %v1112_v9 = vpop.f32.mrb[60].mxu0 }
 0x170   :  { %v1113_v10 = vpop.f32.mrb[61].mxu0 }
 0x171   :  { %v1192_v43 = vpop.f32.mrb[60].mxu1  ;;  %v844_v12 = vadd.f32 %v1191_v40, %v699_v8  ;;  %v1114_v14 = vadd.f32 %v1113_v10, %v1112_v9 }
 0x172   :  { %v1193_v16 = vpop.f32.mrb[61].mxu1 }
 0x173   :  { %v1194_v49 = vadd.f32 %v1193_v16, %v1192_v43  ;;  %870 = vst [vmem:[%s2234_s3 + $0x68] sm:$0xff] %v844_v12  ;;  %v704_v17 = vadd.f32 %v1114_v14, %v2162_v5  ;;  %v1115_v18 = vpop.f32.mrb[62].mxu0 }
 0x174   :  { %v1116_v20 = vpop.f32.mrb[63].mxu0 }
 0x175   :  { %v1195_v21 = vpop.f32.mrb[62].mxu1  ;;  %v849_v51 = vadd.f32 %v1194_v49, %v704_v17  ;;  %v1117_v23 = vadd.f32 %v1116_v20, %v1115_v18 }
 0x176   :  { %v1196_v24 = vpop.f32.mrb[63].mxu1 }
 0x177   :  { %v1197_v58 = vadd.f32 %v1196_v24, %v1195_v21  ;;  %871 = vst [vmem:[%s2234_s3 + $0x70] sm:$0xff] %v849_v51  ;;  %v709_v25 = vadd.f32 %v1117_v23, %v2165_v15 }
 0x179   :  { %v854_v26 = vadd.f32 %v1197_v58, %v709_v25 }
 0x17b   :  { %872 = vst [vmem:[%s2234_s3 + $0x78] sm:$0xff] %v854_v26 }

</bundles_post_ra>
